<compile_context>
chip_gen: v6e
topology: v6e:2x2x1
jax: 0.10.0
libtpu: 0.0.40
codegen_flags: <defaults>
</compile_context>

<pallas_src>
import math

import jax
import jax.numpy as jnp
from jax import lax
from jax.experimental import pallas as pl
from jax.experimental.pallas import tpu as pltpu

# ---------------- small LayoutLMv3-like config ----------------
VOCAB      = 64
MAX_POS    = 64
MAX_2D     = 64
PAD_ID     = 1            # RoBERTa-style padding_idx
HIDDEN     = 96
COORD      = 16           # coordinate_size (4*COORD + 2*SHAPE == HIDDEN)
SHAPE      = 16           # shape_size
HEADS      = 2
HEAD_DIM   = HIDDEN // HEADS          # 48
DH_PAD     = 64                       # per-head dim zero-padded 48 -> 64 lanes
INTER      = 192
LAYERS     = 2
EPS        = 1e-5
N_CLASSES  = 3

SEQ        = 11           # text sequence length
IMG        = 32           # image spatial size
PATCH      = 16
NPATCH     = (IMG // PATCH) ** 2      # 4
VIS_SEQ    = NPATCH + 1               # +1 cls token
B          = 2
S_TOTAL    = SEQ + VIS_SEQ            # 16
ROWS       = B * S_TOTAL              # 32 (combined row space)
PATCH_DIM  = 3 * PATCH * PATCH        # 768
QKV_WIDTH  = 3 * HEADS * DH_PAD       # 384 (packed, head-padded)
KOFF       = HEADS * DH_PAD           # 128
VOFF       = 2 * HEADS * DH_PAD       # 256
MASK_NEG   = -1e9                     # bounded additive attention mask
ATT_SCALE  = 1.0 / math.sqrt(HEAD_DIM)


# ---------------- in-kernel helpers ----------------
def _ln(x, g, b):
    """LayerNorm over the last dim (biased variance, eps=1e-5), like torch.nn.LayerNorm."""
    mean = jnp.mean(x, axis=-1, keepdims=True)
    var = jnp.mean(jnp.square(x - mean), axis=-1, keepdims=True)
    return (x - mean) * lax.rsqrt(var + EPS) * g + b


def _erf(x):
    # TODO(synk): polynomial erf (Abramowitz & Stegun 7.1.26, |err| < 1.5e-7) is used
    # instead of lax.erf so the exact-GELU stays fusable inside the Mosaic kernel.
    p_ = 0.3275911
    a1, a2, a3, a4, a5 = 0.254829592, -0.284496736, 1.421413741, -1.453152027, 1.061405429
    sgn = jnp.where(x >= 0.0, 1.0, -1.0)
    ax = jnp.abs(x)
    t = 1.0 / (1.0 + p_ * ax)
    poly = ((((a5 * t + a4) * t + a3) * t + a2) * t + a1) * t
    return sgn * (1.0 - poly * jnp.exp(-ax * ax))


def _gelu(x):
    return 0.5 * x * (1.0 + _erf(x * (1.0 / math.sqrt(2.0))))


# ---------------- the fused Pallas kernel ----------------
def fused_kernel(
    # activations / masks
    txt_ref, patch_ref, bias_ref,
    # embedding params
    patch_w_ref, patch_b_ref, cls_tok_ref, vis_pos_ref,
    emb_g_ref, emb_b_ref, vis_g_ref, vis_b_ref, cat_g_ref, cat_b_ref,
    # encoder params (stacked over layers)
    qkv_w_ref, qkv_b_ref, ao_w_ref, ao_b_ref, ln1_g_ref, ln1_b_ref,
    i_w_ref, i_b_ref, o_w_ref, o_b_ref, ln2_g_ref, ln2_b_ref,
    # classifier params
    cd_w_ref, cd_b_ref, co_w_ref, co_b_ref,
    # output
    logits_ref,
    # scratch
    x_buf,
):
    f32 = jnp.float32

    # ---- embeddings: text LN (all batches at once), patch projection + cls/pos + visual LN ----
    txt_n = _ln(txt_ref[...], emb_g_ref[...], emb_b_ref[...])                    # (B*SEQ, H)
    vis_proj = jnp.dot(patch_ref[...], patch_w_ref[...],
                       preferred_element_type=f32) + patch_b_ref[...]            # (B*NPATCH, H)
    vis_g = vis_g_ref[...]
    vis_b = vis_b_ref[...]
    cls_row = _ln(cls_tok_ref[...] + vis_pos_ref[0:1, :], vis_g, vis_b)          # (1, H), batch-invariant
    pos_pat = vis_pos_ref[1:VIS_SEQ, :]                                          # (NPATCH, H)

    for b in range(B):
        base = b * S_TOTAL
        x_buf[base:base + SEQ, :] = txt_n[b * SEQ:(b + 1) * SEQ, :]
        x_buf[base + SEQ:base + SEQ + 1, :] = cls_row
        x_buf[base + SEQ + 1:base + S_TOTAL, :] = _ln(
            vis_proj[b * NPATCH:(b + 1) * NPATCH, :] + pos_pat, vis_g, vis_b)

    # post-concat LayerNorm over the full (B*S_TOTAL, H) activation
    x2 = _ln(x_buf[...], cat_g_ref[...], cat_b_ref[...])                         # (32, 96)
    bias = bias_ref[...]                                                         # (32, 32) block-diag

    # ---- transformer encoder (both layers fused, weights VMEM-resident) ----
    for l in range(LAYERS):
        # single packed QKV projection (heads zero-padded 48 -> 64 lanes)
        qkv = jnp.dot(x2, qkv_w_ref[l], preferred_element_type=f32) + qkv_b_ref[l]   # (32, 384)
        ctx_heads = []
        for h in range(HEADS):
            q = qkv[:, h * DH_PAD:(h + 1) * DH_PAD] * ATT_SCALE                  # (32, 64)
            k = qkv[:, KOFF + h * DH_PAD:KOFF + (h + 1) * DH_PAD]                # (32, 64)
            v = qkv[:, VOFF + h * DH_PAD:VOFF + (h + 1) * DH_PAD]                # (32, 64)
            s = lax.dot_general(q, k, (((1,), (1,)), ((), ())),
                                preferred_element_type=f32) + bias               # (32, 32)
            # numerically-stable softmax; denominator reciprocal on the EUP
            s = s - jnp.max(s, axis=-1, keepdims=True)
            p = jnp.exp(s)
            p = p * pl.reciprocal(jnp.sum(p, axis=-1, keepdims=True), approx=True)
            ctx_heads.append(jnp.dot(p, v, preferred_element_type=f32))          # (32, 64)
        ctx = jnp.concatenate(ctx_heads, axis=1)                                 # (32, 128)
        attn_out = jnp.dot(ctx, ao_w_ref[l], preferred_element_type=f32) + ao_b_ref[l]
        h1 = _ln(attn_out + x2, ln1_g_ref[l], ln1_b_ref[l])
        inter = _gelu(jnp.dot(h1, i_w_ref[l], preferred_element_type=f32) + i_b_ref[l])
        ffn = jnp.dot(inter, o_w_ref[l], preferred_element_type=f32) + o_b_ref[l]
        x2 = _ln(ffn + h1, ln2_g_ref[l], ln2_b_ref[l])

    # ---- classification head on the [CLS] (first text) token of each batch ----
    cls_rows = jnp.concatenate(
        [x2[b * S_TOTAL:b * S_TOTAL + 1, :] for b in range(B)], axis=0)          # (B, H)
    hc = jnp.tanh(jnp.dot(cls_rows, cd_w_ref[...], preferred_element_type=f32)
                  + cd_b_ref[...])
    logits_ref[...] = (jnp.dot(hc, co_w_ref[...], preferred_element_type=f32)
                       + co_b_ref[...])


def _fullspec(shape):
    nd = len(shape)
    return pl.BlockSpec(shape, lambda *_, nd=nd: (0,) * nd)


def run_fused(txt_sum, patches, mask_bias, flat_params):
    args = [txt_sum, patches, mask_bias] + flat_params
    return pl.pallas_call(
        fused_kernel,
        grid=(1,),
        in_specs=[_fullspec(a.shape) for a in args],
        out_specs=_fullspec((B, N_CLASSES)),
        out_shape=jax.ShapeDtypeStruct((B, N_CLASSES), jnp.float32),
        scratch_shapes=[
            pltpu.VMEM((ROWS, HIDDEN), jnp.float32),
        ],
        compiler_params=pltpu.CompilerParams(dimension_semantics=("arbitrary",)),
    )(*args)


# ---------------- parameter packing (pad heads 48 -> 64, merge QKV, stack layers) ----------------
def _pad_head_cols(w):
    parts = []
    for h in range(HEADS):
        parts.append(w[:, h * HEAD_DIM:(h + 1) * HEAD_DIM])
        parts.append(jnp.zeros((w.shape[0], DH_PAD - HEAD_DIM), w.dtype))
    return jnp.concatenate(parts, axis=1)


def _pad_head_bias(b):
    parts = []
    for h in range(HEADS):
        parts.append(b[h * HEAD_DIM:(h + 1) * HEAD_DIM])
        parts.append(jnp.zeros((DH_PAD - HEAD_DIM,), b.dtype))
    return jnp.concatenate(parts, axis=0)


def _pad_head_rows(w):
    parts = []
    for h in range(HEADS):
        parts.append(w[h * HEAD_DIM:(h + 1) * HEAD_DIM, :])
        parts.append(jnp.zeros((DH_PAD - HEAD_DIM, w.shape[1]), w.dtype))
    return jnp.concatenate(parts, axis=0)


def pack_params(p):
    lp = p["layers"]
    # stacked per-layer vectors are shaped (LAYERS, 1, dim) so ref[l] is 2-D in-kernel
    stk_vec = lambda k: jnp.stack([l[k].reshape(1, -1) for l in lp], axis=0)
    stk_mat = lambda k: jnp.stack([l[k] for l in lp], axis=0)
    qkv_w = jnp.stack([jnp.concatenate([_pad_head_cols(l["q_w"]),
                                        _pad_head_cols(l["k_w"]),
                                        _pad_head_cols(l["v_w"])], axis=1) for l in lp], axis=0)
    qkv_b = jnp.stack([jnp.concatenate([_pad_head_bias(l["q_b"]),
                                        _pad_head_bias(l["k_b"]),
                                        _pad_head_bias(l["v_b"])],
                                       axis=0).reshape(1, QKV_WIDTH) for l in lp], axis=0)
    ao_w = jnp.stack([_pad_head_rows(l["ao_w"]) for l in lp], axis=0)
    return [
        p["patch_w"], p["patch_b"].reshape(1, HIDDEN),
        p["cls_token"].reshape(1, HIDDEN), p["vis_pos_emb"].reshape(VIS_SEQ, HIDDEN),
        p["emb_ln_g"].reshape(1, HIDDEN), p["emb_ln_b"].reshape(1, HIDDEN),
        p["vis_ln_g"].reshape(1, HIDDEN), p["vis_ln_b"].reshape(1, HIDDEN),
        p["cat_ln_g"].reshape(1, HIDDEN), p["cat_ln_b"].reshape(1, HIDDEN),
        qkv_w, qkv_b, ao_w, stk_vec("ao_b"),
        stk_vec("ln1_g"), stk_vec("ln1_b"),
        stk_mat("i_w"), stk_vec("i_b"), stk_mat("o_w"), stk_vec("o_b"),
        stk_vec("ln2_g"), stk_vec("ln2_b"),
        p["cls_dense_w"], p["cls_dense_b"].reshape(1, HIDDEN),
        p["cls_out_w"], p["cls_out_b"].reshape(1, N_CLASSES),
    ]


# ---------------- model glue (gathers, patchify, mask, loss) ----------------
def forward(params, input_ids, attention_mask, bbox, pixel_values, labels=None):
    Bx, S = input_ids.shape

    # text embedding sum (word + token-type + position + spatial bbox) -- gathers stay in XLA
    word = params["word_emb"][input_ids]
    tok_type = params["tok_type_emb"][jnp.zeros_like(input_ids)]
    pos_mask = (input_ids != PAD_ID).astype(jnp.int32)
    position_ids = jnp.cumsum(pos_mask, axis=1) * pos_mask + PAD_ID
    pos = params["pos_emb"][position_ids]

    left = params["x_emb"][bbox[:, :, 0]]
    upper = params["y_emb"][bbox[:, :, 1]]
    right = params["x_emb"][bbox[:, :, 2]]
    lower = params["y_emb"][bbox[:, :, 3]]
    hh = params["h_emb"][bbox[:, :, 3] - bbox[:, :, 1]]
    ww = params["w_emb"][bbox[:, :, 2] - bbox[:, :, 0]]
    spatial = jnp.concatenate([left, upper, right, lower, hh, ww], axis=-1)
    txt_sum = (word + tok_type + pos + spatial).astype(jnp.float32)        # (B, SEQ, H)
    txt2d = txt_sum.reshape(Bx * SEQ, HIDDEN)

    # patchify: stride-16 conv == matmul over flattened patches
    _, C, Hh, Ww = pixel_values.shape
    nH, nW = Hh // PATCH, Ww // PATCH
    patches = pixel_values.reshape(Bx, C, nH, PATCH, nW, PATCH)
    patches = patches.transpose(0, 2, 4, 1, 3, 5).reshape(Bx * nH * nW, C * PATCH * PATCH)

    # combined (B*S, B*S) additive attention bias: block-diagonal (no cross-batch
    # attention) with padded text keys masked out; bounded -1e9 avoids NaN rows.
    full_mask = jnp.concatenate(
        [attention_mask.astype(jnp.float32), jnp.ones((Bx, VIS_SEQ), jnp.float32)], axis=1)
    key_allowed = full_mask.reshape(-1)                                    # (B*S,)
    batch_ids = jnp.repeat(jnp.arange(Bx), S_TOTAL)
    same_batch = (batch_ids[:, None] == batch_ids[None, :]).astype(jnp.float32)
    allowed = same_batch * key_allowed[None, :]
    mask_bias = ((1.0 - allowed) * MASK_NEG).astype(jnp.float32)           # (B*S, B*S)

    logits = run_fused(txt2d, patches, mask_bias, pack_params(params))

    out = {"logits": logits}
    if labels is not None:
        logp = jax.nn.log_softmax(logits, axis=-1)
        out["loss"] = -jnp.mean(jnp.take_along_axis(logp, labels[:, None], axis=-1))
    return out


# ---------------- deterministic parameter init ----------------
def init_params(key):
    keys = iter(jax.random.split(key, 256))

    def nrm(shape, scale=0.02):
        return scale * jax.random.normal(next(keys), shape, jnp.float32)

    p = {
        "word_emb": nrm((VOCAB, HIDDEN)),
        "tok_type_emb": nrm((2, HIDDEN)),
        "pos_emb": nrm((MAX_POS, HIDDEN)),
        "x_emb": nrm((MAX_2D, COORD)),
        "y_emb": nrm((MAX_2D, COORD)),
        "h_emb": nrm((MAX_2D, SHAPE)),
        "w_emb": nrm((MAX_2D, SHAPE)),
        "emb_ln_g": jnp.ones((HIDDEN,)), "emb_ln_b": jnp.zeros((HIDDEN,)),
        "patch_w": nrm((3 * PATCH * PATCH, HIDDEN)), "patch_b": jnp.zeros((HIDDEN,)),
        "cls_token": nrm((1, 1, HIDDEN)),
        "vis_pos_emb": nrm((1, VIS_SEQ, HIDDEN)),
        "vis_ln_g": jnp.ones((HIDDEN,)), "vis_ln_b": jnp.zeros((HIDDEN,)),
        "cat_ln_g": jnp.ones((HIDDEN,)), "cat_ln_b": jnp.zeros((HIDDEN,)),
        "cls_dense_w": nrm((HIDDEN, HIDDEN)), "cls_dense_b": jnp.zeros((HIDDEN,)),
        "cls_out_w": nrm((HIDDEN, N_CLASSES)), "cls_out_b": jnp.zeros((N_CLASSES,)),
    }
    layers = []
    for _ in range(LAYERS):
        layers.append({
            "q_w": nrm((HIDDEN, HIDDEN)), "q_b": jnp.zeros((HIDDEN,)),
            "k_w": nrm((HIDDEN, HIDDEN)), "k_b": jnp.zeros((HIDDEN,)),
            "v_w": nrm((HIDDEN, HIDDEN)), "v_b": jnp.zeros((HIDDEN,)),
            "ao_w": nrm((HIDDEN, HIDDEN)), "ao_b": jnp.zeros((HIDDEN,)),
            "ln1_g": jnp.ones((HIDDEN,)), "ln1_b": jnp.zeros((HIDDEN,)),
            "i_w": nrm((HIDDEN, INTER)), "i_b": jnp.zeros((INTER,)),
            "o_w": nrm((INTER, HIDDEN)), "o_b": jnp.zeros((HIDDEN,)),
            "ln2_g": jnp.ones((HIDDEN,)), "ln2_b": jnp.zeros((HIDDEN,)),
        })
    p["layers"] = layers
    return p


if __name__ == "__main__":
    key = jax.random.PRNGKey(0)
    pkey, k1, k2, k3, k4, k5 = jax.random.split(key, 6)

    params = init_params(pkey)

    input_ids = jax.random.randint(k1, (B, SEQ), 0, VOCAB, dtype=jnp.int32)
    attention_mask = jnp.concatenate(
        [jnp.ones((B, SEQ - 2), jnp.int32), jnp.zeros((B, 2), jnp.int32)], axis=1)
    xy0 = jax.random.randint(k2, (B, SEQ, 2), 0, 16, dtype=jnp.int32)
    wh = jax.random.randint(k3, (B, SEQ, 2), 0, 16, dtype=jnp.int32)
    bbox = jnp.concatenate([xy0, xy0 + wh], axis=-1)          # (x0, y0, x1, y1)
    pixel_values = jax.random.normal(k4, (B, 3, IMG, IMG), jnp.float32)   # NCHW, like PyTorch
    labels = jax.random.randint(k5, (B,), 0, N_CLASSES, dtype=jnp.int32)

    fwd = jax.jit(forward)
    out = fwd(params, input_ids, attention_mask, bbox, pixel_values, labels)
    jax.block_until_ready(out)

    assert out["logits"].shape == (B, N_CLASSES)
    assert jnp.isfinite(out["loss"]) and jnp.all(jnp.isfinite(out["logits"]))
    print("KERNEL_OK")
</pallas_src>

<mosaic_0001>
module attributes {stable_mosaic.version = 11 : i64} {
  func.func @fused_kernel(%arg0: i32, %arg1: memref<22x96xf32, #tpu.memory_space<vmem>>, %arg2: memref<8x768xf32, #tpu.memory_space<vmem>>, %arg3: memref<32x32xf32, #tpu.memory_space<vmem>>, %arg4: memref<768x96xf32, #tpu.memory_space<vmem>>, %arg5: memref<1x96xf32, #tpu.memory_space<vmem>>, %arg6: memref<1x96xf32, #tpu.memory_space<vmem>>, %arg7: memref<5x96xf32, #tpu.memory_space<vmem>>, %arg8: memref<1x96xf32, #tpu.memory_space<vmem>>, %arg9: memref<1x96xf32, #tpu.memory_space<vmem>>, %arg10: memref<1x96xf32, #tpu.memory_space<vmem>>, %arg11: memref<1x96xf32, #tpu.memory_space<vmem>>, %arg12: memref<1x96xf32, #tpu.memory_space<vmem>>, %arg13: memref<1x96xf32, #tpu.memory_space<vmem>>, %arg14: memref<2x96x384xf32, #tpu.memory_space<vmem>>, %arg15: memref<2x1x384xf32, #tpu.memory_space<vmem>>, %arg16: memref<2x128x96xf32, #tpu.memory_space<vmem>>, %arg17: memref<2x1x96xf32, #tpu.memory_space<vmem>>, %arg18: memref<2x1x96xf32, #tpu.memory_space<vmem>>, %arg19: memref<2x1x96xf32, #tpu.memory_space<vmem>>, %arg20: memref<2x96x192xf32, #tpu.memory_space<vmem>>, %arg21: memref<2x1x192xf32, #tpu.memory_space<vmem>>, %arg22: memref<2x192x96xf32, #tpu.memory_space<vmem>>, %arg23: memref<2x1x96xf32, #tpu.memory_space<vmem>>, %arg24: memref<2x1x96xf32, #tpu.memory_space<vmem>>, %arg25: memref<2x1x96xf32, #tpu.memory_space<vmem>>, %arg26: memref<96x96xf32, #tpu.memory_space<vmem>>, %arg27: memref<1x96xf32, #tpu.memory_space<vmem>>, %arg28: memref<96x3xf32, #tpu.memory_space<vmem>>, %arg29: memref<1x3xf32, #tpu.memory_space<vmem>>, %arg30: memref<2x3xf32, #tpu.memory_space<vmem>>, %arg31: memref<32x96xf32, #tpu.memory_space<vmem>>) attributes {dimension_semantics = [#tpu.dimension_semantics<arbitrary>], iteration_bounds = array<i64: 1>, scalar_prefetch = 0 : i64, scratch_operands = 1 : i64, tpu.core_type = #tpu.core_type<tc>, window_params = [{pipeline_mode = #tpu.pipeline_mode<synchronous>, transform_indices = @transform_0, window_bounds = array<i64: 22, 96>}, {pipeline_mode = #tpu.pipeline_mode<synchronous>, transform_indices = @transform_1, window_bounds = array<i64: 8, 768>}, {pipeline_mode = #tpu.pipeline_mode<synchronous>, transform_indices = @transform_2, window_bounds = array<i64: 32, 32>}, {pipeline_mode = #tpu.pipeline_mode<synchronous>, transform_indices = @transform_3, window_bounds = array<i64: 768, 96>}, {pipeline_mode = #tpu.pipeline_mode<synchronous>, transform_indices = @transform_4, window_bounds = array<i64: 1, 96>}, {pipeline_mode = #tpu.pipeline_mode<synchronous>, transform_indices = @transform_5, window_bounds = array<i64: 1, 96>}, {pipeline_mode = #tpu.pipeline_mode<synchronous>, transform_indices = @transform_6, window_bounds = array<i64: 5, 96>}, {pipeline_mode = #tpu.pipeline_mode<synchronous>, transform_indices = @transform_7, window_bounds = array<i64: 1, 96>}, {pipeline_mode = #tpu.pipeline_mode<synchronous>, transform_indices = @transform_8, window_bounds = array<i64: 1, 96>}, {pipeline_mode = #tpu.pipeline_mode<synchronous>, transform_indices = @transform_9, window_bounds = array<i64: 1, 96>}, {pipeline_mode = #tpu.pipeline_mode<synchronous>, transform_indices = @transform_10, window_bounds = array<i64: 1, 96>}, {pipeline_mode = #tpu.pipeline_mode<synchronous>, transform_indices = @transform_11, window_bounds = array<i64: 1, 96>}, {pipeline_mode = #tpu.pipeline_mode<synchronous>, transform_indices = @transform_12, window_bounds = array<i64: 1, 96>}, {pipeline_mode = #tpu.pipeline_mode<synchronous>, transform_indices = @transform_13, window_bounds = array<i64: 2, 96, 384>}, {pipeline_mode = #tpu.pipeline_mode<synchronous>, transform_indices = @transform_14, window_bounds = array<i64: 2, 1, 384>}, {pipeline_mode = #tpu.pipeline_mode<synchronous>, transform_indices = @transform_15, window_bounds = array<i64: 2, 128, 96>}, {pipeline_mode = #tpu.pipeline_mode<synchronous>, transform_indices = @transform_16, window_bounds = array<i64: 2, 1, 96>}, {pipeline_mode = #tpu.pipeline_mode<synchronous>, transform_indices = @transform_17, window_bounds = array<i64: 2, 1, 96>}, {pipeline_mode = #tpu.pipeline_mode<synchronous>, transform_indices = @transform_18, window_bounds = array<i64: 2, 1, 96>}, {pipeline_mode = #tpu.pipeline_mode<synchronous>, transform_indices = @transform_19, window_bounds = array<i64: 2, 96, 192>}, {pipeline_mode = #tpu.pipeline_mode<synchronous>, transform_indices = @transform_20, window_bounds = array<i64: 2, 1, 192>}, {pipeline_mode = #tpu.pipeline_mode<synchronous>, transform_indices = @transform_21, window_bounds = array<i64: 2, 192, 96>}, {pipeline_mode = #tpu.pipeline_mode<synchronous>, transform_indices = @transform_22, window_bounds = array<i64: 2, 1, 96>}, {pipeline_mode = #tpu.pipeline_mode<synchronous>, transform_indices = @transform_23, window_bounds = array<i64: 2, 1, 96>}, {pipeline_mode = #tpu.pipeline_mode<synchronous>, transform_indices = @transform_24, window_bounds = array<i64: 2, 1, 96>}, {pipeline_mode = #tpu.pipeline_mode<synchronous>, transform_indices = @transform_25, window_bounds = array<i64: 96, 96>}, {pipeline_mode = #tpu.pipeline_mode<synchronous>, transform_indices = @transform_26, window_bounds = array<i64: 1, 96>}, {pipeline_mode = #tpu.pipeline_mode<synchronous>, transform_indices = @transform_27, window_bounds = array<i64: 96, 3>}, {pipeline_mode = #tpu.pipeline_mode<synchronous>, transform_indices = @transform_28, window_bounds = array<i64: 1, 3>}, {pipeline_mode = #tpu.pipeline_mode<synchronous>, transform_indices = @transform_29, window_bounds = array<i64: 2, 3>}]} {
    %c0 = arith.constant 0 : index
    %c0_0 = arith.constant 0 : index
    %0 = vector.load %arg1[%c0, %c0_0] : memref<22x96xf32, #tpu.memory_space<vmem>>, vector<22x96xf32>
    %c0_1 = arith.constant 0 : index
    %c0_2 = arith.constant 0 : index
    %1 = vector.load %arg8[%c0_1, %c0_2] : memref<1x96xf32, #tpu.memory_space<vmem>>, vector<1x96xf32>
    %c0_3 = arith.constant 0 : index
    %c0_4 = arith.constant 0 : index
    %2 = vector.load %arg9[%c0_3, %c0_4] : memref<1x96xf32, #tpu.memory_space<vmem>>, vector<1x96xf32>
    %cst = arith.constant dense<0.000000e+00> : vector<22xf32>
    %3 = vector.multi_reduction <add>, %0, %cst [1] : vector<22x96xf32> to vector<22xf32>
    %4 = vector.shape_cast %3 : vector<22xf32> to vector<22x1xf32>
    %cst_5 = arith.constant 9.600000e+01 : f32
    %5 = vector.broadcast %cst_5 : f32 to vector<22x1xf32>
    %6 = arith.divf %4, %5 : vector<22x1xf32>
    %7 = vector.broadcast %6 : vector<22x1xf32> to vector<22x96xf32>
    %8 = arith.subf %0, %7 : vector<22x96xf32>
    %9 = arith.mulf %8, %8 : vector<22x96xf32>
    %cst_6 = arith.constant dense<0.000000e+00> : vector<22xf32>
    %10 = vector.multi_reduction <add>, %9, %cst_6 [1] : vector<22x96xf32> to vector<22xf32>
    %11 = vector.shape_cast %10 : vector<22xf32> to vector<22x1xf32>
    %cst_7 = arith.constant 9.600000e+01 : f32
    %12 = vector.broadcast %cst_7 : f32 to vector<22x1xf32>
    %13 = arith.divf %11, %12 : vector<22x1xf32>
    %14 = vector.broadcast %6 : vector<22x1xf32> to vector<22x96xf32>
    %15 = arith.subf %0, %14 : vector<22x96xf32>
    %cst_8 = arith.constant 9.99999974E-6 : f32
    %16 = vector.broadcast %cst_8 : f32 to vector<22x1xf32>
    %17 = arith.addf %13, %16 : vector<22x1xf32>
    %18 = math.rsqrt %17 : vector<22x1xf32>
    %19 = vector.broadcast %18 : vector<22x1xf32> to vector<22x96xf32>
    %20 = arith.mulf %15, %19 : vector<22x96xf32>
    %21 = vector.broadcast %1 : vector<1x96xf32> to vector<22x96xf32>
    %22 = arith.mulf %20, %21 : vector<22x96xf32>
    %23 = vector.broadcast %2 : vector<1x96xf32> to vector<22x96xf32>
    %24 = arith.addf %22, %23 : vector<22x96xf32>
    %c0_9 = arith.constant 0 : index
    %c0_10 = arith.constant 0 : index
    %25 = vector.load %arg2[%c0_9, %c0_10] : memref<8x768xf32, #tpu.memory_space<vmem>>, vector<8x768xf32>
    %c0_11 = arith.constant 0 : index
    %c0_12 = arith.constant 0 : index
    %26 = vector.load %arg4[%c0_11, %c0_12] : memref<768x96xf32, #tpu.memory_space<vmem>>, vector<768x96xf32>
    %cst_13 = arith.constant dense<0.000000e+00> : vector<8x96xf32>
    %27 = tpu.matmul %25, %26, %cst_13 {dimension_numbers = #tpu.dot_dimension_numbers<[1], [0], [0], [1], [0, 0, 1, 1], [], []>} : vector<8x768xf32>, vector<768x96xf32>, vector<8x96xf32> -> vector<8x96xf32>
    %c0_14 = arith.constant 0 : index
    %c0_15 = arith.constant 0 : index
    %28 = vector.load %arg5[%c0_14, %c0_15] : memref<1x96xf32, #tpu.memory_space<vmem>>, vector<1x96xf32>
    %29 = vector.broadcast %28 : vector<1x96xf32> to vector<8x96xf32>
    %30 = arith.addf %27, %29 : vector<8x96xf32>
    %c0_16 = arith.constant 0 : index
    %c0_17 = arith.constant 0 : index
    %31 = vector.load %arg10[%c0_16, %c0_17] : memref<1x96xf32, #tpu.memory_space<vmem>>, vector<1x96xf32>
    %c0_18 = arith.constant 0 : index
    %c0_19 = arith.constant 0 : index
    %32 = vector.load %arg11[%c0_18, %c0_19] : memref<1x96xf32, #tpu.memory_space<vmem>>, vector<1x96xf32>
    %c0_20 = arith.constant 0 : index
    %c0_21 = arith.constant 0 : index
    %33 = vector.load %arg6[%c0_20, %c0_21] : memref<1x96xf32, #tpu.memory_space<vmem>>, vector<1x96xf32>
    %c0_22 = arith.constant 0 : index
    %c0_23 = arith.constant 0 : index
    %34 = vector.load %arg7[%c0_22, %c0_23] : memref<5x96xf32, #tpu.memory_space<vmem>>, vector<1x96xf32>
    %35 = arith.addf %33, %34 : vector<1x96xf32>
    %cst_24 = arith.constant dense<0.000000e+00> : vector<1xf32>
    %36 = vector.multi_reduction <add>, %35, %cst_24 [1] : vector<1x96xf32> to vector<1xf32>
    %37 = vector.shape_cast %36 : vector<1xf32> to vector<1x1xf32>
    %cst_25 = arith.constant 9.600000e+01 : f32
    %38 = vector.broadcast %cst_25 : f32 to vector<1x1xf32>
    %39 = arith.divf %37, %38 : vector<1x1xf32>
    %40 = vector.broadcast %39 : vector<1x1xf32> to vector<1x96xf32>
    %41 = arith.subf %35, %40 : vector<1x96xf32>
    %42 = arith.mulf %41, %41 : vector<1x96xf32>
    %cst_26 = arith.constant dense<0.000000e+00> : vector<1xf32>
    %43 = vector.multi_reduction <add>, %42, %cst_26 [1] : vector<1x96xf32> to vector<1xf32>
    %44 = vector.shape_cast %43 : vector<1xf32> to vector<1x1xf32>
    %cst_27 = arith.constant 9.600000e+01 : f32
    %45 = vector.broadcast %cst_27 : f32 to vector<1x1xf32>
    %46 = arith.divf %44, %45 : vector<1x1xf32>
    %47 = vector.broadcast %39 : vector<1x1xf32> to vector<1x96xf32>
    %48 = arith.subf %35, %47 : vector<1x96xf32>
    %cst_28 = arith.constant 9.99999974E-6 : f32
    %49 = vector.broadcast %cst_28 : f32 to vector<1x1xf32>
    %50 = arith.addf %46, %49 : vector<1x1xf32>
    %51 = math.rsqrt %50 : vector<1x1xf32>
    %52 = vector.broadcast %51 : vector<1x1xf32> to vector<1x96xf32>
    %53 = arith.mulf %48, %52 : vector<1x96xf32>
    %54 = arith.mulf %53, %31 : vector<1x96xf32>
    %55 = arith.addf %54, %32 : vector<1x96xf32>
    %c1 = arith.constant 1 : index
    %c0_29 = arith.constant 0 : index
    %56 = vector.load %arg7[%c1, %c0_29] : memref<5x96xf32, #tpu.memory_space<vmem>>, vector<4x96xf32>
    %57 = vector.extract_strided_slice %24 {offsets = [0, 0], sizes = [11, 96], strides = [1, 1]} : vector<22x96xf32> to vector<11x96xf32>
    %c0_30 = arith.constant 0 : index
    %c0_31 = arith.constant 0 : index
    %58 = vector.load %arg31[%c0_30, %c0_31] : memref<32x96xf32, #tpu.memory_space<vmem>>, vector<11x96xf32>
    tpu.vector_store %arg31[%c0_30, %c0_31], %57 {strides = array<i32>} : memref<32x96xf32, #tpu.memory_space<vmem>>, vector<11x96xf32>,
    %c11 = arith.constant 11 : index
    %c0_32 = arith.constant 0 : index
    %59 = vector.load %arg31[%c11, %c0_32] : memref<32x96xf32, #tpu.memory_space<vmem>>, vector<1x96xf32>
    tpu.vector_store %arg31[%c11, %c0_32], %55 {strides = array<i32>} : memref<32x96xf32, #tpu.memory_space<vmem>>, vector<1x96xf32>,
    %60 = vector.extract_strided_slice %30 {offsets = [0, 0], sizes = [4, 96], strides = [1, 1]} : vector<8x96xf32> to vector<4x96xf32>
    %61 = arith.addf %60, %56 : vector<4x96xf32>
    %cst_33 = arith.constant dense<0.000000e+00> : vector<4xf32>
    %62 = vector.multi_reduction <add>, %61, %cst_33 [1] : vector<4x96xf32> to vector<4xf32>
    %63 = vector.shape_cast %62 : vector<4xf32> to vector<4x1xf32>
    %cst_34 = arith.constant 9.600000e+01 : f32
    %64 = vector.broadcast %cst_34 : f32 to vector<4x1xf32>
    %65 = arith.divf %63, %64 : vector<4x1xf32>
    %66 = vector.broadcast %65 : vector<4x1xf32> to vector<4x96xf32>
    %67 = arith.subf %61, %66 : vector<4x96xf32>
    %68 = arith.mulf %67, %67 : vector<4x96xf32>
    %cst_35 = arith.constant dense<0.000000e+00> : vector<4xf32>
    %69 = vector.multi_reduction <add>, %68, %cst_35 [1] : vector<4x96xf32> to vector<4xf32>
    %70 = vector.shape_cast %69 : vector<4xf32> to vector<4x1xf32>
    %cst_36 = arith.constant 9.600000e+01 : f32
    %71 = vector.broadcast %cst_36 : f32 to vector<4x1xf32>
    %72 = arith.divf %70, %71 : vector<4x1xf32>
    %73 = vector.broadcast %65 : vector<4x1xf32> to vector<4x96xf32>
    %74 = arith.subf %61, %73 : vector<4x96xf32>
    %cst_37 = arith.constant 9.99999974E-6 : f32
    %75 = vector.broadcast %cst_37 : f32 to vector<4x1xf32>
    %76 = arith.addf %72, %75 : vector<4x1xf32>
    %77 = math.rsqrt %76 : vector<4x1xf32>
    %78 = vector.broadcast %77 : vector<4x1xf32> to vector<4x96xf32>
    %79 = arith.mulf %74, %78 : vector<4x96xf32>
    %80 = vector.broadcast %31 : vector<1x96xf32> to vector<4x96xf32>
    %81 = arith.mulf %79, %80 : vector<4x96xf32>
    %82 = vector.broadcast %32 : vector<1x96xf32> to vector<4x96xf32>
    %83 = arith.addf %81, %82 : vector<4x96xf32>
    %c12 = arith.constant 12 : index
    %c0_38 = arith.constant 0 : index
    %84 = vector.load %arg31[%c12, %c0_38] : memref<32x96xf32, #tpu.memory_space<vmem>>, vector<4x96xf32>
    tpu.vector_store %arg31[%c12, %c0_38], %83 {strides = array<i32>} : memref<32x96xf32, #tpu.memory_space<vmem>>, vector<4x96xf32>,
    %85 = vector.extract_strided_slice %24 {offsets = [11, 0], sizes = [11, 96], strides = [1, 1]} : vector<22x96xf32> to vector<11x96xf32>
    %c16 = arith.constant 16 : index
    %c0_39 = arith.constant 0 : index
    %86 = vector.load %arg31[%c16, %c0_39] : memref<32x96xf32, #tpu.memory_space<vmem>>, vector<11x96xf32>
    tpu.vector_store %arg31[%c16, %c0_39], %85 {strides = array<i32>} : memref<32x96xf32, #tpu.memory_space<vmem>>, vector<11x96xf32>,
    %c27 = arith.constant 27 : index
    %c0_40 = arith.constant 0 : index
    %87 = vector.load %arg31[%c27, %c0_40] : memref<32x96xf32, #tpu.memory_space<vmem>>, vector<1x96xf32>
    tpu.vector_store %arg31[%c27, %c0_40], %55 {strides = array<i32>} : memref<32x96xf32, #tpu.memory_space<vmem>>, vector<1x96xf32>,
    %88 = vector.extract_strided_slice %30 {offsets = [4, 0], sizes = [4, 96], strides = [1, 1]} : vector<8x96xf32> to vector<4x96xf32>
    %89 = arith.addf %88, %56 : vector<4x96xf32>
    %cst_41 = arith.constant dense<0.000000e+00> : vector<4xf32>
    %90 = vector.multi_reduction <add>, %89, %cst_41 [1] : vector<4x96xf32> to vector<4xf32>
    %91 = vector.shape_cast %90 : vector<4xf32> to vector<4x1xf32>
    %cst_42 = arith.constant 9.600000e+01 : f32
    %92 = vector.broadcast %cst_42 : f32 to vector<4x1xf32>
    %93 = arith.divf %91, %92 : vector<4x1xf32>
    %94 = vector.broadcast %93 : vector<4x1xf32> to vector<4x96xf32>
    %95 = arith.subf %89, %94 : vector<4x96xf32>
    %96 = arith.mulf %95, %95 : vector<4x96xf32>
    %cst_43 = arith.constant dense<0.000000e+00> : vector<4xf32>
    %97 = vector.multi_reduction <add>, %96, %cst_43 [1] : vector<4x96xf32> to vector<4xf32>
    %98 = vector.shape_cast %97 : vector<4xf32> to vector<4x1xf32>
    %cst_44 = arith.constant 9.600000e+01 : f32
    %99 = vector.broadcast %cst_44 : f32 to vector<4x1xf32>
    %100 = arith.divf %98, %99 : vector<4x1xf32>
    %101 = vector.broadcast %93 : vector<4x1xf32> to vector<4x96xf32>
    %102 = arith.subf %89, %101 : vector<4x96xf32>
    %cst_45 = arith.constant 9.99999974E-6 : f32
    %103 = vector.broadcast %cst_45 : f32 to vector<4x1xf32>
    %104 = arith.addf %100, %103 : vector<4x1xf32>
    %105 = math.rsqrt %104 : vector<4x1xf32>
    %106 = vector.broadcast %105 : vector<4x1xf32> to vector<4x96xf32>
    %107 = arith.mulf %102, %106 : vector<4x96xf32>
    %108 = vector.broadcast %31 : vector<1x96xf32> to vector<4x96xf32>
    %109 = arith.mulf %107, %108 : vector<4x96xf32>
    %110 = vector.broadcast %32 : vector<1x96xf32> to vector<4x96xf32>
    %111 = arith.addf %109, %110 : vector<4x96xf32>
    %c28 = arith.constant 28 : index
    %c0_46 = arith.constant 0 : index
    %112 = vector.load %arg31[%c28, %c0_46] : memref<32x96xf32, #tpu.memory_space<vmem>>, vector<4x96xf32>
    tpu.vector_store %arg31[%c28, %c0_46], %111 {strides = array<i32>} : memref<32x96xf32, #tpu.memory_space<vmem>>, vector<4x96xf32>,
    %c0_47 = arith.constant 0 : index
    %c0_48 = arith.constant 0 : index
    %113 = vector.load %arg31[%c0_47, %c0_48] : memref<32x96xf32, #tpu.memory_space<vmem>>, vector<32x96xf32>
    %c0_49 = arith.constant 0 : index
    %c0_50 = arith.constant 0 : index
    %114 = vector.load %arg12[%c0_49, %c0_50] : memref<1x96xf32, #tpu.memory_space<vmem>>, vector<1x96xf32>
    %c0_51 = arith.constant 0 : index
    %c0_52 = arith.constant 0 : index
    %115 = vector.load %arg13[%c0_51, %c0_52] : memref<1x96xf32, #tpu.memory_space<vmem>>, vector<1x96xf32>
    %cst_53 = arith.constant dense<0.000000e+00> : vector<32xf32>
    %116 = vector.multi_reduction <add>, %113, %cst_53 [1] : vector<32x96xf32> to vector<32xf32>
    %117 = vector.shape_cast %116 : vector<32xf32> to vector<32x1xf32>
    %cst_54 = arith.constant 9.600000e+01 : f32
    %118 = vector.broadcast %cst_54 : f32 to vector<32x1xf32>
    %119 = arith.divf %117, %118 : vector<32x1xf32>
    %120 = vector.broadcast %119 : vector<32x1xf32> to vector<32x96xf32>
    %121 = arith.subf %113, %120 : vector<32x96xf32>
    %122 = arith.mulf %121, %121 : vector<32x96xf32>
    %cst_55 = arith.constant dense<0.000000e+00> : vector<32xf32>
    %123 = vector.multi_reduction <add>, %122, %cst_55 [1] : vector<32x96xf32> to vector<32xf32>
    %124 = vector.shape_cast %123 : vector<32xf32> to vector<32x1xf32>
    %cst_56 = arith.constant 9.600000e+01 : f32
    %125 = vector.broadcast %cst_56 : f32 to vector<32x1xf32>
    %126 = arith.divf %124, %125 : vector<32x1xf32>
    %127 = vector.broadcast %119 : vector<32x1xf32> to vector<32x96xf32>
    %128 = arith.subf %113, %127 : vector<32x96xf32>
    %cst_57 = arith.constant 9.99999974E-6 : f32
    %129 = vector.broadcast %cst_57 : f32 to vector<32x1xf32>
    %130 = arith.addf %126, %129 : vector<32x1xf32>
    %131 = math.rsqrt %130 : vector<32x1xf32>
    %132 = vector.broadcast %131 : vector<32x1xf32> to vector<32x96xf32>
    %133 = arith.mulf %128, %132 : vector<32x96xf32>
    %134 = vector.broadcast %114 : vector<1x96xf32> to vector<32x96xf32>
    %135 = arith.mulf %133, %134 : vector<32x96xf32>
    %136 = vector.broadcast %115 : vector<1x96xf32> to vector<32x96xf32>
    %137 = arith.addf %135, %136 : vector<32x96xf32>
    %c0_58 = arith.constant 0 : index
    %c0_59 = arith.constant 0 : index
    %138 = vector.load %arg3[%c0_58, %c0_59] : memref<32x32xf32, #tpu.memory_space<vmem>>, vector<32x32xf32>
    %c0_60 = arith.constant 0 : index
    %c0_61 = arith.constant 0 : index
    %c0_62 = arith.constant 0 : index
    %139 = vector.load %arg14[%c0_60, %c0_61, %c0_62] : memref<2x96x384xf32, #tpu.memory_space<vmem>>, vector<1x96x384xf32>
    %140 = vector.shape_cast %139 : vector<1x96x384xf32> to vector<96x384xf32>
    %cst_63 = arith.constant dense<0.000000e+00> : vector<32x384xf32>
    %141 = tpu.matmul %137, %140, %cst_63 {dimension_numbers = #tpu.dot_dimension_numbers<[1], [0], [0], [1], [0, 0, 1, 1], [], []>} : vector<32x96xf32>, vector<96x384xf32>, vector<32x384xf32> -> vector<32x384xf32>
    %c0_64 = arith.constant 0 : index
    %c0_65 = arith.constant 0 : index
    %c0_66 = arith.constant 0 : index
    %142 = vector.load %arg15[%c0_64, %c0_65, %c0_66] : memref<2x1x384xf32, #tpu.memory_space<vmem>>, vector<1x1x384xf32>
    %143 = vector.shape_cast %142 : vector<1x1x384xf32> to vector<1x384xf32>
    %144 = vector.broadcast %143 : vector<1x384xf32> to vector<32x384xf32>
    %145 = arith.addf %141, %144 : vector<32x384xf32>
    %146 = vector.extract_strided_slice %145 {offsets = [0, 0], sizes = [32, 64], strides = [1, 1]} : vector<32x384xf32> to vector<32x64xf32>
    %cst_67 = arith.constant 0.144337565 : f32
    %147 = vector.broadcast %cst_67 : f32 to vector<32x64xf32>
    %148 = arith.mulf %146, %147 : vector<32x64xf32>
    %149 = vector.extract_strided_slice %145 {offsets = [0, 128], sizes = [32, 64], strides = [1, 1]} : vector<32x384xf32> to vector<32x64xf32>
    %150 = vector.extract_strided_slice %145 {offsets = [0, 256], sizes = [32, 64], strides = [1, 1]} : vector<32x384xf32> to vector<32x64xf32>
    %cst_68 = arith.constant dense<0.000000e+00> : vector<32x32xf32>
    %151 = tpu.matmul %148, %149, %cst_68 {dimension_numbers = #tpu.dot_dimension_numbers<[1], [1], [0], [0], [0, 0, 1, 0], [], []>} : vector<32x64xf32>, vector<32x64xf32>, vector<32x32xf32> -> vector<32x32xf32>
    %152 = arith.addf %151, %138 : vector<32x32xf32>
    %cst_69 = arith.constant dense<0xFF800000> : vector<32xf32>
    %153 = vector.multi_reduction <maximumf>, %152, %cst_69 [1] : vector<32x32xf32> to vector<32xf32>
    %154 = vector.shape_cast %153 : vector<32xf32> to vector<32x1xf32>
    %155 = vector.broadcast %154 : vector<32x1xf32> to vector<32x32xf32>
    %156 = arith.subf %152, %155 : vector<32x32xf32>
    %157 = math.exp %156 : vector<32x32xf32>
    %cst_70 = arith.constant dense<0.000000e+00> : vector<32xf32>
    %158 = vector.multi_reduction <add>, %157, %cst_70 [1] : vector<32x32xf32> to vector<32xf32>
    %159 = vector.shape_cast %158 : vector<32xf32> to vector<32x1xf32>
    %160 = tpu.reciprocal %159 {approx = true} : vector<32x1xf32> -> vector<32x1xf32>
    %161 = vector.broadcast %160 : vector<32x1xf32> to vector<32x32xf32>
    %162 = arith.mulf %157, %161 : vector<32x32xf32>
    %cst_71 = arith.constant dense<0.000000e+00> : vector<32x64xf32>
    %163 = tpu.matmul %162, %150, %cst_71 {dimension_numbers = #tpu.dot_dimension_numbers<[1], [0], [0], [1], [0, 0, 1, 1], [], []>} : vector<32x32xf32>, vector<32x64xf32>, vector<32x64xf32> -> vector<32x64xf32>
    %164 = vector.extract_strided_slice %145 {offsets = [0, 64], sizes = [32, 64], strides = [1, 1]} : vector<32x384xf32> to vector<32x64xf32>
    %cst_72 = arith.constant 0.144337565 : f32
    %165 = vector.broadcast %cst_72 : f32 to vector<32x64xf32>
    %166 = arith.mulf %164, %165 : vector<32x64xf32>
    %167 = vector.extract_strided_slice %145 {offsets = [0, 192], sizes = [32, 64], strides = [1, 1]} : vector<32x384xf32> to vector<32x64xf32>
    %168 = vector.extract_strided_slice %145 {offsets = [0, 320], sizes = [32, 64], strides = [1, 1]} : vector<32x384xf32> to vector<32x64xf32>
    %cst_73 = arith.constant dense<0.000000e+00> : vector<32x32xf32>
    %169 = tpu.matmul %166, %167, %cst_73 {dimension_numbers = #tpu.dot_dimension_numbers<[1], [1], [0], [0], [0, 0, 1, 0], [], []>} : vector<32x64xf32>, vector<32x64xf32>, vector<32x32xf32> -> vector<32x32xf32>
    %170 = arith.addf %169, %138 : vector<32x32xf32>
    %cst_74 = arith.constant dense<0xFF800000> : vector<32xf32>
    %171 = vector.multi_reduction <maximumf>, %170, %cst_74 [1] : vector<32x32xf32> to vector<32xf32>
    %172 = vector.shape_cast %171 : vector<32xf32> to vector<32x1xf32>
    %173 = vector.broadcast %172 : vector<32x1xf32> to vector<32x32xf32>
    %174 = arith.subf %170, %173 : vector<32x32xf32>
    %175 = math.exp %174 : vector<32x32xf32>
    %cst_75 = arith.constant dense<0.000000e+00> : vector<32xf32>
    %176 = vector.multi_reduction <add>, %175, %cst_75 [1] : vector<32x32xf32> to vector<32xf32>
    %177 = vector.shape_cast %176 : vector<32xf32> to vector<32x1xf32>
    %178 = tpu.reciprocal %177 {approx = true} : vector<32x1xf32> -> vector<32x1xf32>
    %179 = vector.broadcast %178 : vector<32x1xf32> to vector<32x32xf32>
    %180 = arith.mulf %175, %179 : vector<32x32xf32>
    %cst_76 = arith.constant dense<0.000000e+00> : vector<32x64xf32>
    %181 = tpu.matmul %180, %168, %cst_76 {dimension_numbers = #tpu.dot_dimension_numbers<[1], [0], [0], [1], [0, 0, 1, 1], [], []>} : vector<32x32xf32>, vector<32x64xf32>, vector<32x64xf32> -> vector<32x64xf32>
    %182 = tpu.concatenate %163, %181 in 1 : vector<32x64xf32>, vector<32x64xf32> -> vector<32x128xf32>
    %c0_77 = arith.constant 0 : index
    %c0_78 = arith.constant 0 : index
    %c0_79 = arith.constant 0 : index
    %183 = vector.load %arg16[%c0_77, %c0_78, %c0_79] : memref<2x128x96xf32, #tpu.memory_space<vmem>>, vector<1x128x96xf32>
    %184 = vector.shape_cast %183 : vector<1x128x96xf32> to vector<128x96xf32>
    %cst_80 = arith.constant dense<0.000000e+00> : vector<32x96xf32>
    %185 = tpu.matmul %182, %184, %cst_80 {dimension_numbers = #tpu.dot_dimension_numbers<[1], [0], [0], [1], [0, 0, 1, 1], [], []>} : vector<32x128xf32>, vector<128x96xf32>, vector<32x96xf32> -> vector<32x96xf32>
    %c0_81 = arith.constant 0 : index
    %c0_82 = arith.constant 0 : index
    %c0_83 = arith.constant 0 : index
    %186 = vector.load %arg17[%c0_81, %c0_82, %c0_83] : memref<2x1x96xf32, #tpu.memory_space<vmem>>, vector<1x1x96xf32>
    %187 = vector.shape_cast %186 : vector<1x1x96xf32> to vector<1x96xf32>
    %188 = vector.broadcast %187 : vector<1x96xf32> to vector<32x96xf32>
    %189 = arith.addf %185, %188 : vector<32x96xf32>
    %190 = arith.addf %189, %137 : vector<32x96xf32>
    %c0_84 = arith.constant 0 : index
    %c0_85 = arith.constant 0 : index
    %c0_86 = arith.constant 0 : index
    %191 = vector.load %arg18[%c0_84, %c0_85, %c0_86] : memref<2x1x96xf32, #tpu.memory_space<vmem>>, vector<1x1x96xf32>
    %192 = vector.shape_cast %191 : vector<1x1x96xf32> to vector<1x96xf32>
    %c0_87 = arith.constant 0 : index
    %c0_88 = arith.constant 0 : index
    %c0_89 = arith.constant 0 : index
    %193 = vector.load %arg19[%c0_87, %c0_88, %c0_89] : memref<2x1x96xf32, #tpu.memory_space<vmem>>, vector<1x1x96xf32>
    %194 = vector.shape_cast %193 : vector<1x1x96xf32> to vector<1x96xf32>
    %cst_90 = arith.constant dense<0.000000e+00> : vector<32xf32>
    %195 = vector.multi_reduction <add>, %190, %cst_90 [1] : vector<32x96xf32> to vector<32xf32>
    %196 = vector.shape_cast %195 : vector<32xf32> to vector<32x1xf32>
    %cst_91 = arith.constant 9.600000e+01 : f32
    %197 = vector.broadcast %cst_91 : f32 to vector<32x1xf32>
    %198 = arith.divf %196, %197 : vector<32x1xf32>
    %199 = vector.broadcast %198 : vector<32x1xf32> to vector<32x96xf32>
    %200 = arith.subf %190, %199 : vector<32x96xf32>
    %201 = arith.mulf %200, %200 : vector<32x96xf32>
    %cst_92 = arith.constant dense<0.000000e+00> : vector<32xf32>
    %202 = vector.multi_reduction <add>, %201, %cst_92 [1] : vector<32x96xf32> to vector<32xf32>
    %203 = vector.shape_cast %202 : vector<32xf32> to vector<32x1xf32>
    %cst_93 = arith.constant 9.600000e+01 : f32
    %204 = vector.broadcast %cst_93 : f32 to vector<32x1xf32>
    %205 = arith.divf %203, %204 : vector<32x1xf32>
    %206 = vector.broadcast %198 : vector<32x1xf32> to vector<32x96xf32>
    %207 = arith.subf %190, %206 : vector<32x96xf32>
    %cst_94 = arith.constant 9.99999974E-6 : f32
    %208 = vector.broadcast %cst_94 : f32 to vector<32x1xf32>
    %209 = arith.addf %205, %208 : vector<32x1xf32>
    %210 = math.rsqrt %209 : vector<32x1xf32>
    %211 = vector.broadcast %210 : vector<32x1xf32> to vector<32x96xf32>
    %212 = arith.mulf %207, %211 : vector<32x96xf32>
    %213 = vector.broadcast %192 : vector<1x96xf32> to vector<32x96xf32>
    %214 = arith.mulf %212, %213 : vector<32x96xf32>
    %215 = vector.broadcast %194 : vector<1x96xf32> to vector<32x96xf32>
    %216 = arith.addf %214, %215 : vector<32x96xf32>
    %c0_95 = arith.constant 0 : index
    %c0_96 = arith.constant 0 : index
    %c0_97 = arith.constant 0 : index
    %217 = vector.load %arg20[%c0_95, %c0_96, %c0_97] : memref<2x96x192xf32, #tpu.memory_space<vmem>>, vector<1x96x192xf32>
    %218 = vector.shape_cast %217 : vector<1x96x192xf32> to vector<96x192xf32>
    %cst_98 = arith.constant dense<0.000000e+00> : vector<32x192xf32>
    %219 = tpu.matmul %216, %218, %cst_98 {dimension_numbers = #tpu.dot_dimension_numbers<[1], [0], [0], [1], [0, 0, 1, 1], [], []>} : vector<32x96xf32>, vector<96x192xf32>, vector<32x192xf32> -> vector<32x192xf32>
    %c0_99 = arith.constant 0 : index
    %c0_100 = arith.constant 0 : index
    %c0_101 = arith.constant 0 : index
    %220 = vector.load %arg21[%c0_99, %c0_100, %c0_101] : memref<2x1x192xf32, #tpu.memory_space<vmem>>, vector<1x1x192xf32>
    %221 = vector.shape_cast %220 : vector<1x1x192xf32> to vector<1x192xf32>
    %222 = vector.broadcast %221 : vector<1x192xf32> to vector<32x192xf32>
    %223 = arith.addf %219, %222 : vector<32x192xf32>
    %cst_102 = arith.constant 5.000000e-01 : f32
    %224 = vector.broadcast %cst_102 : f32 to vector<32x192xf32>
    %225 = arith.mulf %224, %223 : vector<32x192xf32>
    %cst_103 = arith.constant 0.707106769 : f32
    %226 = vector.broadcast %cst_103 : f32 to vector<32x192xf32>
    %227 = arith.mulf %223, %226 : vector<32x192xf32>
    %cst_104 = arith.constant 0.000000e+00 : f32
    %228 = vector.broadcast %cst_104 : f32 to vector<32x192xf32>
    %229 = arith.cmpf oge, %227, %228 : vector<32x192xf32>
    %cst_105 = arith.constant 1.000000e+00 : f32
    %cst_106 = arith.constant -1.000000e+00 : f32
    %230 = vector.broadcast %cst_105 : f32 to vector<32x192xf32>
    %231 = vector.broadcast %cst_106 : f32 to vector<32x192xf32>
    %232 = arith.select %229, %230, %231 : vector<32x192xi1>, vector<32x192xf32>
    %233 = math.absf %227 : vector<32x192xf32>
    %cst_107 = arith.constant 0.327591091 : f32
    %234 = vector.broadcast %cst_107 : f32 to vector<32x192xf32>
    %235 = arith.mulf %234, %233 : vector<32x192xf32>
    %cst_108 = arith.constant 1.000000e+00 : f32
    %236 = vector.broadcast %cst_108 : f32 to vector<32x192xf32>
    %237 = arith.addf %236, %235 : vector<32x192xf32>
    %cst_109 = arith.constant 1.000000e+00 : f32
    %238 = vector.broadcast %cst_109 : f32 to vector<32x192xf32>
    %239 = arith.divf %238, %237 : vector<32x192xf32>
    %cst_110 = arith.constant 1.06140542 : f32
    %240 = vector.broadcast %cst_110 : f32 to vector<32x192xf32>
    %241 = arith.mulf %240, %239 : vector<32x192xf32>
    %cst_111 = arith.constant -1.45315206 : f32
    %242 = vector.broadcast %cst_111 : f32 to vector<32x192xf32>
    %243 = arith.addf %241, %242 : vector<32x192xf32>
    %244 = arith.mulf %243, %239 : vector<32x192xf32>
    %cst_112 = arith.constant 1.42141378 : f32
    %245 = vector.broadcast %cst_112 : f32 to vector<32x192xf32>
    %246 = arith.addf %244, %245 : vector<32x192xf32>
    %247 = arith.mulf %246, %239 : vector<32x192xf32>
    %cst_113 = arith.constant -0.284496725 : f32
    %248 = vector.broadcast %cst_113 : f32 to vector<32x192xf32>
    %249 = arith.addf %247, %248 : vector<32x192xf32>
    %250 = arith.mulf %249, %239 : vector<32x192xf32>
    %cst_114 = arith.constant 0.254829586 : f32
    %251 = vector.broadcast %cst_114 : f32 to vector<32x192xf32>
    %252 = arith.addf %250, %251 : vector<32x192xf32>
    %253 = arith.mulf %252, %239 : vector<32x192xf32>
    %cst_115 = arith.constant 0.000000e+00 : f32
    %254 = vector.broadcast %cst_115 : f32 to vector<32x192xf32>
    %255 = arith.subf %254, %233 : vector<32x192xf32>
    %256 = arith.mulf %255, %233 : vector<32x192xf32>
    %257 = math.exp %256 : vector<32x192xf32>
    %258 = arith.mulf %253, %257 : vector<32x192xf32>
    %cst_116 = arith.constant 1.000000e+00 : f32
    %259 = vector.broadcast %cst_116 : f32 to vector<32x192xf32>
    %260 = arith.subf %259, %258 : vector<32x192xf32>
    %261 = arith.mulf %232, %260 : vector<32x192xf32>
    %cst_117 = arith.constant 1.000000e+00 : f32
    %262 = vector.broadcast %cst_117 : f32 to vector<32x192xf32>
    %263 = arith.addf %262, %261 : vector<32x192xf32>
    %264 = arith.mulf %225, %263 : vector<32x192xf32>
    %c0_118 = arith.constant 0 : index
    %c0_119 = arith.constant 0 : index
    %c0_120 = arith.constant 0 : index
    %265 = vector.load %arg22[%c0_118, %c0_119, %c0_120] : memref<2x192x96xf32, #tpu.memory_space<vmem>>, vector<1x192x96xf32>
    %266 = vector.shape_cast %265 : vector<1x192x96xf32> to vector<192x96xf32>
    %cst_121 = arith.constant dense<0.000000e+00> : vector<32x96xf32>
    %267 = tpu.matmul %264, %266, %cst_121 {dimension_numbers = #tpu.dot_dimension_numbers<[1], [0], [0], [1], [0, 0, 1, 1], [], []>} : vector<32x192xf32>, vector<192x96xf32>, vector<32x96xf32> -> vector<32x96xf32>
    %c0_122 = arith.constant 0 : index
    %c0_123 = arith.constant 0 : index
    %c0_124 = arith.constant 0 : index
    %268 = vector.load %arg23[%c0_122, %c0_123, %c0_124] : memref<2x1x96xf32, #tpu.memory_space<vmem>>, vector<1x1x96xf32>
    %269 = vector.shape_cast %268 : vector<1x1x96xf32> to vector<1x96xf32>
    %270 = vector.broadcast %269 : vector<1x96xf32> to vector<32x96xf32>
    %271 = arith.addf %267, %270 : vector<32x96xf32>
    %272 = arith.addf %271, %216 : vector<32x96xf32>
    %c0_125 = arith.constant 0 : index
    %c0_126 = arith.constant 0 : index
    %c0_127 = arith.constant 0 : index
    %273 = vector.load %arg24[%c0_125, %c0_126, %c0_127] : memref<2x1x96xf32, #tpu.memory_space<vmem>>, vector<1x1x96xf32>
    %274 = vector.shape_cast %273 : vector<1x1x96xf32> to vector<1x96xf32>
    %c0_128 = arith.constant 0 : index
    %c0_129 = arith.constant 0 : index
    %c0_130 = arith.constant 0 : index
    %275 = vector.load %arg25[%c0_128, %c0_129, %c0_130] : memref<2x1x96xf32, #tpu.memory_space<vmem>>, vector<1x1x96xf32>
    %276 = vector.shape_cast %275 : vector<1x1x96xf32> to vector<1x96xf32>
    %cst_131 = arith.constant dense<0.000000e+00> : vector<32xf32>
    %277 = vector.multi_reduction <add>, %272, %cst_131 [1] : vector<32x96xf32> to vector<32xf32>
    %278 = vector.shape_cast %277 : vector<32xf32> to vector<32x1xf32>
    %cst_132 = arith.constant 9.600000e+01 : f32
    %279 = vector.broadcast %cst_132 : f32 to vector<32x1xf32>
    %280 = arith.divf %278, %279 : vector<32x1xf32>
    %281 = vector.broadcast %280 : vector<32x1xf32> to vector<32x96xf32>
    %282 = arith.subf %272, %281 : vector<32x96xf32>
    %283 = arith.mulf %282, %282 : vector<32x96xf32>
    %cst_133 = arith.constant dense<0.000000e+00> : vector<32xf32>
    %284 = vector.multi_reduction <add>, %283, %cst_133 [1] : vector<32x96xf32> to vector<32xf32>
    %285 = vector.shape_cast %284 : vector<32xf32> to vector<32x1xf32>
    %cst_134 = arith.constant 9.600000e+01 : f32
    %286 = vector.broadcast %cst_134 : f32 to vector<32x1xf32>
    %287 = arith.divf %285, %286 : vector<32x1xf32>
    %288 = vector.broadcast %280 : vector<32x1xf32> to vector<32x96xf32>
    %289 = arith.subf %272, %288 : vector<32x96xf32>
    %cst_135 = arith.constant 9.99999974E-6 : f32
    %290 = vector.broadcast %cst_135 : f32 to vector<32x1xf32>
    %291 = arith.addf %287, %290 : vector<32x1xf32>
    %292 = math.rsqrt %291 : vector<32x1xf32>
    %293 = vector.broadcast %292 : vector<32x1xf32> to vector<32x96xf32>
    %294 = arith.mulf %289, %293 : vector<32x96xf32>
    %295 = vector.broadcast %274 : vector<1x96xf32> to vector<32x96xf32>
    %296 = arith.mulf %294, %295 : vector<32x96xf32>
    %297 = vector.broadcast %276 : vector<1x96xf32> to vector<32x96xf32>
    %298 = arith.addf %296, %297 : vector<32x96xf32>
    %c1_136 = arith.constant 1 : index
    %c0_137 = arith.constant 0 : index
    %c0_138 = arith.constant 0 : index
    %299 = vector.load %arg14[%c1_136, %c0_137, %c0_138] : memref<2x96x384xf32, #tpu.memory_space<vmem>>, vector<1x96x384xf32>
    %300 = vector.shape_cast %299 : vector<1x96x384xf32> to vector<96x384xf32>
    %cst_139 = arith.constant dense<0.000000e+00> : vector<32x384xf32>
    %301 = tpu.matmul %298, %300, %cst_139 {dimension_numbers = #tpu.dot_dimension_numbers<[1], [0], [0], [1], [0, 0, 1, 1], [], []>} : vector<32x96xf32>, vector<96x384xf32>, vector<32x384xf32> -> vector<32x384xf32>
    %c1_140 = arith.constant 1 : index
    %c0_141 = arith.constant 0 : index
    %c0_142 = arith.constant 0 : index
    %302 = vector.load %arg15[%c1_140, %c0_141, %c0_142] : memref<2x1x384xf32, #tpu.memory_space<vmem>>, vector<1x1x384xf32>
    %303 = vector.shape_cast %302 : vector<1x1x384xf32> to vector<1x384xf32>
    %304 = vector.broadcast %303 : vector<1x384xf32> to vector<32x384xf32>
    %305 = arith.addf %301, %304 : vector<32x384xf32>
    %306 = vector.extract_strided_slice %305 {offsets = [0, 0], sizes = [32, 64], strides = [1, 1]} : vector<32x384xf32> to vector<32x64xf32>
    %cst_143 = arith.constant 0.144337565 : f32
    %307 = vector.broadcast %cst_143 : f32 to vector<32x64xf32>
    %308 = arith.mulf %306, %307 : vector<32x64xf32>
    %309 = vector.extract_strided_slice %305 {offsets = [0, 128], sizes = [32, 64], strides = [1, 1]} : vector<32x384xf32> to vector<32x64xf32>
    %310 = vector.extract_strided_slice %305 {offsets = [0, 256], sizes = [32, 64], strides = [1, 1]} : vector<32x384xf32> to vector<32x64xf32>
    %cst_144 = arith.constant dense<0.000000e+00> : vector<32x32xf32>
    %311 = tpu.matmul %308, %309, %cst_144 {dimension_numbers = #tpu.dot_dimension_numbers<[1], [1], [0], [0], [0, 0, 1, 0], [], []>} : vector<32x64xf32>, vector<32x64xf32>, vector<32x32xf32> -> vector<32x32xf32>
    %312 = arith.addf %311, %138 : vector<32x32xf32>
    %cst_145 = arith.constant dense<0xFF800000> : vector<32xf32>
    %313 = vector.multi_reduction <maximumf>, %312, %cst_145 [1] : vector<32x32xf32> to vector<32xf32>
    %314 = vector.shape_cast %313 : vector<32xf32> to vector<32x1xf32>
    %315 = vector.broadcast %314 : vector<32x1xf32> to vector<32x32xf32>
    %316 = arith.subf %312, %315 : vector<32x32xf32>
    %317 = math.exp %316 : vector<32x32xf32>
    %cst_146 = arith.constant dense<0.000000e+00> : vector<32xf32>
    %318 = vector.multi_reduction <add>, %317, %cst_146 [1] : vector<32x32xf32> to vector<32xf32>
    %319 = vector.shape_cast %318 : vector<32xf32> to vector<32x1xf32>
    %320 = tpu.reciprocal %319 {approx = true} : vector<32x1xf32> -> vector<32x1xf32>
    %321 = vector.broadcast %320 : vector<32x1xf32> to vector<32x32xf32>
    %322 = arith.mulf %317, %321 : vector<32x32xf32>
    %cst_147 = arith.constant dense<0.000000e+00> : vector<32x64xf32>
    %323 = tpu.matmul %322, %310, %cst_147 {dimension_numbers = #tpu.dot_dimension_numbers<[1], [0], [0], [1], [0, 0, 1, 1], [], []>} : vector<32x32xf32>, vector<32x64xf32>, vector<32x64xf32> -> vector<32x64xf32>
    %324 = vector.extract_strided_slice %305 {offsets = [0, 64], sizes = [32, 64], strides = [1, 1]} : vector<32x384xf32> to vector<32x64xf32>
    %cst_148 = arith.constant 0.144337565 : f32
    %325 = vector.broadcast %cst_148 : f32 to vector<32x64xf32>
    %326 = arith.mulf %324, %325 : vector<32x64xf32>
    %327 = vector.extract_strided_slice %305 {offsets = [0, 192], sizes = [32, 64], strides = [1, 1]} : vector<32x384xf32> to vector<32x64xf32>
    %328 = vector.extract_strided_slice %305 {offsets = [0, 320], sizes = [32, 64], strides = [1, 1]} : vector<32x384xf32> to vector<32x64xf32>
    %cst_149 = arith.constant dense<0.000000e+00> : vector<32x32xf32>
    %329 = tpu.matmul %326, %327, %cst_149 {dimension_numbers = #tpu.dot_dimension_numbers<[1], [1], [0], [0], [0, 0, 1, 0], [], []>} : vector<32x64xf32>, vector<32x64xf32>, vector<32x32xf32> -> vector<32x32xf32>
    %330 = arith.addf %329, %138 : vector<32x32xf32>
    %cst_150 = arith.constant dense<0xFF800000> : vector<32xf32>
    %331 = vector.multi_reduction <maximumf>, %330, %cst_150 [1] : vector<32x32xf32> to vector<32xf32>
    %332 = vector.shape_cast %331 : vector<32xf32> to vector<32x1xf32>
    %333 = vector.broadcast %332 : vector<32x1xf32> to vector<32x32xf32>
    %334 = arith.subf %330, %333 : vector<32x32xf32>
    %335 = math.exp %334 : vector<32x32xf32>
    %cst_151 = arith.constant dense<0.000000e+00> : vector<32xf32>
    %336 = vector.multi_reduction <add>, %335, %cst_151 [1] : vector<32x32xf32> to vector<32xf32>
    %337 = vector.shape_cast %336 : vector<32xf32> to vector<32x1xf32>
    %338 = tpu.reciprocal %337 {approx = true} : vector<32x1xf32> -> vector<32x1xf32>
    %339 = vector.broadcast %338 : vector<32x1xf32> to vector<32x32xf32>
    %340 = arith.mulf %335, %339 : vector<32x32xf32>
    %cst_152 = arith.constant dense<0.000000e+00> : vector<32x64xf32>
    %341 = tpu.matmul %340, %328, %cst_152 {dimension_numbers = #tpu.dot_dimension_numbers<[1], [0], [0], [1], [0, 0, 1, 1], [], []>} : vector<32x32xf32>, vector<32x64xf32>, vector<32x64xf32> -> vector<32x64xf32>
    %342 = tpu.concatenate %323, %341 in 1 : vector<32x64xf32>, vector<32x64xf32> -> vector<32x128xf32>
    %c1_153 = arith.constant 1 : index
    %c0_154 = arith.constant 0 : index
    %c0_155 = arith.constant 0 : index
    %343 = vector.load %arg16[%c1_153, %c0_154, %c0_155] : memref<2x128x96xf32, #tpu.memory_space<vmem>>, vector<1x128x96xf32>
    %344 = vector.shape_cast %343 : vector<1x128x96xf32> to vector<128x96xf32>
    %cst_156 = arith.constant dense<0.000000e+00> : vector<32x96xf32>
    %345 = tpu.matmul %342, %344, %cst_156 {dimension_numbers = #tpu.dot_dimension_numbers<[1], [0], [0], [1], [0, 0, 1, 1], [], []>} : vector<32x128xf32>, vector<128x96xf32>, vector<32x96xf32> -> vector<32x96xf32>
    %c1_157 = arith.constant 1 : index
    %c0_158 = arith.constant 0 : index
    %c0_159 = arith.constant 0 : index
    %346 = vector.load %arg17[%c1_157, %c0_158, %c0_159] : memref<2x1x96xf32, #tpu.memory_space<vmem>>, vector<1x1x96xf32>
    %347 = vector.shape_cast %346 : vector<1x1x96xf32> to vector<1x96xf32>
    %348 = vector.broadcast %347 : vector<1x96xf32> to vector<32x96xf32>
    %349 = arith.addf %345, %348 : vector<32x96xf32>
    %350 = arith.addf %349, %298 : vector<32x96xf32>
    %c1_160 = arith.constant 1 : index
    %c0_161 = arith.constant 0 : index
    %c0_162 = arith.constant 0 : index
    %351 = vector.load %arg18[%c1_160, %c0_161, %c0_162] : memref<2x1x96xf32, #tpu.memory_space<vmem>>, vector<1x1x96xf32>
    %352 = vector.shape_cast %351 : vector<1x1x96xf32> to vector<1x96xf32>
    %c1_163 = arith.constant 1 : index
    %c0_164 = arith.constant 0 : index
    %c0_165 = arith.constant 0 : index
    %353 = vector.load %arg19[%c1_163, %c0_164, %c0_165] : memref<2x1x96xf32, #tpu.memory_space<vmem>>, vector<1x1x96xf32>
    %354 = vector.shape_cast %353 : vector<1x1x96xf32> to vector<1x96xf32>
    %cst_166 = arith.constant dense<0.000000e+00> : vector<32xf32>
    %355 = vector.multi_reduction <add>, %350, %cst_166 [1] : vector<32x96xf32> to vector<32xf32>
    %356 = vector.shape_cast %355 : vector<32xf32> to vector<32x1xf32>
    %cst_167 = arith.constant 9.600000e+01 : f32
    %357 = vector.broadcast %cst_167 : f32 to vector<32x1xf32>
    %358 = arith.divf %356, %357 : vector<32x1xf32>
    %359 = vector.broadcast %358 : vector<32x1xf32> to vector<32x96xf32>
    %360 = arith.subf %350, %359 : vector<32x96xf32>
    %361 = arith.mulf %360, %360 : vector<32x96xf32>
    %cst_168 = arith.constant dense<0.000000e+00> : vector<32xf32>
    %362 = vector.multi_reduction <add>, %361, %cst_168 [1] : vector<32x96xf32> to vector<32xf32>
    %363 = vector.shape_cast %362 : vector<32xf32> to vector<32x1xf32>
    %cst_169 = arith.constant 9.600000e+01 : f32
    %364 = vector.broadcast %cst_169 : f32 to vector<32x1xf32>
    %365 = arith.divf %363, %364 : vector<32x1xf32>
    %366 = vector.broadcast %358 : vector<32x1xf32> to vector<32x96xf32>
    %367 = arith.subf %350, %366 : vector<32x96xf32>
    %cst_170 = arith.constant 9.99999974E-6 : f32
    %368 = vector.broadcast %cst_170 : f32 to vector<32x1xf32>
    %369 = arith.addf %365, %368 : vector<32x1xf32>
    %370 = math.rsqrt %369 : vector<32x1xf32>
    %371 = vector.broadcast %370 : vector<32x1xf32> to vector<32x96xf32>
    %372 = arith.mulf %367, %371 : vector<32x96xf32>
    %373 = vector.broadcast %352 : vector<1x96xf32> to vector<32x96xf32>
    %374 = arith.mulf %372, %373 : vector<32x96xf32>
    %375 = vector.broadcast %354 : vector<1x96xf32> to vector<32x96xf32>
    %376 = arith.addf %374, %375 : vector<32x96xf32>
    %c1_171 = arith.constant 1 : index
    %c0_172 = arith.constant 0 : index
    %c0_173 = arith.constant 0 : index
    %377 = vector.load %arg20[%c1_171, %c0_172, %c0_173] : memref<2x96x192xf32, #tpu.memory_space<vmem>>, vector<1x96x192xf32>
    %378 = vector.shape_cast %377 : vector<1x96x192xf32> to vector<96x192xf32>
    %cst_174 = arith.constant dense<0.000000e+00> : vector<32x192xf32>
    %379 = tpu.matmul %376, %378, %cst_174 {dimension_numbers = #tpu.dot_dimension_numbers<[1], [0], [0], [1], [0, 0, 1, 1], [], []>} : vector<32x96xf32>, vector<96x192xf32>, vector<32x192xf32> -> vector<32x192xf32>
    %c1_175 = arith.constant 1 : index
    %c0_176 = arith.constant 0 : index
    %c0_177 = arith.constant 0 : index
    %380 = vector.load %arg21[%c1_175, %c0_176, %c0_177] : memref<2x1x192xf32, #tpu.memory_space<vmem>>, vector<1x1x192xf32>
    %381 = vector.shape_cast %380 : vector<1x1x192xf32> to vector<1x192xf32>
    %382 = vector.broadcast %381 : vector<1x192xf32> to vector<32x192xf32>
    %383 = arith.addf %379, %382 : vector<32x192xf32>
    %cst_178 = arith.constant 5.000000e-01 : f32
    %384 = vector.broadcast %cst_178 : f32 to vector<32x192xf32>
    %385 = arith.mulf %384, %383 : vector<32x192xf32>
    %cst_179 = arith.constant 0.707106769 : f32
    %386 = vector.broadcast %cst_179 : f32 to vector<32x192xf32>
    %387 = arith.mulf %383, %386 : vector<32x192xf32>
    %cst_180 = arith.constant 0.000000e+00 : f32
    %388 = vector.broadcast %cst_180 : f32 to vector<32x192xf32>
    %389 = arith.cmpf oge, %387, %388 : vector<32x192xf32>
    %cst_181 = arith.constant 1.000000e+00 : f32
    %cst_182 = arith.constant -1.000000e+00 : f32
    %390 = vector.broadcast %cst_181 : f32 to vector<32x192xf32>
    %391 = vector.broadcast %cst_182 : f32 to vector<32x192xf32>
    %392 = arith.select %389, %390, %391 : vector<32x192xi1>, vector<32x192xf32>
    %393 = math.absf %387 : vector<32x192xf32>
    %cst_183 = arith.constant 0.327591091 : f32
    %394 = vector.broadcast %cst_183 : f32 to vector<32x192xf32>
    %395 = arith.mulf %394, %393 : vector<32x192xf32>
    %cst_184 = arith.constant 1.000000e+00 : f32
    %396 = vector.broadcast %cst_184 : f32 to vector<32x192xf32>
    %397 = arith.addf %396, %395 : vector<32x192xf32>
    %cst_185 = arith.constant 1.000000e+00 : f32
    %398 = vector.broadcast %cst_185 : f32 to vector<32x192xf32>
    %399 = arith.divf %398, %397 : vector<32x192xf32>
    %cst_186 = arith.constant 1.06140542 : f32
    %400 = vector.broadcast %cst_186 : f32 to vector<32x192xf32>
    %401 = arith.mulf %400, %399 : vector<32x192xf32>
    %cst_187 = arith.constant -1.45315206 : f32
    %402 = vector.broadcast %cst_187 : f32 to vector<32x192xf32>
    %403 = arith.addf %401, %402 : vector<32x192xf32>
    %404 = arith.mulf %403, %399 : vector<32x192xf32>
    %cst_188 = arith.constant 1.42141378 : f32
    %405 = vector.broadcast %cst_188 : f32 to vector<32x192xf32>
    %406 = arith.addf %404, %405 : vector<32x192xf32>
    %407 = arith.mulf %406, %399 : vector<32x192xf32>
    %cst_189 = arith.constant -0.284496725 : f32
    %408 = vector.broadcast %cst_189 : f32 to vector<32x192xf32>
    %409 = arith.addf %407, %408 : vector<32x192xf32>
    %410 = arith.mulf %409, %399 : vector<32x192xf32>
    %cst_190 = arith.constant 0.254829586 : f32
    %411 = vector.broadcast %cst_190 : f32 to vector<32x192xf32>
    %412 = arith.addf %410, %411 : vector<32x192xf32>
    %413 = arith.mulf %412, %399 : vector<32x192xf32>
    %cst_191 = arith.constant 0.000000e+00 : f32
    %414 = vector.broadcast %cst_191 : f32 to vector<32x192xf32>
    %415 = arith.subf %414, %393 : vector<32x192xf32>
    %416 = arith.mulf %415, %393 : vector<32x192xf32>
    %417 = math.exp %416 : vector<32x192xf32>
    %418 = arith.mulf %413, %417 : vector<32x192xf32>
    %cst_192 = arith.constant 1.000000e+00 : f32
    %419 = vector.broadcast %cst_192 : f32 to vector<32x192xf32>
    %420 = arith.subf %419, %418 : vector<32x192xf32>
    %421 = arith.mulf %392, %420 : vector<32x192xf32>
    %cst_193 = arith.constant 1.000000e+00 : f32
    %422 = vector.broadcast %cst_193 : f32 to vector<32x192xf32>
    %423 = arith.addf %422, %421 : vector<32x192xf32>
    %424 = arith.mulf %385, %423 : vector<32x192xf32>
    %c1_194 = arith.constant 1 : index
    %c0_195 = arith.constant 0 : index
    %c0_196 = arith.constant 0 : index
    %425 = vector.load %arg22[%c1_194, %c0_195, %c0_196] : memref<2x192x96xf32, #tpu.memory_space<vmem>>, vector<1x192x96xf32>
    %426 = vector.shape_cast %425 : vector<1x192x96xf32> to vector<192x96xf32>
    %cst_197 = arith.constant dense<0.000000e+00> : vector<32x96xf32>
    %427 = tpu.matmul %424, %426, %cst_197 {dimension_numbers = #tpu.dot_dimension_numbers<[1], [0], [0], [1], [0, 0, 1, 1], [], []>} : vector<32x192xf32>, vector<192x96xf32>, vector<32x96xf32> -> vector<32x96xf32>
    %c1_198 = arith.constant 1 : index
    %c0_199 = arith.constant 0 : index
    %c0_200 = arith.constant 0 : index
    %428 = vector.load %arg23[%c1_198, %c0_199, %c0_200] : memref<2x1x96xf32, #tpu.memory_space<vmem>>, vector<1x1x96xf32>
    %429 = vector.shape_cast %428 : vector<1x1x96xf32> to vector<1x96xf32>
    %430 = vector.broadcast %429 : vector<1x96xf32> to vector<32x96xf32>
    %431 = arith.addf %427, %430 : vector<32x96xf32>
    %432 = arith.addf %431, %376 : vector<32x96xf32>
    %c1_201 = arith.constant 1 : index
    %c0_202 = arith.constant 0 : index
    %c0_203 = arith.constant 0 : index
    %433 = vector.load %arg24[%c1_201, %c0_202, %c0_203] : memref<2x1x96xf32, #tpu.memory_space<vmem>>, vector<1x1x96xf32>
    %434 = vector.shape_cast %433 : vector<1x1x96xf32> to vector<1x96xf32>
    %c1_204 = arith.constant 1 : index
    %c0_205 = arith.constant 0 : index
    %c0_206 = arith.constant 0 : index
    %435 = vector.load %arg25[%c1_204, %c0_205, %c0_206] : memref<2x1x96xf32, #tpu.memory_space<vmem>>, vector<1x1x96xf32>
    %436 = vector.shape_cast %435 : vector<1x1x96xf32> to vector<1x96xf32>
    %cst_207 = arith.constant dense<0.000000e+00> : vector<32xf32>
    %437 = vector.multi_reduction <add>, %432, %cst_207 [1] : vector<32x96xf32> to vector<32xf32>
    %438 = vector.shape_cast %437 : vector<32xf32> to vector<32x1xf32>
    %cst_208 = arith.constant 9.600000e+01 : f32
    %439 = vector.broadcast %cst_208 : f32 to vector<32x1xf32>
    %440 = arith.divf %438, %439 : vector<32x1xf32>
    %441 = vector.broadcast %440 : vector<32x1xf32> to vector<32x96xf32>
    %442 = arith.subf %432, %441 : vector<32x96xf32>
    %443 = arith.mulf %442, %442 : vector<32x96xf32>
    %cst_209 = arith.constant dense<0.000000e+00> : vector<32xf32>
    %444 = vector.multi_reduction <add>, %443, %cst_209 [1] : vector<32x96xf32> to vector<32xf32>
    %445 = vector.shape_cast %444 : vector<32xf32> to vector<32x1xf32>
    %cst_210 = arith.constant 9.600000e+01 : f32
    %446 = vector.broadcast %cst_210 : f32 to vector<32x1xf32>
    %447 = arith.divf %445, %446 : vector<32x1xf32>
    %448 = vector.broadcast %440 : vector<32x1xf32> to vector<32x96xf32>
    %449 = arith.subf %432, %448 : vector<32x96xf32>
    %cst_211 = arith.constant 9.99999974E-6 : f32
    %450 = vector.broadcast %cst_211 : f32 to vector<32x1xf32>
    %451 = arith.addf %447, %450 : vector<32x1xf32>
    %452 = math.rsqrt %451 : vector<32x1xf32>
    %453 = vector.broadcast %452 : vector<32x1xf32> to vector<32x96xf32>
    %454 = arith.mulf %449, %453 : vector<32x96xf32>
    %455 = vector.broadcast %434 : vector<1x96xf32> to vector<32x96xf32>
    %456 = arith.mulf %454, %455 : vector<32x96xf32>
    %457 = vector.broadcast %436 : vector<1x96xf32> to vector<32x96xf32>
    %458 = arith.addf %456, %457 : vector<32x96xf32>
    %459 = vector.extract_strided_slice %458 {offsets = [0, 0], sizes = [1, 96], strides = [1, 1]} : vector<32x96xf32> to vector<1x96xf32>
    %460 = vector.extract_strided_slice %458 {offsets = [16, 0], sizes = [1, 96], strides = [1, 1]} : vector<32x96xf32> to vector<1x96xf32>
    %461 = tpu.concatenate %459, %460 in 0 : vector<1x96xf32>, vector<1x96xf32> -> vector<2x96xf32>
    %c0_212 = arith.constant 0 : index
    %c0_213 = arith.constant 0 : index
    %462 = vector.load %arg26[%c0_212, %c0_213] : memref<96x96xf32, #tpu.memory_space<vmem>>, vector<96x96xf32>
    %cst_214 = arith.constant dense<0.000000e+00> : vector<2x96xf32>
    %463 = tpu.matmul %461, %462, %cst_214 {dimension_numbers = #tpu.dot_dimension_numbers<[1], [0], [0], [1], [0, 0, 1, 1], [], []>} : vector<2x96xf32>, vector<96x96xf32>, vector<2x96xf32> -> vector<2x96xf32>
    %c0_215 = arith.constant 0 : index
    %c0_216 = arith.constant 0 : index
    %464 = vector.load %arg27[%c0_215, %c0_216] : memref<1x96xf32, #tpu.memory_space<vmem>>, vector<1x96xf32>
    %465 = vector.broadcast %464 : vector<1x96xf32> to vector<2x96xf32>
    %466 = arith.addf %463, %465 : vector<2x96xf32>
    %467 = math.tanh %466 : vector<2x96xf32>
    %c0_217 = arith.constant 0 : index
    %c0_218 = arith.constant 0 : index
    %468 = vector.load %arg28[%c0_217, %c0_218] : memref<96x3xf32, #tpu.memory_space<vmem>>, vector<96x3xf32>
    %cst_219 = arith.constant dense<0.000000e+00> : vector<2x3xf32>
    %469 = tpu.matmul %467, %468, %cst_219 {dimension_numbers = #tpu.dot_dimension_numbers<[1], [0], [0], [1], [0, 0, 1, 1], [], []>} : vector<2x96xf32>, vector<96x3xf32>, vector<2x3xf32> -> vector<2x3xf32>
    %c0_220 = arith.constant 0 : index
    %c0_221 = arith.constant 0 : index
    %470 = vector.load %arg29[%c0_220, %c0_221] : memref<1x3xf32, #tpu.memory_space<vmem>>, vector<1x3xf32>
    %471 = vector.broadcast %470 : vector<1x3xf32> to vector<2x3xf32>
    %472 = arith.addf %469, %471 : vector<2x3xf32>
    %c0_222 = arith.constant 0 : index
    %c0_223 = arith.constant 0 : index
    %473 = vector.load %arg30[%c0_222, %c0_223] : memref<2x3xf32, #tpu.memory_space<vmem>>, vector<2x3xf32>
    tpu.vector_store %arg30[%c0_222, %c0_223], %472 {strides = array<i32>} : memref<2x3xf32, #tpu.memory_space<vmem>>, vector<2x3xf32>,
    return
  }
  func.func @transform_0(%arg0: i32) -> (i32, i32) {
    %c0_i32 = arith.constant 0 : i32
    %c0_i32_0 = arith.constant 0 : i32
    %c0_i32_1 = arith.constant 0 : i32
    return %c0_i32, %c0_i32_0 : i32, i32
  }
  func.func @transform_1(%arg0: i32) -> (i32, i32) {
    %c0_i32 = arith.constant 0 : i32
    %c0_i32_0 = arith.constant 0 : i32
    %c0_i32_1 = arith.constant 0 : i32
    return %c0_i32, %c0_i32_0 : i32, i32
  }
  func.func @transform_2(%arg0: i32) -> (i32, i32) {
    %c0_i32 = arith.constant 0 : i32
    %c0_i32_0 = arith.constant 0 : i32
    %c0_i32_1 = arith.constant 0 : i32
    return %c0_i32, %c0_i32_0 : i32, i32
  }
  func.func @transform_3(%arg0: i32) -> (i32, i32) {
    %c0_i32 = arith.constant 0 : i32
    %c0_i32_0 = arith.constant 0 : i32
    %c0_i32_1 = arith.constant 0 : i32
    return %c0_i32, %c0_i32_0 : i32, i32
  }
  func.func @transform_4(%arg0: i32) -> (i32, i32) {
    %c0_i32 = arith.constant 0 : i32
    %c0_i32_0 = arith.constant 0 : i32
    %c0_i32_1 = arith.constant 0 : i32
    return %c0_i32, %c0_i32_0 : i32, i32
  }
  func.func @transform_5(%arg0: i32) -> (i32, i32) {
    %c0_i32 = arith.constant 0 : i32
    %c0_i32_0 = arith.constant 0 : i32
    %c0_i32_1 = arith.constant 0 : i32
    return %c0_i32, %c0_i32_0 : i32, i32
  }
  func.func @transform_6(%arg0: i32) -> (i32, i32) {
    %c0_i32 = arith.constant 0 : i32
    %c0_i32_0 = arith.constant 0 : i32
    %c0_i32_1 = arith.constant 0 : i32
    return %c0_i32, %c0_i32_0 : i32, i32
  }
  func.func @transform_7(%arg0: i32) -> (i32, i32) {
    %c0_i32 = arith.constant 0 : i32
    %c0_i32_0 = arith.constant 0 : i32
    %c0_i32_1 = arith.constant 0 : i32
    return %c0_i32, %c0_i32_0 : i32, i32
  }
  func.func @transform_8(%arg0: i32) -> (i32, i32) {
    %c0_i32 = arith.constant 0 : i32
    %c0_i32_0 = arith.constant 0 : i32
    %c0_i32_1 = arith.constant 0 : i32
    return %c0_i32, %c0_i32_0 : i32, i32
  }
  func.func @transform_9(%arg0: i32) -> (i32, i32) {
    %c0_i32 = arith.constant 0 : i32
    %c0_i32_0 = arith.constant 0 : i32
    %c0_i32_1 = arith.constant 0 : i32
    return %c0_i32, %c0_i32_0 : i32, i32
  }
  func.func @transform_10(%arg0: i32) -> (i32, i32) {
    %c0_i32 = arith.constant 0 : i32
    %c0_i32_0 = arith.constant 0 : i32
    %c0_i32_1 = arith.constant 0 : i32
    return %c0_i32, %c0_i32_0 : i32, i32
  }
  func.func @transform_11(%arg0: i32) -> (i32, i32) {
    %c0_i32 = arith.constant 0 : i32
    %c0_i32_0 = arith.constant 0 : i32
    %c0_i32_1 = arith.constant 0 : i32
    return %c0_i32, %c0_i32_0 : i32, i32
  }
  func.func @transform_12(%arg0: i32) -> (i32, i32) {
    %c0_i32 = arith.constant 0 : i32
    %c0_i32_0 = arith.constant 0 : i32
    %c0_i32_1 = arith.constant 0 : i32
    return %c0_i32, %c0_i32_0 : i32, i32
  }
  func.func @transform_13(%arg0: i32) -> (i32, i32, i32) {
    %c0_i32 = arith.constant 0 : i32
    %c0_i32_0 = arith.constant 0 : i32
    %c0_i32_1 = arith.constant 0 : i32
    %c0_i32_2 = arith.constant 0 : i32
    return %c0_i32, %c0_i32_0, %c0_i32_1 : i32, i32, i32
  }
  func.func @transform_14(%arg0: i32) -> (i32, i32, i32) {
    %c0_i32 = arith.constant 0 : i32
    %c0_i32_0 = arith.constant 0 : i32
    %c0_i32_1 = arith.constant 0 : i32
    %c0_i32_2 = arith.constant 0 : i32
    return %c0_i32, %c0_i32_0, %c0_i32_1 : i32, i32, i32
  }
  func.func @transform_15(%arg0: i32) -> (i32, i32, i32) {
    %c0_i32 = arith.constant 0 : i32
    %c0_i32_0 = arith.constant 0 : i32
    %c0_i32_1 = arith.constant 0 : i32
    %c0_i32_2 = arith.constant 0 : i32
    return %c0_i32, %c0_i32_0, %c0_i32_1 : i32, i32, i32
  }
  func.func @transform_16(%arg0: i32) -> (i32, i32, i32) {
    %c0_i32 = arith.constant 0 : i32
    %c0_i32_0 = arith.constant 0 : i32
    %c0_i32_1 = arith.constant 0 : i32
    %c0_i32_2 = arith.constant 0 : i32
    return %c0_i32, %c0_i32_0, %c0_i32_1 : i32, i32, i32
  }
  func.func @transform_17(%arg0: i32) -> (i32, i32, i32) {
    %c0_i32 = arith.constant 0 : i32
    %c0_i32_0 = arith.constant 0 : i32
    %c0_i32_1 = arith.constant 0 : i32
    %c0_i32_2 = arith.constant 0 : i32
    return %c0_i32, %c0_i32_0, %c0_i32_1 : i32, i32, i32
  }
  func.func @transform_18(%arg0: i32) -> (i32, i32, i32) {
    %c0_i32 = arith.constant 0 : i32
    %c0_i32_0 = arith.constant 0 : i32
    %c0_i32_1 = arith.constant 0 : i32
    %c0_i32_2 = arith.constant 0 : i32
    return %c0_i32, %c0_i32_0, %c0_i32_1 : i32, i32, i32
  }
  func.func @transform_19(%arg0: i32) -> (i32, i32, i32) {
    %c0_i32 = arith.constant 0 : i32
    %c0_i32_0 = arith.constant 0 : i32
    %c0_i32_1 = arith.constant 0 : i32
    %c0_i32_2 = arith.constant 0 : i32
    return %c0_i32, %c0_i32_0, %c0_i32_1 : i32, i32, i32
  }
  func.func @transform_20(%arg0: i32) -> (i32, i32, i32) {
    %c0_i32 = arith.constant 0 : i32
    %c0_i32_0 = arith.constant 0 : i32
    %c0_i32_1 = arith.constant 0 : i32
    %c0_i32_2 = arith.constant 0 : i32
    return %c0_i32, %c0_i32_0, %c0_i32_1 : i32, i32, i32
  }
  func.func @transform_21(%arg0: i32) -> (i32, i32, i32) {
    %c0_i32 = arith.constant 0 : i32
    %c0_i32_0 = arith.constant 0 : i32
    %c0_i32_1 = arith.constant 0 : i32
    %c0_i32_2 = arith.constant 0 : i32
    return %c0_i32, %c0_i32_0, %c0_i32_1 : i32, i32, i32
  }
  func.func @transform_22(%arg0: i32) -> (i32, i32, i32) {
    %c0_i32 = arith.constant 0 : i32
    %c0_i32_0 = arith.constant 0 : i32
    %c0_i32_1 = arith.constant 0 : i32
    %c0_i32_2 = arith.constant 0 : i32
    return %c0_i32, %c0_i32_0, %c0_i32_1 : i32, i32, i32
  }
  func.func @transform_23(%arg0: i32) -> (i32, i32, i32) {
    %c0_i32 = arith.constant 0 : i32
    %c0_i32_0 = arith.constant 0 : i32
    %c0_i32_1 = arith.constant 0 : i32
    %c0_i32_2 = arith.constant 0 : i32
    return %c0_i32, %c0_i32_0, %c0_i32_1 : i32, i32, i32
  }
  func.func @transform_24(%arg0: i32) -> (i32, i32, i32) {
    %c0_i32 = arith.constant 0 : i32
    %c0_i32_0 = arith.constant 0 : i32
    %c0_i32_1 = arith.constant 0 : i32
    %c0_i32_2 = arith.constant 0 : i32
    return %c0_i32, %c0_i32_0, %c0_i32_1 : i32, i32, i32
  }
  func.func @transform_25(%arg0: i32) -> (i32, i32) {
    %c0_i32 = arith.constant 0 : i32
    %c0_i32_0 = arith.constant 0 : i32
    %c0_i32_1 = arith.constant 0 : i32
    return %c0_i32, %c0_i32_0 : i32, i32
  }
  func.func @transform_26(%arg0: i32) -> (i32, i32) {
    %c0_i32 = arith.constant 0 : i32
    %c0_i32_0 = arith.constant 0 : i32
    %c0_i32_1 = arith.constant 0 : i32
    return %c0_i32, %c0_i32_0 : i32, i32
  }
  func.func @transform_27(%arg0: i32) -> (i32, i32) {
    %c0_i32 = arith.constant 0 : i32
    %c0_i32_0 = arith.constant 0 : i32
    %c0_i32_1 = arith.constant 0 : i32
    return %c0_i32, %c0_i32_0 : i32, i32
  }
  func.func @transform_28(%arg0: i32) -> (i32, i32) {
    %c0_i32 = arith.constant 0 : i32
    %c0_i32_0 = arith.constant 0 : i32
    %c0_i32_1 = arith.constant 0 : i32
    return %c0_i32, %c0_i32_0 : i32, i32
  }
  func.func @transform_29(%arg0: i32) -> (i32, i32) {
    %c0_i32 = arith.constant 0 : i32
    %c0_i32_0 = arith.constant 0 : i32
    %c0_i32_1 = arith.constant 0 : i32
    return %c0_i32, %c0_i32_0 : i32, i32
  }
}

</mosaic_0001>

<bundles_post_ra>
// kernel: mul.10
= control target key start
LH: loop header
LB: loop body
LE: loop exit
PB: predicated region body
PF: predicated region fallthrough
CT: control target
= control target key end

     0   :  { %vm8_vm0 = vcmask 130048   ;;  %vm14_vm1 = vcmask 261248   ;;  %s42_s0 = inlined_call_operand.vmem [shape: f32[2,16], index: 0, kind: input, shape index: {}]   ;;  %s43_s1 = inlined_call_operand.vmem [shape: f32[32], index: 1, kind: output, shape index: {}]  }
   0x1   :  { %v5_v0 = vld [vmem:[%s42_s0] sm:$0x3]  ;;  %s25_s0 = smov 16  }
   0x2   :  { %6 = vst [vmem:[#allocation1] sm:$0x3] %v5_v0 }
   0x9   :  { %v11_v1 = vld [vmem:[#allocation1 + $0x1] sm:$0x1]   ;;  %v7_v2 = vld [vmem:[#allocation1] sm:$0x1]  }
   0xa   :  { %12 = vrot.lane.b32.xlu0 %v11_v1, %s25_s0  ;;  %9 = vst.msk [vmem:[#allocation0] sm:$0x1] %vm8_vm0, %v7_v2  }
  0x7c   :  { %v13_v3 = vpop.permute.xlu0 %12  }
  0x7d   :  { %15 = vst.msk [vmem:[#allocation0] sm:$0x1] %vm14_vm1, %v13_v3  }
  0x84   :  { %v20_v4 = vld [vmem:[#allocation0] sm:$0x1] }
  0x85   :  { %23 = vst [vmem:[%s43_s1] sm:$0x1] %v20_v4 }

// kernel: eq.8
= control target key start
LH: loop header
LB: loop body
LE: loop exit
PB: predicated region body
PF: predicated region fallthrough
CT: control target
= control target key end

     0   :  { %vm8_vm0 = vcmask 130048   ;;  %vm14_vm1 = vcmask 261248   ;;  %s42_s0 = inlined_call_operand.vmem [shape: s32[2,16], index: 0, kind: input, shape index: {}]   ;;  %s43_s1 = inlined_call_operand.vmem [shape: s32[32], index: 1, kind: output, shape index: {}]  }
   0x1   :  { %v5_v0 = vld [vmem:[%s42_s0] sm:$0x3]  ;;  %s25_s0 = smov 16  }
   0x2   :  { %6 = vst [vmem:[#allocation1] sm:$0x3] %v5_v0 }
   0x9   :  { %v11_v1 = vld [vmem:[#allocation1 + $0x1] sm:$0x1]   ;;  %v7_v2 = vld [vmem:[#allocation1] sm:$0x1]  }
   0xa   :  { %12 = vrot.lane.b32.xlu0 %v11_v1, %s25_s0  ;;  %9 = vst.msk [vmem:[#allocation0] sm:$0x1] %vm8_vm0, %v7_v2  }
  0x7c   :  { %v13_v3 = vpop.permute.xlu0 %12  }
  0x7d   :  { %15 = vst.msk [vmem:[#allocation0] sm:$0x1] %vm14_vm1, %v13_v3  }
  0x84   :  { %v20_v4 = vld [vmem:[#allocation0] sm:$0x1] }
  0x85   :  { %23 = vst [vmem:[%s43_s1] sm:$0x1] %v20_v4 }

// kernel: forward.1
= control target key start
LH: loop header
LB: loop body
LE: loop exit
PB: predicated region body
PF: predicated region fallthrough
CT: control target
= control target key end

     0   :  { %s4951_s3 = smov 3   ;;  %vm127_vm0 = vcmask 785408   ;;  %s4952_s10 = smov 1   ;;  %vm511_vm1 = vcmask 778240   ;;  %vm134_vm2 = vcmask 783360   ;;  %vm533_vm3 = vcmask 781312   ;;  %s6431_s0 = inlined_call_operand.smem [shape: u32[30], index: -1, kind: input, shape index: {}] }
   0x1   :  { %s4992_s6 = sld [smem:[%s6431_s0 + %s4951_s3]]   ;;  %s4953_s14 = smov 5   ;;  %vm570_vm4 = vcmask 785412   ;;  %vm529_vm5 = vcmask 780288   ;;  %vm562_vm6 = vcmask 785411   ;;  %vm912_vm7 = vcmask 523264  }
   0x2   :  { %s4997_s9 = sld [smem:[%s6431_s0]]   ;;  %s4954_s18 = smov 6   ;;  %vm1022_vm8 = vcmask 261120  }
   0x3   :  { %s5053_s13 = sld [smem:[%s6431_s0 + %s4952_s10]]   ;;  %s4955_s22 = smov 4  }
   0x4   :  { %s5066_s17 = sld [smem:[%s6431_s0 + %s4953_s14]]   ;;  %s4956_s26 = smov 7  }
   0x5   :  { %s5073_s21 = sld [smem:[%s6431_s0 + %s4954_s18]]   ;;  %s4957_s30 = smov 8  }
   0x6   :  { %s3912_s25 = sld [smem:[%s6431_s0 + %s4955_s22]]   ;;  %s4958_s4 = smov 9  }
   0x7   :  { %v224_v0 = vld [vmem:[%s4992_s6 + $0xf8] sm:$0xff]  ;;  %v223_v2 = vld [vmem:[%s4992_s6 + $0xf0] sm:$0xff]  ;;  %v222_v8 = vld [vmem:[%s4992_s6 + $0xe8] sm:$0xff]  ;;  %s3915_s29 = sld [smem:[%s6431_s0 + %s4956_s26]]   ;;  %s4959_s8 = smov 10  }
   0x8   :  { %v208_v1 = vld [vmem:[%s4992_s6 + $0x78] sm:$0xff]  ;;  %4147 = vmatprep.subr.mxu0 %v224_v0  ;;  %v5003_v3 = vld [vmem:[%s4997_s9] sm:$0xff]  ;;  %v207_v5 = vld [vmem:[%s4992_s6 + $0x70] sm:$0xff]  ;;  %s3916_s3 = sld [smem:[%s6431_s0 + %s4957_s30]]   ;;  %s4960_s12 = smov 13  }
   0x9   :  { %v256_v4 = vld [vmem:[%s4992_s6 + $0x1f8] sm:$0xff]  ;;  %4148 = vmatpush3.msra.mxu0 %v208_v1  ;;  %v128_v6 = vsel %vm127_vm0, %v5003_v3, 0.0  ;;  %v255_v9 = vld [vmem:[%s4992_s6 + $0x1f0] sm:$0xff]  ;;  %v206_v10 = vld [vmem:[%s4992_s6 + $0x68] sm:$0xff]  ;;  %s3917_s7 = sld [smem:[%s6431_s0 + %s4958_s4]]   ;;  %s4962_s16 = smov 11  }
   0xa   :  { %4182 = vmatprep.subr.mxu1 %v256_v4  ;;  %v240_v7 = vld [vmem:[%s4992_s6 + $0x178] sm:$0xff]  ;;  %129 = vadd.xlane.f32.xlu0 %v128_v6  ;;  %v239_v11 = vld [vmem:[%s4992_s6 + $0x170] sm:$0xff]  ;;  %v221_v12 = vld [vmem:[%s4992_s6 + $0xe0] sm:$0xff]  ;;  %s3918_s11 = sld [smem:[%s6431_s0 + %s4959_s8]]   ;;  %s4963_s20 = smov 12  }
   0xb   :  { %4149 = vmatprep.subr.mxu0 %v223_v2  ;;  %4183 = vmatpush3.msra.mxu1 %v240_v7  ;;  %v254_v13 = vld [vmem:[%s4992_s6 + $0x1e8] sm:$0xff]  ;;  %v205_v14 = vld [vmem:[%s4992_s6 + $0x60] sm:$0xff]  ;;  %v220_v16 = vld [vmem:[%s4992_s6 + $0xd8] sm:$0xff]  ;;  %s5211_s15 = sld [smem:[%s6431_s0 + %s4960_s12]]   ;;  %s4964_s24 = smov 14  }
   0xc   :  { %4150 = vmatpush3.msra.mxu0 %v207_v5  ;;  %4184 = vmatprep.subr.mxu1 %v255_v9  ;;  %v238_v15 = vld [vmem:[%s4992_s6 + $0x168] sm:$0xff]  ;;  %v253_v17 = vld [vmem:[%s4992_s6 + $0x1e0] sm:$0xff]  ;;  %v204_v18 = vld [vmem:[%s4992_s6 + $0x58] sm:$0xff]  ;;  %s3919_s19 = sld [smem:[%s6431_s0 + %s4962_s16]]   ;;  %s4965_s28 = smov 2  }
   0xd   :  { %4151 = vmatprep.subr.mxu0 %v222_v8  ;;  %4185 = vmatpush3.msra.mxu1 %v239_v11  ;;  %v237_v19 = vld [vmem:[%s4992_s6 + $0x160] sm:$0xff]  ;;  %v219_v20 = vld [vmem:[%s4992_s6 + $0xd0] sm:$0xff]  ;;  %v252_v21 = vld [vmem:[%s4992_s6 + $0x1d8] sm:$0xff]  ;;  %s3920_s23 = sld [smem:[%s6431_s0 + %s4963_s20]]   ;;  %s4966_s2 = smov 64  }
   0xe   :  { %4152 = vmatpush3.msra.mxu0 %v206_v10  ;;  %4186 = vmatprep.subr.mxu1 %v254_v13  ;;  %v203_v22 = vld [vmem:[%s4992_s6 + $0x50] sm:$0xff]  ;;  %v236_v23 = vld [vmem:[%s4992_s6 + $0x158] sm:$0xff]  ;;  %v218_v24 = vld [vmem:[%s4992_s6 + $0xc8] sm:$0xff]  ;;  %s5302_s27 = sld [smem:[%s6431_s0 + %s4964_s24]]   ;;  %s4970_s16 = smov 17  }
   0xf   :  { %4153 = vmatprep.subr.mxu0 %v221_v12  ;;  %4187 = vmatpush3.msra.mxu1 %v238_v15  ;;  %v251_v25 = vld [vmem:[%s4992_s6 + $0x1d0] sm:$0xff]  ;;  %v202_v26 = vld [vmem:[%s4992_s6 + $0x48] sm:$0xff]  ;;  %v217_v28 = vld [vmem:[%s4992_s6 + $0xc0] sm:$0xff]  ;;  %s5403_s1 = sld [smem:[%s6431_s0 + %s4965_s28]]   ;;  %s4971_s20 = smov 18  }
  0x10   :  { %4154 = vmatpush3.msra.mxu0 %v205_v14  ;;  %4188 = vmatprep.subr.mxu1 %v253_v17  ;;  %v235_v27 = vld [vmem:[%s4992_s6 + $0x150] sm:$0xff]  ;;  %v250_v29 = vld [vmem:[%s4992_s6 + $0x1c8] sm:$0xff]  ;;  %v201_v30 = vld [vmem:[%s4992_s6 + $0x40] sm:$0xff]  ;;  %s4972_s24 = smov 21   ;;  %s4975_s5 = smov 22  }
  0x11   :  { %4155 = vmatprep.subr.mxu0 %v220_v16  ;;  %4189 = vmatpush3.msra.mxu1 %v237_v19  ;;  %v234_v31 = vld [vmem:[%s4992_s6 + $0x148] sm:$0xff]  ;;  %v216_v32 = vld [vmem:[%s4992_s6 + $0xb8] sm:$0xff]  ;;  %v249_v33 = vld [vmem:[%s4992_s6 + $0x1c0] sm:$0xff]  ;;  %s5626_s28 = sld [smem:[%s6431_s0 + %s4972_s24]]   ;;  %s4981_s22 = smov 26  }
  0x12   :  { %4156 = vmatpush3.msra.mxu0 %v204_v18  ;;  %4190 = vmatprep.subr.mxu1 %v252_v21  ;;  %v200_v34 = vld [vmem:[%s4992_s6 + $0x38] sm:$0xff]  ;;  %v233_v35 = vld [vmem:[%s4992_s6 + $0x140] sm:$0xff]  ;;  %v215_v36 = vld [vmem:[%s4992_s6 + $0xb0] sm:$0xff]  ;;  %s4982_s26 = smov 28  }
  0x13   :  { %4157 = vmatprep.subr.mxu0 %v219_v20  ;;  %4191 = vmatpush3.msra.mxu1 %v236_v23  ;;  %v248_v37 = vld [vmem:[%s4992_s6 + $0x1b8] sm:$0xff]  ;;  %v199_v38 = vld [vmem:[%s4992_s6 + $0x30] sm:$0xff]  ;;  %v214_v40 = vld [vmem:[%s4992_s6 + $0xa8] sm:$0xff]  ;;  %s3936_s30 = sld [smem:[%s6431_s0 + %s4982_s26]]  }
  0x14   :  { %4158 = vmatpush3.msra.mxu0 %v203_v22  ;;  %4192 = vmatprep.subr.mxu1 %v251_v25  ;;  %v232_v39 = vld [vmem:[%s4992_s6 + $0x138] sm:$0xff]  ;;  %v247_v41 = vld [vmem:[%s4992_s6 + $0x1b0] sm:$0xff]  ;;  %v198_v42 = vld [vmem:[%s4992_s6 + $0x28] sm:$0xff] }
  0x15   :  { %4159 = vmatprep.subr.mxu0 %v218_v24  ;;  %4193 = vmatpush3.msra.mxu1 %v235_v27  ;;  %v231_v43 = vld [vmem:[%s4992_s6 + $0x130] sm:$0xff]  ;;  %v213_v44 = vld [vmem:[%s4992_s6 + $0xa0] sm:$0xff]  ;;  %v246_v45 = vld [vmem:[%s4992_s6 + $0x1a8] sm:$0xff] }
  0x16   :  { %4160 = vmatpush3.msra.mxu0 %v202_v26  ;;  %4194 = vmatprep.subr.mxu1 %v250_v29  ;;  %v197_v46 = vld [vmem:[%s4992_s6 + $0x20] sm:$0xff]  ;;  %v230_v47 = vld [vmem:[%s4992_s6 + $0x128] sm:$0xff]  ;;  %v212_v48 = vld [vmem:[%s4992_s6 + $0x98] sm:$0xff] }
  0x17   :  { %4161 = vmatprep.subr.mxu0 %v217_v28  ;;  %4195 = vmatpush3.msra.mxu1 %v234_v31  ;;  %v245_v49 = vld [vmem:[%s4992_s6 + $0x1a0] sm:$0xff]  ;;  %v196_v50 = vld [vmem:[%s4992_s6 + $0x18] sm:$0xff]  ;;  %v211_v52 = vld [vmem:[%s4992_s6 + $0x90] sm:$0xff] }
  0x18   :  { %4162 = vmatpush3.msra.mxu0 %v201_v30  ;;  %4196 = vmatprep.subr.mxu1 %v249_v33  ;;  %v229_v51 = vld [vmem:[%s4992_s6 + $0x120] sm:$0xff]  ;;  %v244_v53 = vld [vmem:[%s4992_s6 + $0x198] sm:$0xff]  ;;  %v195_v54 = vld [vmem:[%s4992_s6 + $0x10] sm:$0xff] }
  0x19   :  { %4163 = vmatprep.subr.mxu0 %v216_v32  ;;  %4197 = vmatpush3.msra.mxu1 %v233_v35  ;;  %v228_v55 = vld [vmem:[%s4992_s6 + $0x118] sm:$0xff]  ;;  %v210_v56 = vld [vmem:[%s4992_s6 + $0x88] sm:$0xff]  ;;  %v243_v57 = vld [vmem:[%s4992_s6 + $0x190] sm:$0xff] }
  0x1a   :  { %4164 = vmatpush3.msra.mxu0 %v200_v34  ;;  %4198 = vmatprep.subr.mxu1 %v248_v37  ;;  %v194_v58 = vld [vmem:[%s4992_s6 + $0x8] sm:$0xff]  ;;  %v227_v59 = vld [vmem:[%s4992_s6 + $0x110] sm:$0xff]  ;;  %v209_v60 = vld [vmem:[%s4992_s6 + $0x80] sm:$0xff] }
  0x1b   :  { %4165 = vmatprep.subr.mxu0 %v215_v36  ;;  %4199 = vmatpush3.msra.mxu1 %v232_v39  ;;  %v242_v61 = vld [vmem:[%s4992_s6 + $0x188] sm:$0xff]  ;;  %v193_v62 = vld [vmem:[%s4992_s6] sm:$0xff]  ;;  %v288_v4 = vld [vmem:[%s4992_s6 + $0x2f8] sm:$0xff] }
  0x1c   :  { %4166 = vmatpush3.msra.mxu0 %v199_v38  ;;  %4200 = vmatprep.subr.mxu1 %v247_v41  ;;  %v188_v63 = vld [vmem:[%s5053_s13 + $0x8] sm:$0xff]  ;;  %v187_v1 = vld [vmem:[%s5053_s13] sm:$0xff]  ;;  %v190_v6 = vld [vmem:[%s5053_s13 + $0x18] sm:$0xff] }
  0x1d   :  { %4167 = vmatprep.subr.mxu0 %v214_v40  ;;  %4201 = vmatpush3.msra.mxu1 %v231_v43  ;;  %v226_v0 = vld [vmem:[%s4992_s6 + $0x108] sm:$0xff]  ;;  %v241_v2 = vld [vmem:[%s4992_s6 + $0x180] sm:$0xff]  ;;  %v272_v7 = vld [vmem:[%s4992_s6 + $0x278] sm:$0xff] }
  0x1e   :  { %4168 = vmatpush3.msra.mxu0 %v198_v42  ;;  %4202 = vmatprep.subr.mxu1 %v246_v45  ;;  %v225_v5 = vld [vmem:[%s4992_s6 + $0x100] sm:$0xff]  ;;  %v189_v8 = vld [vmem:[%s5053_s13 + $0x10] sm:$0xff]  ;;  %v192_v10 = vld [vmem:[%s5053_s13 + $0x28] sm:$0xff] }
  0x1f   :  { %4169 = vmatprep.subr.mxu0 %v213_v44  ;;  %4203 = vmatpush3.msra.mxu1 %v230_v47  ;;  %v287_v9 = vld [vmem:[%s4992_s6 + $0x2f0] sm:$0xff]  ;;  %v508_v11 = vld [vmem:[%s5066_s17] sm:$0x1]  ;;  %v5097_v15 = vld [vmem:[%s4997_s9 + $0x8] sm:$0xff]  ;;  %s4977_s17 = smov 24  }
  0x20   :  { %4170 = vmatpush3.msra.mxu0 %v197_v46  ;;  %4204 = vmatprep.subr.mxu1 %v245_v49  ;;  %v509_v12 = vld [vmem:[%s5073_s21] sm:$0x1]  ;;  %v271_v13 = vld [vmem:[%s4992_s6 + $0x270] sm:$0xff]  ;;  %v286_v16 = vld [vmem:[%s4992_s6 + $0x2e8] sm:$0xff]  ;;  %v131_v17 = vsel %vm127_vm0, %v5097_v15, 0.0 }
  0x21   :  { %4171 = vmatprep.subr.mxu0 %v212_v48  ;;  %4205 = vmatpush3.msra.mxu1 %v229_v51  ;;  %v5094_v14 = vadd.f32 %v509_v12, %v508_v11  ;;  %v270_v18 = vld [vmem:[%s4992_s6 + $0x268] sm:$0xff]  ;;  %v5106_v20 = vld [vmem:[%s4997_s9 + $0x10] sm:$0x3f]  ;;  %v285_v21 = vld [vmem:[%s4992_s6 + $0x2e0] sm:$0xff]  ;;  %s5830_s9 = sld [smem:[%s6431_s0 + %s4975_s5]]  }
  0x22   :  { %4172 = vmatpush3.msra.mxu0 %v196_v50  ;;  %4206 = vmatprep.subr.mxu1 %v244_v53  ;;  %v269_v22 = vld [vmem:[%s4992_s6 + $0x260] sm:$0xff]  ;;  %v284_v23 = vld [vmem:[%s4992_s6 + $0x2d8] sm:$0xff]  ;;  %v135_v24 = vsel %vm134_vm2, %v5106_v20, 0.0  ;;  %v283_v26 = vld [vmem:[%s4992_s6 + $0x2d0] sm:$0xff] }
  0x23   :  { %4173 = vmatprep.subr.mxu0 %v211_v52  ;;  %4207 = vmatpush3.msra.mxu1 %v228_v55  ;;  %v512_v19 = vsel %vm511_vm1, %v5094_v14, 0.0  ;;  %v268_v25 = vld [vmem:[%s4992_s6 + $0x258] sm:$0xff]  ;;  %v267_v27 = vld [vmem:[%s4992_s6 + $0x250] sm:$0xff]  ;;  %v282_v28 = vld [vmem:[%s4992_s6 + $0x2c8] sm:$0xff] }
  0x24   :  { %4174 = vmatpush3.msra.mxu0 %v195_v54  ;;  %4208 = vmatprep.subr.mxu1 %v243_v57  ;;  %v266_v29 = vld [vmem:[%s4992_s6 + $0x248] sm:$0xff]  ;;  %v281_v30 = vld [vmem:[%s4992_s6 + $0x2c0] sm:$0xff]  ;;  %v280_v32 = vld [vmem:[%s4992_s6 + $0x2b8] sm:$0xff] }
  0x25   :  { %4175 = vmatprep.subr.mxu0 %v210_v56  ;;  %4209 = vmatpush3.msra.mxu1 %v227_v59  ;;  %v265_v31 = vld [vmem:[%s4992_s6 + $0x240] sm:$0xff]  ;;  %v264_v33 = vld [vmem:[%s4992_s6 + $0x238] sm:$0xff]  ;;  %v279_v34 = vld [vmem:[%s4992_s6 + $0x2b0] sm:$0xff] }
  0x26   :  { %4176 = vmatpush3.msra.mxu0 %v194_v58  ;;  %4210 = vmatprep.subr.mxu1 %v242_v61  ;;  %v263_v35 = vld [vmem:[%s4992_s6 + $0x230] sm:$0xff]  ;;  %v278_v36 = vld [vmem:[%s4992_s6 + $0x2a8] sm:$0xff]  ;;  %v277_v38 = vld [vmem:[%s4992_s6 + $0x2a0] sm:$0xff] }
  0x27   :  { %4177 = vmatprep.subr.mxu0 %v209_v60  ;;  %360 = vmatprep.mubr.f32.mxu0 %v188_v63  ;;  %v262_v37 = vld [vmem:[%s4992_s6 + $0x228] sm:$0xff]  ;;  %v261_v39 = vld [vmem:[%s4992_s6 + $0x220] sm:$0xff]  ;;  %v276_v40 = vld [vmem:[%s4992_s6 + $0x298] sm:$0xff] }
  0x28   :  { %4178 = vmatpush3.msra.mxu0 %v193_v62  ;;  %4211 = vmatpush3.msra.mxu1 %v226_v0  ;;  %v260_v41 = vld [vmem:[%s4992_s6 + $0x218] sm:$0xff]  ;;  %v275_v42 = vld [vmem:[%s4992_s6 + $0x290] sm:$0xff]  ;;  %v274_v44 = vld [vmem:[%s4992_s6 + $0x288] sm:$0xff] }
  0x29   :  { %361 = vmatmul.mubr.f32.vlgmr.msra.gmra.mxu0 %v187_v1  ;;  %4212 = vmatprep.subr.mxu1 %v241_v2  ;;  %v259_v43 = vld [vmem:[%s4992_s6 + $0x210] sm:$0xff]  ;;  %v258_v45 = vld [vmem:[%s4992_s6 + $0x208] sm:$0xff]  ;;  %v273_v46 = vld [vmem:[%s4992_s6 + $0x280] sm:$0xff] }
  0x2a   :  { %4217 = vmatprep.subr.mxu0 %v288_v4  ;;  %4213 = vmatpush3.msra.mxu1 %v225_v5  ;;  %v257_v47 = vld [vmem:[%s4992_s6 + $0x200] sm:$0xff] }
  0x2b   :  { %430 = vmatprep.mubr.f32.mxu1 %v190_v6  ;;  %4218 = vmatpush3.msra.mxu0 %v272_v7  ;;  %v191_v48 = vld [vmem:[%s5053_s13 + $0x20] sm:$0xff] }
  0x2c   :  { %431 = vmatmul.mubr.f32.vlgmr.msra.gmra.mxu1 %v189_v8  ;;  %4219 = vmatprep.subr.mxu0 %v287_v9  ;;  %v3940_v5 = vld [vmem:[%s3912_s25] ss:$0 sm:$0xff]  ;;  %v527_v11 = vld [vmem:[%s5073_s21 + $0x1] sm:$0xf]  ;;  %s5894_s21 = sld [smem:[%s6431_s0 + %s4977_s17]]  }
  0x2d   :  { %500 = vmatprep.mubr.f32.mxu0 %v192_v10  ;;  %4220 = vmatpush3.msra.mxu0 %v271_v13  ;;  %s3934_s25 = sld [smem:[%s6431_s0 + %s4981_s22]]  }
  0x2e   :  { %513 = vadd.xlane.f32.xlu1 %v512_v19  ;;  %4221 = vmatprep.subr.mxu0 %v286_v16 }
  0x2f   :  { %132 = vadd.xlane.f32.xlu0 %v131_v17  ;;  %4222 = vmatpush3.msra.mxu0 %v270_v18  ;;  %v567_v17 = vrot.slane %v527_v11, 4 }
  0x30   :  { %4223 = vmatprep.subr.mxu0 %v285_v21 }
  0x31   :  { %4224 = vmatpush3.msra.mxu0 %v269_v22 }
  0x32   :  { %4225 = vmatprep.subr.mxu0 %v284_v23 }
  0x33   :  { %136 = vadd.xlane.f32.xlu0 %v135_v24  ;;  %4226 = vmatpush3.msra.mxu0 %v268_v25 }
  0x34   :  { %4227 = vmatprep.subr.mxu0 %v283_v26 }
  0x35   :  { %4228 = vmatpush3.msra.mxu0 %v267_v27 }
  0x36   :  { %4229 = vmatprep.subr.mxu0 %v282_v28  ;;  %v3938_v28 = vld [vmem:[%s3915_s29] ss:$0 sm:$0xff]  ;;  %s4973_s29 = smov 20  }
  0x37   :  { %4230 = vmatpush3.msra.mxu0 %v266_v29  ;;  %s5678_s4 = sld [smem:[%s6431_s0 + %s4973_s29]]  }
  0x38   :  { %4231 = vmatprep.subr.mxu0 %v281_v30  ;;  %v3939_v30 = vld [vmem:[%s3916_s3] ss:$0 sm:$0xff]  ;;  %s4967_s3 = smov 15  }
  0x39   :  { %4232 = vmatpush3.msra.mxu0 %v265_v31  ;;  %s5495_s6 = sld [smem:[%s6431_s0 + %s4967_s3]]   ;;  %s4983_s3 = smov 29  }
  0x3a   :  { %4233 = vmatprep.subr.mxu0 %v280_v32 }
  0x3b   :  { %4234 = vmatpush3.msra.mxu0 %v264_v33 }
  0x3c   :  { %4235 = vmatprep.subr.mxu0 %v279_v34 }
  0x3d   :  { %4236 = vmatpush3.msra.mxu0 %v263_v35 }
  0x3e   :  { %4237 = vmatprep.subr.mxu0 %v278_v36 }
  0x3f   :  { %4238 = vmatpush3.msra.mxu0 %v262_v37 }
  0x40   :  { %4239 = vmatprep.subr.mxu0 %v277_v38 }
  0x41   :  { %4240 = vmatpush3.msra.mxu0 %v261_v39 }
  0x42   :  { %4241 = vmatprep.subr.mxu0 %v276_v40 }
  0x43   :  { %4242 = vmatpush3.msra.mxu0 %v260_v41 }
  0x44   :  { %4243 = vmatprep.subr.mxu0 %v275_v42  ;;  %v5177_v42 = vld [vmem:[%s3917_s7] sm:$0x1]  ;;  %s4968_s7 = smov 16  }
  0x45   :  { %4244 = vmatpush3.msra.mxu0 %v259_v43  ;;  %s5527_s10 = sld [smem:[%s6431_s0 + %s4968_s7]]  }
  0x46   :  { %4245 = vmatprep.subr.mxu0 %v274_v44  ;;  %v5180_v44 = vld [vmem:[%s3918_s11] sm:$0x1]  ;;  %s4969_s11 = smov 19   ;;  %s3937_s7 = sld [smem:[%s6431_s0 + %s4983_s3]]  }
  0x47   :  { %4246 = vmatpush3.msra.mxu0 %v258_v45  ;;  %s5558_s14 = sld [smem:[%s6431_s0 + %s4969_s11]]   ;;  %s4976_s11 = smov 23  }
  0x48   :  { %4247 = vmatprep.subr.mxu0 %v273_v46 }
  0x49   :  { %4248 = vmatpush3.msra.mxu0 %v257_v47 }
  0x4a   :  { %501 = vmatmul.mubr.f32.vlgmr.msra.gmra.mxu0 %v191_v48 }
  0x93   :  { %v130_v49 = vpop.xlane.xlu0 %129 }
  0x94   :  { %v139_v50 = vmul.f32 0.010416667, %v130_v49 }
  0x96   :  { %v142_v51 = vsub.f32 %v5003_v3, %v139_v50 }
  0x98   :  { %v145_v52 = vmul.f32 %v142_v51, %v142_v51 }
  0x9a   :  { %v148_v53 = vsel %vm127_vm0, %v145_v52, 0.0 }
  0x9b   :  { %149 = vadd.xlane.f32.xlu0 %v148_v53 }
  0xb7   :  { %v514_v54 = vpop.xlane.xlu1 %513 }
  0xb8   :  { %v515_v55 = vmul.f32 0.010416667, %v514_v54  ;;  %v133_v56 = vpop.xlane.xlu0 %132 }
  0xb9   :  { %v140_v13 = vmul.f32 0.010416667, %v133_v56 }
  0xba   :  { %v5140_v57 = vsub.f32 %v5094_v14, %v515_v55 }
  0xbb   :  { %v5156_v18 = vsub.f32 %v5097_v15, %v140_v13  ;;  %v700_v13 = vld [vmem:[%s5211_s15 + $0xf8] sm:$0xff] }
  0xbc   :  { %v517_v58 = vmul.f32 %v5140_v57, %v5140_v57  ;;  %v137_v59 = vpop.xlane.xlu0 %136 }
  0xbd   :  { %v141_v60 = vmul.f32 0.010416667, %v137_v59  ;;  %v146_v22 = vmul.f32 %v5156_v18, %v5156_v18 }
  0xbe   :  { %v518_v61 = vsel %vm511_vm1, %v517_v58, 0.0 }
  0xbf   :  { %519 = vadd.xlane.f32.xlu0 %v518_v61  ;;  %v5146_v3 = vsub.f32 %v5106_v20, %v141_v60  ;;  %v151_v24 = vsel %vm127_vm0, %v146_v22, 0.0  ;;  %v688_v22 = vld [vmem:[%s5211_s15 + $0x98] sm:$0xff] }
  0xc1   :  { %v147_v62 = vmul.f32 %v5146_v3, %v5146_v3 }
  0xc3   :  { %v154_v63 = vsel %vm134_vm2, %v147_v62, 0.0 }
  0xc4   :  { %155 = vadd.xlane.f32.xlu0 %v154_v63 }
  0xe9   :  { %v4179_v0 = vpop.f32.mrf.mxu0 }
  0xeb   :  { %v4180_v1 = vpop.f32.mrf.mxu0 }
  0xec   :  { %v4214_v2 = vpop.f32.mrf.mxu1  ;;  %v4181_v4 = vadd.f32 %v4180_v1, %v4179_v0 }
  0xee   :  { %v4215_v6 = vpop.f32.mrf.mxu1  ;;  %v363_v7 = vadd.f32 %v4181_v4, %v3940_v5 }
  0xef   :  { %v4216_v8 = vadd.f32 %v4215_v6, %v4214_v2 }
  0xf1   :  { %v433_v12 = vadd.f32 %v4216_v8, %v363_v7 }
 0x10a   :  { %v4249_v9 = vpop.f32.mrf.mxu0 }
 0x10c   :  { %v4250_v10 = vpop.f32.mrf.mxu0 }
 0x10d   :  { %v4251_v14 = vadd.f32 %v4250_v10, %v4249_v9 }
 0x10f   :  { %v503_v16 = vadd.f32 %v4251_v14, %v433_v12  ;;  %v702_v12 = vld [vmem:[%s5211_s15 + $0x108] sm:$0xff]  ;;  %v699_v14 = vld [vmem:[%s5211_s15 + $0xf0] sm:$0xff] }
 0x111   :  { %v532_v19 = vadd.f32 %v527_v11, %v503_v16  ;;  %v569_v21 = vadd.f32 %v567_v17, %v503_v16  ;;  %v703_v11 = vld [vmem:[%s5211_s15 + $0x110] sm:$0xff]  ;;  %v697_v16 = vld [vmem:[%s5211_s15 + $0xe0] sm:$0xff]  ;;  %v696_v17 = vld [vmem:[%s5211_s15 + $0xd8] sm:$0xff] }
 0x112   :  { %742 = vmatprep.subr.mxu1 %v703_v11 }
 0x113   :  { %v534_v20 = vsel %vm533_vm3, %v532_v19, 0.0  ;;  %v571_v23 = vsel %vm570_vm4, %v569_v21, 0.0  ;;  %743 = vmatpush1.msra.mxu1 %v702_v12 }
 0x114   :  { %535 = vadd.xlane.f32.xlu1 %v534_v20  ;;  %744 = vmatprep.subr.mxu1 %v700_v13  ;;  %v691_v20 = vld [vmem:[%s5211_s15 + $0xb0] sm:$0xff] }
 0x115   :  { %745 = vmatpush1.msra.mxu1 %v699_v14 }
 0x116   :  { %746 = vmatprep.subr.mxu1 %v697_v16 }
 0x117   :  { %747 = vmatpush1.msra.mxu1 %v696_v17 }
 0x118   :  { %572 = vadd.xlane.f32.xlu1 %v571_v23  ;;  %v687_v23 = vld [vmem:[%s5211_s15 + $0x90] sm:$0xff] }
 0x11c   :  { %152 = vadd.xlane.f32.xlu1 %v151_v24  ;;  %v685_v24 = vld [vmem:[%s5211_s15 + $0x80] sm:$0xff] }
 0x124   :  { %v150_v25 = vpop.xlane.xlu0 %149 }
 0x125   :  { %v157_v26 = vmul.f32 0.010416667, %v150_v25  ;;  %v684_v25 = vld [vmem:[%s5211_s15 + $0x78] sm:$0xff] }
 0x127   :  { %v160_v27 = vadd.f32 1e-05, %v157_v26  ;;  %v682_v26 = vld [vmem:[%s5211_s15 + $0x68] sm:$0xff] }
 0x129   :  { %4769 = vrsqrt.f32 %v160_v27  ;;  %v681_v27 = vld [vmem:[%s5211_s15 + $0x60] sm:$0xff] }
 0x136   :  { %v4770_v15 = vpop.eup %4769 }
 0x137   :  { %v166_v29 = vmul.f32 %v4770_v15, %v142_v51  ;;  %v679_v15 = vld [vmem:[%s5211_s15 + $0x50] sm:$0xff] }
 0x139   :  { %v175_v31 = vmul.f32 %v3938_v28, %v166_v29  ;;  %v676_v29 = vld [vmem:[%s5211_s15 + $0x38] sm:$0xff] }
 0x13b   :  { %v184_v32 = vadd.f32 %v3939_v30, %v175_v31  ;;  %v673_v31 = vld [vmem:[%s5211_s15 + $0x20] sm:$0xff] }
 0x13d   :  { %528 = vst.msk [vmem:[#allocation2] sm:$0xff] %vm127_vm0, %v184_v32  ;;  %v672_v32 = vld [vmem:[%s5211_s15 + $0x18] sm:$0xff] }
 0x144   :  { %v587_v33 = vld [vmem:[#allocation2] sm:$0xff] }
 0x145   :  { %v593_v34 = vsel %vm127_vm0, %v587_v33, 0.0 }
 0x146   :  { %594 = vadd.xlane.f32.xlu0 %v593_v34  ;;  %v670_v34 = vld [vmem:[%s5211_s15 + $0x8] sm:$0xff] }
 0x148   :  { %v520_v35 = vpop.xlane.xlu0 %519 }
 0x149   :  { %v521_v36 = vmul.f32 0.010416667, %v520_v35  ;;  %v669_v35 = vld [vmem:[%s5211_s15] sm:$0xff] }
 0x14b   :  { %v522_v37 = vadd.f32 1e-05, %v521_v36 }
 0x14d   :  { %4771 = vrsqrt.f32 %v522_v37  ;;  %v156_v38 = vpop.xlane.xlu0 %155 }
 0x14e   :  { %v159_v39 = vmul.f32 0.010416667, %v156_v38 }
 0x150   :  { %v162_v40 = vadd.f32 1e-05, %v159_v39 }
 0x152   :  { %4773 = vrsqrt.f32 %v162_v40  ;;  %v548_v40 = vlaneseq }
 0x15a   :  { %v4772_v41 = vpop.eup %4771 }
 0x15b   :  { %v524_v43 = vmul.f32 %v4772_v41, %v5140_v57 }
 0x15d   :  { %v525_v45 = vmul.f32 %v524_v43, %v5177_v42 }
 0x15f   :  { %v4774_v46 = vpop.eup %4773  ;;  %v526_v47 = vadd.f32 %v525_v45, %v5180_v44  ;;  %v5238_v45 = vshrl.u32 %v548_v40, 7 }
 0x160   :  { %v168_v48 = vmul.f32 %v4774_v46, %v5146_v3 }
 0x161   :  { %531 = vst.msk [vmem:[#allocation2 + $0xb] sm:$0x1] %vm511_vm1, %v526_v47  ;;  %565 = vst.msk [vmem:[#allocation2 + $0x1b] sm:$0x1] %vm511_vm1, %v526_v47  ;;  %v5241_v46 = vsub.s32 0, %v5238_v45 }
 0x162   :  { %v177_v49 = vmul.f32 %v3938_v28, %v168_v48 }
 0x163   :  { %v551_v47 = vrot.slane %v5177_v42, %v5241_v46 }
 0x164   :  { %v186_v50 = vadd.f32 %v3939_v30, %v177_v49  ;;  %v558_v49 = vrot.slane %v5180_v44, %v5241_v46 }
 0x166   :  { %564 = vst.msk [vmem:[#allocation2 + $0x15] sm:$0x3f] %vm134_vm2, %v186_v50 }
 0x19d   :  { %v536_v51 = vpop.xlane.xlu1 %535 }
 0x19e   :  { %v537_v52 = vmul.f32 0.010416667, %v536_v51 }
 0x1a0   :  { %v5188_v53 = vsub.f32 %v532_v19, %v537_v52  ;;  %v693_v19 = vld [vmem:[%s5211_s15 + $0xc0] sm:$0xff] }
 0x1a1   :  { %v573_v54 = vpop.xlane.xlu1 %572 }
 0x1a2   :  { %v574_v55 = vmul.f32 0.010416667, %v573_v54  ;;  %v539_v56 = vmul.f32 %v5188_v53, %v5188_v53 }
 0x1a4   :  { %v5192_v57 = vsub.f32 %v569_v21, %v574_v55  ;;  %v540_v58 = vsel %vm533_vm3, %v539_v56, 0.0  ;;  %v690_v21 = vld [vmem:[%s5211_s15 + $0xa8] sm:$0xff] }
 0x1a5   :  { %541 = vadd.xlane.f32.xlu1 %v540_v58  ;;  %v153_v59 = vpop.xlane.xlu1 %152 }
 0x1a6   :  { %v158_v60 = vmul.f32 0.010416667, %v153_v59  ;;  %v576_v61 = vmul.f32 %v5192_v57, %v5192_v57 }
 0x1a8   :  { %v161_v3 = vadd.f32 1e-05, %v158_v60  ;;  %v577_v62 = vsel %vm570_vm4, %v576_v61, 0.0 }
 0x1a9   :  { %578 = vadd.xlane.f32.xlu1 %v577_v62 }
 0x1aa   :  { %4775 = vrsqrt.f32 %v161_v3 }
 0x1b7   :  { %v4776_v63 = vpop.eup %4775 }
 0x1b8   :  { %v167_v0 = vmul.f32 %v4776_v63, %v5156_v18  ;;  %v694_v18 = vld [vmem:[%s5211_s15 + $0xc8] sm:$0xff] }
 0x1b9   :  { %748 = vmatprep.subr.mxu1 %v694_v18 }
 0x1ba   :  { %v176_v1 = vmul.f32 %v3938_v28, %v167_v0  ;;  %749 = vmatpush1.msra.mxu1 %v693_v19  ;;  %v678_v28 = vld [vmem:[%s5211_s15 + $0x48] sm:$0xff] }
 0x1bb   :  { %750 = vmatprep.subr.mxu1 %v691_v20  ;;  %v704_v20 = vld [vmem:[%s5211_s15 + $0x118] sm:$0xff] }
 0x1bc   :  { %v185_v2 = vadd.f32 %v3939_v30, %v176_v1  ;;  %751 = vmatpush1.msra.mxu1 %v690_v21  ;;  %v675_v30 = vld [vmem:[%s5211_s15 + $0x30] sm:$0xff]  ;;  %v701_v21 = vld [vmem:[%s5211_s15 + $0x100] sm:$0xff] }
 0x1bd   :  { %752 = vmatprep.subr.mxu1 %v688_v22  ;;  %v698_v22 = vld [vmem:[%s5211_s15 + $0xe8] sm:$0xff] }
 0x1be   :  { %530 = vst.msk [vmem:[#allocation2 + $0x8] sm:$0x7] %vm529_vm5, %v185_v2  ;;  %753 = vmatpush1.msra.mxu1 %v687_v23  ;;  %v695_v23 = vld [vmem:[%s5211_s15 + $0xd0] sm:$0xff] }
 0x1bf   :  { %563 = vst.msk [vmem:[#allocation2 + $0xd] sm:$0xf8] %vm562_vm6, %v185_v2  ;;  %754 = vmatprep.subr.mxu1 %v685_v24  ;;  %v692_v24 = vld [vmem:[%s5211_s15 + $0xb8] sm:$0xff] }
 0x1c0   :  { %755 = vmatpush1.msra.mxu1 %v684_v25  ;;  %v689_v25 = vld [vmem:[%s5211_s15 + $0xa0] sm:$0xff] }
 0x1c1   :  { %756 = vmatprep.subr.mxu1 %v682_v26  ;;  %v686_v26 = vld [vmem:[%s5211_s15 + $0x88] sm:$0xff] }
 0x1c2   :  { %757 = vmatpush1.msra.mxu1 %v681_v27  ;;  %v683_v27 = vld [vmem:[%s5211_s15 + $0x70] sm:$0xff] }
 0x1c3   :  { %758 = vmatprep.subr.mxu1 %v679_v15  ;;  %v680_v15 = vld [vmem:[%s5211_s15 + $0x58] sm:$0xff] }
 0x1c4   :  { %759 = vmatpush1.msra.mxu1 %v678_v28  ;;  %v677_v28 = vld [vmem:[%s5211_s15 + $0x40] sm:$0xff] }
 0x1c5   :  { %760 = vmatprep.subr.mxu1 %v676_v29  ;;  %v674_v29 = vld [vmem:[%s5211_s15 + $0x28] sm:$0xff] }
 0x1c6   :  { %v5199_v4 = vld [vmem:[#allocation2 + $0x10] sm:$0xff]  ;;  %761 = vmatpush1.msra.mxu1 %v675_v30 }
 0x1c7   :  { %v599_v5 = vsel %vm127_vm0, %v5199_v4, 0.0  ;;  %762 = vmatprep.subr.mxu1 %v673_v31  ;;  %v671_v30 = vld [vmem:[%s5211_s15 + $0x10] sm:$0xff]  ;;  %v705_v31 = vld [vmem:[%s5302_s27] sm:$0x7] }
 0x1c8   :  { %600 = vadd.xlane.f32.xlu0 %v599_v5  ;;  %763 = vmatpush1.msra.mxu1 %v672_v32  ;;  %v5306_v32 = vrot.slane %v705_v31, %v5241_v46 }
 0x1c9   :  { %764 = vmatprep.subr.mxu1 %v670_v34 }
 0x1ca   :  { %765 = vmatpush1.msra.mxu1 %v669_v35 }
 0x1cb   :  { %4414 = vmatprep.subr.mxu1 %v704_v20 }
 0x1cf   :  { %v595_v6 = vpop.xlane.xlu0 %594 }
 0x1d0   :  { %v605_v7 = vmul.f32 0.010416667, %v595_v6  ;;  %v5268_v6 = vld [vmem:[%s3920_s23] ss:$0 sm:$0xff]  ;;  %s5596_s23 = sld [smem:[%s6431_s0 + %s4971_s20]]  }
 0x1d2   :  { %v5203_v8 = vsub.f32 %v587_v33, %v605_v7  ;;  %v4961_v33 = vmov 0.0  }
 0x1d3   :  { %798 = vmatprep.mubr.f32.mxu1 %v4961_v33 }
 0x1d4   :  { %v613_v9 = vmul.f32 %v5203_v8, %v5203_v8 }
 0x1d6   :  { %v617_v10 = vsel %vm127_vm0, %v613_v9, 0.0 }
 0x1d7   :  { %618 = vadd.xlane.f32.xlu0 %v617_v10 }
 0x22e   :  { %v542_v36 = vpop.xlane.xlu1 %541 }
 0x22f   :  { %v543_v37 = vmul.f32 0.010416667, %v542_v36 }
 0x231   :  { %v544_v38 = vadd.f32 1e-05, %v543_v37 }
 0x232   :  { %v579_v39 = vpop.xlane.xlu1 %578 }
 0x233   :  { %4777 = vrsqrt.f32 %v544_v38  ;;  %v580_v41 = vmul.f32 0.010416667, %v579_v39 }
 0x235   :  { %v581_v43 = vadd.f32 1e-05, %v580_v41 }
 0x237   :  { %4779 = vrsqrt.f32 %v581_v43 }
 0x240   :  { %v4778_v48 = vpop.eup %4777 }
 0x241   :  { %v546_v50 = vmul.f32 %v4778_v48, %v5188_v53 }
 0x243   :  { %v553_v51 = vmul.f32 %v551_v47, %v546_v50 }
 0x244   :  { %v4780_v52 = vpop.eup %4779 }
 0x245   :  { %v560_v54 = vadd.f32 %v558_v49, %v553_v51  ;;  %v583_v55 = vmul.f32 %v4780_v52, %v5192_v57 }
 0x247   :  { %561 = vst.msk [vmem:[#allocation2 + $0xc] sm:$0xf] %vm533_vm3, %v560_v54  ;;  %v584_v56 = vmul.f32 %v583_v55, %v551_v47 }
 0x249   :  { %v585_v58 = vadd.f32 %v584_v56, %v558_v49 }
 0x24b   :  { %586 = vst.msk [vmem:[#allocation2 + $0x18] sm:$0xf0] %vm570_vm4, %v585_v58 }
 0x24e   :  { %v588_v59 = vld [vmem:[#allocation2 + $0x8] sm:$0xff] }
 0x24f   :  { %v596_v42 = vsel %vm127_vm0, %v588_v59, 0.0 }
 0x250   :  { %597 = vadd.xlane.f32.xlu1 %v596_v42 }
 0x251   :  { %v601_v60 = vpop.xlane.xlu0 %600 }
 0x252   :  { %v607_v61 = vmul.f32 0.010416667, %v601_v60  ;;  %v590_v44 = vld [vmem:[#allocation2 + $0x18] sm:$0xff] }
 0x253   :  { %v602_v3 = vsel %vm127_vm0, %v590_v44, 0.0 }
 0x254   :  { %v5253_v53 = vsub.f32 %v5199_v4, %v607_v61  ;;  %603 = vadd.xlane.f32.xlu1 %v602_v3  ;;  %v5265_v4 = vld [vmem:[%s3919_s19] ss:$0 sm:$0xff]  ;;  %s5591_s19 = sld [smem:[%s6431_s0 + %s4970_s16]]  }
 0x255   :  { %s5889_s16 = sld [smem:[%s6431_s0 + %s4976_s11]]  }
 0x256   :  { %v615_v57 = vmul.f32 %v5253_v53, %v5253_v53 }
 0x258   :  { %v623_v62 = vsel %vm127_vm0, %v615_v57, 0.0 }
 0x259   :  { %624 = vadd.xlane.f32.xlu0 %v623_v62 }
 0x260   :  { %v619_v63 = vpop.xlane.xlu0 %618 }
 0x261   :  { %v629_v0 = vmul.f32 0.010416667, %v619_v63  ;;  %v5345_v63 = vsub.s32 1, %v5238_v45 }
 0x263   :  { %v633_v1 = vadd.f32 1e-05, %v629_v0 }
 0x265   :  { %4781 = vrsqrt.f32 %v633_v1 }
 0x272   :  { %v4782_v2 = vpop.eup %4781 }
 0x273   :  { %v641_v5 = vmul.f32 %v4782_v2, %v5203_v8  ;;  %v714_v2 = vrot.slane %v705_v31, %v5345_v63 }
 0x275   :  { %v651_v7 = vmul.f32 %v5265_v4, %v641_v5 }
 0x277   :  { %v5272_v9 = vadd.f32 %v5268_v6, %v651_v7 }
 0x279   :  { %3943 = vmatmul.mubr.msk.f32.vlgmr.msra.gmra.mxu1 %vm127_vm0, %v5272_v9 }
 0x27a   :  { %804 = vmatprep.mubr.f32.mxu1 %v4961_v33  ;;  %4415 = vmatpush3.msra.mxu1 %v704_v20 }
 0x27b   :  { %4416 = vmatprep.subr.mxu1 %v701_v21 }
 0x27c   :  { %4417 = vmatpush3.msra.mxu1 %v701_v21 }
 0x27d   :  { %4418 = vmatprep.subr.mxu1 %v698_v22 }
 0x27e   :  { %4419 = vmatpush3.msra.mxu1 %v698_v22 }
 0x27f   :  { %4420 = vmatprep.subr.mxu1 %v695_v23 }
 0x280   :  { %4421 = vmatpush3.msra.mxu1 %v695_v23 }
 0x281   :  { %4422 = vmatprep.subr.mxu1 %v692_v24 }
 0x282   :  { %4423 = vmatpush3.msra.mxu1 %v692_v24 }
 0x283   :  { %4424 = vmatprep.subr.mxu1 %v689_v25 }
 0x284   :  { %4425 = vmatpush3.msra.mxu1 %v689_v25 }
 0x285   :  { %4426 = vmatprep.subr.mxu1 %v686_v26 }
 0x286   :  { %4427 = vmatpush3.msra.mxu1 %v686_v26 }
 0x287   :  { %4428 = vmatprep.subr.mxu1 %v683_v27 }
 0x288   :  { %4429 = vmatpush3.msra.mxu1 %v683_v27  ;;  %v5406_v27 = vld [vmem:[%s5403_s1 + $0x8] sm:$0xff] }
 0x289   :  { %4430 = vmatprep.subr.mxu1 %v680_v15 }
 0x28a   :  { %4431 = vmatpush3.msra.mxu1 %v680_v15 }
 0x28b   :  { %4432 = vmatprep.subr.mxu1 %v677_v28 }
 0x28c   :  { %4433 = vmatpush3.msra.mxu1 %v677_v28  ;;  %v5409_v28 = vld [vmem:[%s5403_s1] sm:$0xff] }
 0x28d   :  { %4434 = vmatprep.subr.mxu1 %v674_v29 }
 0x28e   :  { %4435 = vmatpush3.msra.mxu1 %v674_v29 }
 0x28f   :  { %4436 = vmatprep.subr.mxu1 %v671_v30 }
 0x290   :  { %4437 = vmatpush3.msra.mxu1 %v671_v30 }
 0x2d9   :  { %v598_v10 = vpop.xlane.xlu1 %597 }
 0x2da   :  { %v606_v11 = vmul.f32 0.010416667, %v598_v10 }
 0x2dc   :  { %v5277_v12 = vsub.f32 %v588_v59, %v606_v11 }
 0x2dd   :  { %v604_v8 = vpop.xlane.xlu1 %603 }
 0x2de   :  { %v608_v13 = vmul.f32 0.010416667, %v604_v8  ;;  %v614_v14 = vmul.f32 %v5277_v12, %v5277_v12 }
 0x2e0   :  { %v5281_v16 = vsub.f32 %v590_v44, %v608_v13  ;;  %v620_v17 = vsel %vm127_vm0, %v614_v14, 0.0 }
 0x2e1   :  { %621 = vadd.xlane.f32.xlu1 %v620_v17 }
 0x2e2   :  { %v616_v18 = vmul.f32 %v5281_v16, %v5281_v16  ;;  %v625_v37 = vpop.xlane.xlu0 %624 }
 0x2e3   :  { %v631_v38 = vmul.f32 0.010416667, %v625_v37  ;;  %v5418_v37 = vld [vmem:[%s5403_s1 + $0x10] sm:$0xff] }
 0x2e4   :  { %v626_v19 = vsel %vm127_vm0, %v616_v18, 0.0 }
 0x2e5   :  { %627 = vadd.xlane.f32.xlu1 %v626_v19  ;;  %v635_v39 = vadd.f32 1e-05, %v631_v38 }
 0x2e7   :  { %4783 = vrsqrt.f32 %v635_v39 }
 0x2f4   :  { %v4784_v50 = vpop.eup %4783 }
 0x2f5   :  { %v643_v54 = vmul.f32 %v4784_v50, %v5253_v53 }
 0x2f7   :  { %v653_v59 = vmul.f32 %v5265_v4, %v643_v54 }
 0x2f9   :  { %v5325_v60 = vadd.f32 %v5268_v6, %v653_v59 }
 0x339   :  { %v800_v34 = vpop.f32.mrf.mxu1 }
 0x33a   :  { %v801_v35 = vadd.f32 %v800_v34, %v5306_v32 }
 0x33b   :  { %v802_v53 = vpop.f32.mrf.mxu1 }
 0x33c   :  { %v5309_v36 = vmul.f32 0.14433756, %v801_v35  ;;  %v5373_v18 = vadd.f32 %v802_v53, %v714_v2 }
 0x33e   :  { %4452 = vmatprep.mubr.msk.f32.mxu0 %vm912_vm7, %v5309_v36 }
 0x36a   :  { %v622_v40 = vpop.xlane.xlu1 %621 }
 0x36b   :  { %v630_v41 = vmul.f32 0.010416667, %v622_v40 }
 0x36d   :  { %v634_v43 = vadd.f32 1e-05, %v630_v41 }
 0x36e   :  { %v628_v47 = vpop.xlane.xlu1 %627 }
 0x36f   :  { %4785 = vrsqrt.f32 %v634_v43  ;;  %v632_v48 = vmul.f32 0.010416667, %v628_v47 }
 0x371   :  { %v636_v49 = vadd.f32 1e-05, %v632_v48 }
 0x373   :  { %4787 = vrsqrt.f32 %v636_v49 }
 0x37c   :  { %v4786_v51 = vpop.eup %4785 }
 0x37d   :  { %v642_v52 = vmul.f32 %v4786_v51, %v5277_v12 }
 0x37f   :  { %v652_v55 = vmul.f32 %v5265_v4, %v642_v52 }
 0x380   :  { %v4788_v56 = vpop.eup %4787 }
 0x381   :  { %v5317_v58 = vadd.f32 %v5268_v6, %v652_v55  ;;  %v644_v42 = vmul.f32 %v4788_v56, %v5281_v16 }
 0x383   :  { %3944 = vmatmul.mubr.msk.f32.gmra.mxu1 %vm127_vm0, %v5317_v58  ;;  %v654_v61 = vmul.f32 %v5265_v4, %v644_v42 }
 0x384   :  { %810 = vmatprep.mubr.f32.mxu1 %v4961_v33 }
 0x385   :  { %v5332_v44 = vadd.f32 %v5268_v6, %v654_v61  ;;  %v717_v6 = vsub.s32 2, %v5238_v45 }
 0x387   :  { %3945 = vmatmul.mubr.msk.f32.gmra.mxu1 %vm127_vm0, %v5325_v60  ;;  %v718_v12 = vrot.slane %v705_v31, %v717_v6  ;;  %v5413_v31 = vld [vmem:[%s5403_s1 + $0x18] sm:$0xff] }
 0x388   :  { %816 = vmatprep.mubr.f32.mxu1 %v4961_v33 }
 0x38b   :  { %3946 = vmatmul.mubr.msk.f32.gmra.mxu1 %vm127_vm0, %v5332_v44 }
 0x38c   :  { %4438 = vmatprep.mubr.msk.f32.mxu1 %vm127_vm0, %v5272_v9 }
 0x38f   :  { %4439 = vmatmul.mubr.msk.f32.vlgmr.msra.gmra.mxu1 %vm127_vm0, %v5317_v58 }
 0x390   :  { %4441 = vmatprep.mubr.msk.f32.mxu1 %vm127_vm0, %v5325_v60 }
 0x393   :  { %4442 = vmatmul.mubr.msk.f32.gmra.mxu1 %vm127_vm0, %v5332_v44 }
 0x443   :  { %v806_v3 = vpop.f32.mrf.mxu1 }
 0x444   :  { %v807_v20 = vadd.f32 %v806_v3, %v5306_v32 }
 0x445   :  { %v808_v57 = vpop.f32.mrf.mxu1 }
 0x446   :  { %v5361_v13 = vadd.f32 %v808_v57, %v714_v2  ;;  %v5393_v23 = vmul.f32 0.14433756, %v807_v20 }
 0x447   :  { %v812_v62 = vpop.f32.mrf.mxu1 }
 0x448   :  { %v813_v22 = vadd.f32 %v812_v62, %v5306_v32 }
 0x449   :  { %v814_v0 = vpop.f32.mrf.mxu1 }
 0x44a   :  { %v5351_v10 = vadd.f32 %v814_v0, %v714_v2  ;;  %v910_v25 = vmul.f32 0.14433756, %v813_v22 }
 0x44b   :  { %v818_v1 = vpop.f32.mrf.mxu1 }
 0x44c   :  { %v819_v24 = vadd.f32 %v818_v1, %v5306_v32 }
 0x44d   :  { %v820_v4 = vpop.f32.mrf.mxu1 }
 0x44e   :  { %v5348_v5 = vadd.f32 %v820_v4, %v714_v2  ;;  %v911_v26 = vmul.f32 0.14433756, %v819_v24 }
 0x44f   :  { %v4440_v7 = vpop.f32.mrf.mxu1 }
 0x450   :  { %4444 = vmatprep.subr.msk.mxu0 %vm912_vm7, %v5348_v5  ;;  %v5375_v19 = vadd.f32 %v4440_v7, %v718_v12 }
 0x451   :  { %v889_v11 = vpop.f32.mrf.mxu1  ;;  %4445 = vmatpush3.xpose.msk.msra.mxu0 %vm912_vm7, %v5348_v5 }
 0x452   :  { %4446 = vmatprep.subr.msk.mxu0 %vm912_vm7, %v5351_v10  ;;  %v5382_v21 = vadd.f32 %v889_v11, %v718_v12 }
 0x453   :  { %v4443_v8 = vpop.f32.mrf.mxu1 }
 0x454   :  { %v5363_v14 = vadd.f32 %v4443_v8, %v718_v12 }
 0x455   :  { %v899_v16 = vpop.f32.mrf.mxu1  ;;  %4447 = vmatpush3.xpose.msk.msra.mxu0 %vm912_vm7, %v5351_v10 }
 0x456   :  { %v5367_v17 = vadd.f32 %v899_v16, %v718_v12  ;;  %4448 = vmatprep.subr.msk.mxu0 %vm912_vm7, %v5361_v13  ;;  %4458 = vmatprep.subr.mxu1 %v5363_v14 }
 0x457   :  { %4459 = vmatpush3.msra.mxu1 %v5363_v14 }
 0x458   :  { %4460 = vmatprep.subr.mxu1 %v5367_v17 }
 0x459   :  { %4449 = vmatpush3.xpose.msk.msra.mxu0 %vm912_vm7, %v5361_v13  ;;  %4461 = vmatpush3.msra.mxu1 %v5367_v17 }
 0x45a   :  { %4450 = vmatprep.subr.msk.mxu0 %vm912_vm7, %v5373_v18  ;;  %4462 = vmatprep.subr.mxu1 %v5375_v19 }
 0x45b   :  { %4463 = vmatpush3.msra.mxu1 %v5375_v19 }
 0x45c   :  { %4464 = vmatprep.subr.mxu1 %v5382_v21 }
 0x45d   :  { %4451 = vmatpush3.xpose.msk.msra.mxu0 %vm912_vm7, %v5373_v18  ;;  %4465 = vmatpush3.msra.mxu1 %v5382_v21 }
 0x460   :  { %4453 = vmatmul.mubr.msk.f32.vlgmr.msra.gmra.mxu0 %vm912_vm7, %v5393_v23 }
 0x461   :  { %4455 = vmatprep.mubr.msk.f32.mxu0 %vm912_vm7, %v910_v25 }
 0x464   :  { %4456 = vmatmul.mubr.msk.f32.gmra.mxu0 %vm912_vm7, %v911_v26 }
 0x520   :  { %v4454_v15 = vpop.f32.mrf.mxu0 }
 0x521   :  { %v1009_v29 = vadd.f32 %v4454_v15, %v5406_v27 }
 0x522   :  { %v1003_v30 = vpop.f32.mrf.mxu0 }
 0x523   :  { %v1004_v32 = vadd.f32 %v1003_v30, %v5409_v28  ;;  %v1026_v34 = vsel %vm1022_vm8, %v1009_v29, -inf }
 0x524   :  { %1027 = vmax.xlane.f32.xlu1 %v1026_v34  ;;  %v4457_v35 = vpop.f32.mrf.mxu0 }
 0x525   :  { %v1019_v38 = vadd.f32 %v4457_v35, %v5413_v31  ;;  %v1023_v39 = vsel %vm1022_vm8, %v1004_v32, -inf }
 0x526   :  { %1024 = vmax.xlane.f32.xlu0 %v1023_v39  ;;  %v1013_v40 = vpop.f32.mrf.mxu0 }
 0x527   :  { %v1014_v41 = vadd.f32 %v1013_v40, %v5418_v37  ;;  %v1032_v43 = vsel %vm1022_vm8, %v1019_v38, -inf }
 0x528   :  { %1033 = vmax.xlane.f32.xlu1 %v1032_v43 }
 0x529   :  { %v1029_v47 = vsel %vm1022_vm8, %v1014_v41, -inf }
 0x52a   :  { %1030 = vmax.xlane.f32.xlu0 %v1029_v47 }
 0x5ad   :  { %v1028_v48 = vpop.xlane.xlu1 %1027 }
 0x5ae   :  { %v1036_v49 = vsub.f32 %v1009_v29, %v1028_v48 }
 0x5af   :  { %v1025_v50 = vpop.xlane.xlu0 %1024 }
 0x5b0   :  { %v1041_v51 = vmul.f32 1.442695, %v1036_v49  ;;  %v1035_v52 = vsub.f32 %v1004_v32, %v1025_v50 }
 0x5b1   :  { %v1034_v54 = vpop.xlane.xlu1 %1033 }
 0x5b2   :  { %4789 = vpow2.f32 %v1041_v51  ;;  %v1039_v55 = vmul.f32 1.442695, %v1035_v52  ;;  %v1038_v56 = vsub.f32 %v1019_v38, %v1034_v54 }
 0x5b3   :  { %v1031_v59 = vpop.xlane.xlu0 %1030 }
 0x5b4   :  { %4791 = vpow2.f32 %v1039_v55  ;;  %v1045_v42 = vmul.f32 1.442695, %v1038_v56  ;;  %v1037_v61 = vsub.f32 %v1014_v41, %v1031_v59 }
 0x5b6   :  { %4793 = vpow2.f32 %v1045_v42  ;;  %v1043_v53 = vmul.f32 1.442695, %v1037_v61 }
 0x5b8   :  { %4795 = vpow2.f32 %v1043_v53 }
 0x5bf   :  { %v4790_v3 = vpop.eup %4789 }
 0x5c0   :  { %v1050_v57 = vsel %vm1022_vm8, %v4790_v3, 0.0 }
 0x5c1   :  { %v4792_v62 = vpop.eup %4791  ;;  %1051 = vadd.xlane.f32.xlu1 %v1050_v57 }
 0x5c2   :  { %v1047_v0 = vsel %vm1022_vm8, %v4792_v62, 0.0 }
 0x5c3   :  { %v4794_v1 = vpop.eup %4793  ;;  %1048 = vadd.xlane.f32.xlu0 %v1047_v0 }
 0x5c4   :  { %v1056_v2 = vsel %vm1022_vm8, %v4794_v1, 0.0 }
 0x5c5   :  { %v4796_v4 = vpop.eup %4795  ;;  %1057 = vadd.xlane.f32.xlu1 %v1056_v2 }
 0x5c6   :  { %v1053_v7 = vsel %vm1022_vm8, %v4796_v4, 0.0 }
 0x5c7   :  { %1054 = vadd.xlane.f32.xlu0 %v1053_v7 }
 0x5d6   :  { %1176 = vrot.lane.b32.xlu1 %v5351_v10, %s4966_s2 }
 0x5da   :  { %1174 = vrot.lane.b32.xlu1 %v5361_v13, %s4966_s2 }
 0x5dd   :  { %1178 = vrot.lane.b32.xlu0 %v5348_v5, %s4966_s2 }
 0x5de   :  { %1172 = vrot.lane.b32.xlu1 %v5373_v18, %s4966_s2 }
 0x5e1   :  { %1164 = vrot.lane.b32.xlu0 %v5309_v36, %s4966_s2 }
 0x5e2   :  { %1166 = vrot.lane.b32.xlu1 %v5393_v23, %s4966_s2 }
 0x5e5   :  { %1168 = vrot.lane.b32.xlu0 %v910_v25, %s4966_s2 }
 0x5e6   :  { %1170 = vrot.lane.b32.xlu1 %v911_v26, %s4966_s2 }
 0x64a   :  { %v1052_v10 = vpop.xlane.xlu1 %1051 }
 0x64b   :  { %4797 = vrcp.f32 %v1052_v10 }
 0x64c   :  { %v1049_v11 = vpop.xlane.xlu0 %1048 }
 0x64d   :  { %4799 = vrcp.f32 %v1049_v11 }
 0x64e   :  { %v1058_v12 = vpop.xlane.xlu1 %1057 }
 0x64f   :  { %4801 = vrcp.f32 %v1058_v12 }
 0x650   :  { %v1055_v5 = vpop.xlane.xlu0 %1054 }
 0x651   :  { %4803 = vrcp.f32 %v1055_v5 }
 0x652   :  { %v1177_v36 = vpop.permute.xlu1 %1176 }
 0x654   :  { %v1179_v8 = vpop.permute.xlu0 %1178 }
 0x655   :  { %4472 = vmatprep.subr.msk.mxu1 %vm912_vm7, %v1179_v8 }
 0x656   :  { %v1175_v24 = vpop.permute.xlu1 %1174 }
 0x658   :  { %v4798_v13 = vpop.eup %4797  ;;  %v1165_v15 = vpop.permute.xlu0 %1164 }
 0x659   :  { %v1064_v20 = vmul.f32 %v4798_v13, %v4790_v3 }
 0x65a   :  { %v4800_v16 = vpop.eup %4799  ;;  %v1173_v29 = vpop.permute.xlu1 %1172 }
 0x65b   :  { %v1063_v18 = vmul.f32 %v4800_v16, %v4792_v62 }
 0x65c   :  { %v4802_v22 = vpop.eup %4801  ;;  %v1169_v32 = vpop.permute.xlu0 %1168 }
 0x65d   :  { %4466 = vmatprep.mubr.msk.f32.mxu1 %vm1022_vm8, %v1063_v18  ;;  %v1066_v26 = vmul.f32 %v4802_v22, %v4794_v1 }
 0x65e   :  { %v4804_v23 = vpop.eup %4803  ;;  %4467 = vmatmul.mubr.msk.f32.vlgmr.msra.gmra.mxu1 %vm1022_vm8, %v1064_v20  ;;  %v1167_v30 = vpop.permute.xlu1 %1166 }
 0x65f   :  { %4473 = vmatpush3.xpose.msk.msra.mxu1 %vm912_vm7, %v1179_v8  ;;  %v1065_v25 = vmul.f32 %v4804_v23, %v4796_v4 }
 0x660   :  { %4474 = vmatprep.subr.msk.mxu1 %vm912_vm7, %v1177_v36 }
 0x661   :  { %4469 = vmatprep.mubr.msk.f32.mxu1 %vm1022_vm8, %v1065_v25 }
 0x662   :  { %4470 = vmatmul.mubr.msk.f32.gmra.mxu1 %vm1022_vm8, %v1066_v26  ;;  %v1171_v34 = vpop.permute.xlu1 %1170 }
 0x663   :  { %4475 = vmatpush3.xpose.msk.msra.mxu1 %vm912_vm7, %v1177_v36  ;;  %4480 = vmatprep.mubr.msk.f32.mxu1 %vm912_vm7, %v1165_v15 }
 0x664   :  { %4476 = vmatprep.subr.msk.mxu1 %vm912_vm7, %v1175_v24 }
 0x667   :  { %4477 = vmatpush3.xpose.msk.msra.mxu1 %vm912_vm7, %v1175_v24 }
 0x668   :  { %4478 = vmatprep.subr.msk.mxu1 %vm912_vm7, %v1173_v29 }
 0x66b   :  { %4479 = vmatpush3.xpose.msk.msra.mxu1 %vm912_vm7, %v1173_v29 }
 0x66e   :  { %4481 = vmatmul.mubr.msk.f32.vlgmr.msra.gmra.mxu1 %vm912_vm7, %v1167_v30  ;;  %v1473_v30 = vld [vmem:[%s5495_s6 + $0x78] sm:$0xff] }
 0x66f   :  { %4483 = vmatprep.mubr.msk.f32.mxu1 %vm912_vm7, %v1169_v32  ;;  %v1472_v32 = vld [vmem:[%s5495_s6 + $0x70] sm:$0xff] }
 0x672   :  { %4484 = vmatmul.mubr.msk.f32.gmra.mxu1 %vm912_vm7, %v1171_v34  ;;  %v1471_v34 = vld [vmem:[%s5495_s6 + $0x68] sm:$0xff] }
 0x673   :  { %1756 = vmatprep.mubr.f32.mxu1 %v4961_v33 }
 0x71e   :  { %v5460_v35 = vpop.f32.mrf.mxu1 }
 0x720   :  { %v5462_v38 = vpop.f32.mrf.mxu1 }
 0x722   :  { %v5464_v39 = vpop.f32.mrf.mxu1 }
 0x724   :  { %v5466_v40 = vpop.f32.mrf.mxu1 }
 0x72e   :  { %v4482_v41 = vpop.f32.mrf.mxu1 }
 0x72f   :  { %v1268_v43 = vadd.f32 %v4482_v41, %v5406_v27  ;;  %v1470_v41 = vld [vmem:[%s5495_s6 + $0x60] sm:$0xff] }
 0x730   :  { %v1262_v47 = vpop.f32.mrf.mxu1 }
 0x731   :  { %v1263_v48 = vadd.f32 %v1262_v47, %v5409_v28  ;;  %v1284_v49 = vsel %vm1022_vm8, %v1268_v43, -inf  ;;  %v1468_v47 = vld [vmem:[%s5495_s6 + $0x50] sm:$0xff] }
 0x732   :  { %1285 = vmax.xlane.f32.xlu1 %v1284_v49  ;;  %v4485_v50 = vpop.f32.mrf.mxu1  ;;  %v1466_v49 = vld [vmem:[%s5495_s6 + $0x40] sm:$0xff] }
 0x733   :  { %v1281_v51 = vsel %vm1022_vm8, %v1263_v48, -inf  ;;  %v1278_v55 = vadd.f32 %v4485_v50, %v5413_v31  ;;  %v1465_v50 = vld [vmem:[%s5495_s6 + $0x38] sm:$0xff] }
 0x734   :  { %1282 = vmax.xlane.f32.xlu0 %v1281_v51  ;;  %v1272_v52 = vpop.f32.mrf.mxu1  ;;  %v1464_v51 = vld [vmem:[%s5495_s6 + $0x30] sm:$0xff] }
 0x735   :  { %v1273_v54 = vadd.f32 %v1272_v52, %v5418_v37  ;;  %v1290_v27 = vsel %vm1022_vm8, %v1278_v55, -inf  ;;  %v1463_v52 = vld [vmem:[%s5495_s6 + $0x28] sm:$0xff] }
 0x737   :  { %v1287_v56 = vsel %vm1022_vm8, %v1273_v54, -inf }
 0x738   :  { %1288 = vmax.xlane.f32.xlu0 %v1287_v56  ;;  %v1460_v56 = vld [vmem:[%s5495_s6 + $0x10] sm:$0xff] }
 0x73c   :  { %1291 = vmax.xlane.f32.xlu0 %v1290_v27  ;;  %v1459_v27 = vld [vmem:[%s5495_s6 + $0x8] sm:$0xff] }
 0x7bb   :  { %v1286_v59 = vpop.xlane.xlu1 %1285 }
 0x7bc   :  { %v1294_v28 = vsub.f32 %v1268_v43, %v1286_v59  ;;  %v1469_v43 = vld [vmem:[%s5495_s6 + $0x58] sm:$0xff]  ;;  %v1458_v59 = vld [vmem:[%s5495_s6] sm:$0xff] }
 0x7bd   :  { %v1283_v42 = vpop.xlane.xlu0 %1282 }
 0x7be   :  { %v1299_v61 = vmul.f32 1.442695, %v1294_v28  ;;  %v1293_v53 = vsub.f32 %v1263_v48, %v1283_v42  ;;  %v1467_v48 = vld [vmem:[%s5495_s6 + $0x48] sm:$0xff] }
 0x7c0   :  { %4805 = vpow2.f32 %v1299_v61  ;;  %v1297_v3 = vmul.f32 1.442695, %v1293_v53 }
 0x7c1   :  { %v1289_v57 = vpop.xlane.xlu0 %1288 }
 0x7c2   :  { %4807 = vpow2.f32 %v1297_v3  ;;  %v1295_v62 = vsub.f32 %v1273_v54, %v1289_v57  ;;  %v1462_v54 = vld [vmem:[%s5495_s6 + $0x20] sm:$0xff] }
 0x7c4   :  { %v1301_v0 = vmul.f32 1.442695, %v1295_v62 }
 0x7c5   :  { %v1292_v37 = vpop.xlane.xlu0 %1291 }
 0x7c6   :  { %4809 = vpow2.f32 %v1301_v0  ;;  %v1296_v31 = vsub.f32 %v1278_v55, %v1292_v37  ;;  %v1461_v55 = vld [vmem:[%s5495_s6 + $0x18] sm:$0xff] }
 0x7c8   :  { %v1303_v1 = vmul.f32 1.442695, %v1296_v31 }
 0x7ca   :  { %4811 = vpow2.f32 %v1303_v1 }
 0x7cd   :  { %v4806_v2 = vpop.eup %4805 }
 0x7ce   :  { %v1308_v4 = vsel %vm1022_vm8, %v4806_v2, 0.0 }
 0x7cf   :  { %v4808_v7 = vpop.eup %4807  ;;  %1309 = vadd.xlane.f32.xlu1 %v1308_v4 }
 0x7d0   :  { %v1305_v10 = vsel %vm1022_vm8, %v4808_v7, 0.0 }
 0x7d1   :  { %1306 = vadd.xlane.f32.xlu0 %v1305_v10 }
 0x7d3   :  { %v4810_v11 = vpop.eup %4809 }
 0x7d4   :  { %v1311_v12 = vsel %vm1022_vm8, %v4810_v11, 0.0 }
 0x7d5   :  { %1312 = vadd.xlane.f32.xlu0 %v1311_v12 }
 0x7d7   :  { %v4812_v5 = vpop.eup %4811 }
 0x7d8   :  { %v1314_v8 = vsel %vm1022_vm8, %v4812_v5, 0.0 }
 0x7d9   :  { %1315 = vadd.xlane.f32.xlu1 %v1314_v8 }
 0x7ea   :  { %1333 = vrot.lane.b32.xlu1 %v5367_v17, %s4966_s2 }
 0x7eb   :  { %1335 = vrot.lane.b32.xlu0 %v5363_v14, %s4966_s2 }
 0x7ee   :  { %1331 = vrot.lane.b32.xlu1 %v5375_v19, %s4966_s2 }
 0x7f2   :  { %1329 = vrot.lane.b32.xlu1 %v5382_v21, %s4966_s2 }
 0x858   :  { %v1310_v36 = vpop.xlane.xlu1 %1309 }
 0x85a   :  { %v1307_v13 = vpop.xlane.xlu0 %1306 }
 0x85b   :  { %4813 = vrcp.f32 %v1307_v13 }
 0x85c   :  { %4815 = vrcp.f32 %v1310_v36 }
 0x85e   :  { %v1313_v16 = vpop.xlane.xlu0 %1312 }
 0x85f   :  { %4817 = vrcp.f32 %v1313_v16 }
 0x862   :  { %v1316_v18 = vpop.xlane.xlu1 %1315  ;;  %v1336_v20 = vpop.permute.xlu0 %1335 }
 0x863   :  { %4819 = vrcp.f32 %v1316_v18  ;;  %4486 = vmatprep.subr.mxu0 %v1336_v20 }
 0x864   :  { %4487 = vmatpush3.msra.mxu0 %v1336_v20 }
 0x866   :  { %v1334_v17 = vpop.permute.xlu1 %1333 }
 0x867   :  { %4488 = vmatprep.subr.mxu0 %v1334_v17 }
 0x868   :  { %v4814_v14 = vpop.eup %4813  ;;  %4489 = vmatpush3.msra.mxu0 %v1334_v17 }
 0x869   :  { %v1321_v22 = vmul.f32 %v4814_v14, %v4808_v7  ;;  %v4816_v21 = vpop.eup %4815 }
 0x86a   :  { %v1332_v19 = vpop.permute.xlu1 %1331  ;;  %v1322_v25 = vmul.f32 %v4816_v21, %v4806_v2 }
 0x86b   :  { %4490 = vmatprep.subr.mxu0 %v1332_v19  ;;  %4494 = vmatprep.mubr.msk.f32.mxu0 %vm1022_vm8, %v1321_v22 }
 0x86c   :  { %4491 = vmatpush3.msra.mxu0 %v1332_v19  ;;  %v4818_v23 = vpop.eup %4817 }
 0x86d   :  { %v1323_v15 = vmul.f32 %v4818_v23, %v4810_v11 }
 0x86e   :  { %v1330_v24 = vpop.permute.xlu1 %1329 }
 0x86f   :  { %4492 = vmatprep.subr.mxu0 %v1330_v24 }
 0x870   :  { %v4820_v26 = vpop.eup %4819  ;;  %4493 = vmatpush3.msra.mxu0 %v1330_v24 }
 0x871   :  { %4495 = vmatmul.mubr.msk.f32.vlgmr.msra.gmra.mxu0 %vm1022_vm8, %v1322_v25  ;;  %v1324_v29 = vmul.f32 %v4820_v26, %v4812_v5  ;;  %4500 = vmatprep.subr.mxu0 %v1473_v30 }
 0x872   :  { %4497 = vmatprep.mubr.msk.f32.mxu0 %vm1022_vm8, %v1323_v15  ;;  %4501 = vmatpush3.msra.mxu0 %v1473_v30 }
 0x873   :  { %4502 = vmatprep.subr.mxu0 %v1472_v32 }
 0x874   :  { %4503 = vmatpush3.msra.mxu0 %v1472_v32 }
 0x875   :  { %4498 = vmatmul.mubr.msk.f32.gmra.mxu0 %vm1022_vm8, %v1324_v29  ;;  %4504 = vmatprep.subr.mxu0 %v1471_v34 }
 0x876   :  { %4505 = vmatpush3.msra.mxu0 %v1471_v34 }
 0x877   :  { %4506 = vmatprep.subr.mxu0 %v1470_v41 }
 0x878   :  { %4507 = vmatpush3.msra.mxu0 %v1470_v41 }
 0x879   :  { %4508 = vmatprep.subr.mxu0 %v1469_v43 }
 0x87a   :  { %4509 = vmatpush3.msra.mxu0 %v1469_v43 }
 0x87b   :  { %4510 = vmatprep.subr.mxu0 %v1468_v47 }
 0x87c   :  { %4511 = vmatpush3.msra.mxu0 %v1468_v47 }
 0x87d   :  { %4512 = vmatprep.subr.mxu0 %v1467_v48 }
 0x87e   :  { %4513 = vmatpush3.msra.mxu0 %v1467_v48 }
 0x87f   :  { %4514 = vmatprep.subr.mxu0 %v1466_v49 }
 0x880   :  { %4515 = vmatpush3.msra.mxu0 %v1466_v49 }
 0x881   :  { %4516 = vmatprep.subr.mxu0 %v1465_v50 }
 0x882   :  { %4517 = vmatpush3.msra.mxu0 %v1465_v50 }
 0x883   :  { %4518 = vmatprep.subr.mxu0 %v1464_v51 }
 0x884   :  { %4519 = vmatpush3.msra.mxu0 %v1464_v51 }
 0x885   :  { %4520 = vmatprep.subr.mxu0 %v1463_v52 }
 0x886   :  { %4521 = vmatpush3.msra.mxu0 %v1463_v52  ;;  %v1667_v52 = vld [vmem:[%s5558_s14 + $0xb8] sm:$0xff] }
 0x887   :  { %4522 = vmatprep.subr.mxu0 %v1462_v54  ;;  %1700 = vmatprep.subr.mxu1 %v1667_v52  ;;  %v2007_v52 = vld [vmem:[%s5626_s28 + $0x50] sm:$0xff] }
 0x888   :  { %4523 = vmatpush3.msra.mxu0 %v1462_v54  ;;  %v1666_v54 = vld [vmem:[%s5558_s14 + $0xb0] sm:$0xff] }
 0x889   :  { %4524 = vmatprep.subr.mxu0 %v1461_v55  ;;  %1701 = vmatpush1.msra.mxu1 %v1666_v54  ;;  %v2006_v54 = vld [vmem:[%s5626_s28 + $0x48] sm:$0xff] }
 0x88a   :  { %4525 = vmatpush3.msra.mxu0 %v1461_v55  ;;  %v1665_v55 = vld [vmem:[%s5558_s14 + $0xa8] sm:$0xff] }
 0x88b   :  { %4526 = vmatprep.subr.mxu0 %v1460_v56  ;;  %1702 = vmatprep.subr.mxu1 %v1665_v55  ;;  %v2005_v55 = vld [vmem:[%s5626_s28 + $0x40] sm:$0xff] }
 0x88c   :  { %4527 = vmatpush3.msra.mxu0 %v1460_v56  ;;  %v1664_v56 = vld [vmem:[%s5558_s14 + $0xa0] sm:$0xff] }
 0x88d   :  { %4528 = vmatprep.subr.mxu0 %v1459_v27  ;;  %1703 = vmatpush1.msra.mxu1 %v1664_v56  ;;  %v2004_v56 = vld [vmem:[%s5626_s28 + $0x38] sm:$0xff] }
 0x88e   :  { %4529 = vmatpush3.msra.mxu0 %v1459_v27  ;;  %v1663_v27 = vld [vmem:[%s5558_s14 + $0x98] sm:$0xff] }
 0x88f   :  { %4530 = vmatprep.subr.mxu0 %v1458_v59  ;;  %1704 = vmatprep.subr.mxu1 %v1663_v27  ;;  %v2003_v27 = vld [vmem:[%s5626_s28 + $0x30] sm:$0xff] }
 0x890   :  { %4531 = vmatpush3.msra.mxu0 %v1458_v59  ;;  %v1662_v59 = vld [vmem:[%s5558_s14 + $0x90] sm:$0xff] }
 0x891   :  { %1705 = vmatpush1.msra.mxu1 %v1662_v59  ;;  %v2002_v59 = vld [vmem:[%s5626_s28 + $0x28] sm:$0xff] }
 0x931   :  { %v4496_v28 = vpop.f32.mrf.mxu0 }
 0x933   :  { %v1419_v42 = vpop.f32.mrf.mxu0 }
 0x934   :  { %v4749_v61 = vpack.i.bf16 %v4496_v28, %v1419_v42  ;;  %v1661_v28 = vld [vmem:[%s5558_s14 + $0x88] sm:$0xff]  ;;  %v1660_v42 = vld [vmem:[%s5558_s14 + $0x80] sm:$0xff] }
 0x935   :  { %v4499_v53 = vpop.f32.mrf.mxu0  ;;  %1706 = vmatprep.subr.mxu1 %v1661_v28  ;;  %v2001_v28 = vld [vmem:[%s5626_s28 + $0x20] sm:$0xff] }
 0x936   :  { %4750 = vrot.lane.b32.xlu0 %v4749_v61, %s4966_s2  ;;  %1707 = vmatpush1.msra.mxu1 %v1660_v42  ;;  %v1659_v61 = vld [vmem:[%s5558_s14 + $0x78] sm:$0xff] }
 0x937   :  { %v1429_v3 = vpop.f32.mrf.mxu0  ;;  %1708 = vmatprep.subr.mxu1 %v1659_v61  ;;  %v2000_v42 = vld [vmem:[%s5626_s28 + $0x18] sm:$0xff]  ;;  %v1999_v61 = vld [vmem:[%s5626_s28 + $0x10] sm:$0xff] }
 0x938   :  { %v4754_v57 = vpack.i.bf16 %v4499_v53, %v1429_v3  ;;  %v1658_v53 = vld [vmem:[%s5558_s14 + $0x70] sm:$0xff]  ;;  %v1657_v3 = vld [vmem:[%s5558_s14 + $0x68] sm:$0xff] }
 0x939   :  { %1709 = vmatpush1.msra.mxu1 %v1658_v53  ;;  %v1998_v53 = vld [vmem:[%s5626_s28 + $0x8] sm:$0xff] }
 0x93a   :  { %4755 = vrot.lane.b32.xlu1 %v4754_v57, %s4966_s2  ;;  %1710 = vmatprep.subr.mxu1 %v1657_v3  ;;  %v1656_v57 = vld [vmem:[%s5558_s14 + $0x60] sm:$0xff] }
 0x93b   :  { %1711 = vmatpush1.msra.mxu1 %v1656_v57  ;;  %v1997_v3 = vld [vmem:[%s5626_s28] sm:$0xff]  ;;  %v2020_v57 = vld [vmem:[%s5626_s28 + $0xb8] sm:$0xff] }
 0x9a8   :  { %v4751_v62 = vpop.permute.xlu0 %4750 }
 0x9a9   :  { %v4753_v0 = vunpack.i.h.bf16 %v4751_v62  ;;  %v4752_v37 = vunpack.i.l.bf16 %v4751_v62  ;;  %v1655_v62 = vld [vmem:[%s5558_s14 + $0x58] sm:$0xff] }
 0x9aa   :  { %1712 = vmatprep.subr.mxu1 %v1655_v62  ;;  %v2019_v62 = vld [vmem:[%s5626_s28 + $0xb0] sm:$0xff] }
 0x9ab   :  { %v1454_v31 = vsel %vm912_vm7, %v5462_v38, %v4752_v37  ;;  %v1455_v1 = vsel %vm912_vm7, %v5460_v35, %v4753_v0  ;;  %v3975_v35 = vld [vmem:[%s5527_s10] ss:$0 sm:$0xff]  ;;  %v1654_v0 = vld [vmem:[%s5558_s14 + $0x50] sm:$0xff]  ;;  %v1653_v37 = vld [vmem:[%s5558_s14 + $0x48] sm:$0xff] }
 0x9ac   :  { %4532 = vmatprep.mubr.f32.mxu0 %v1454_v31  ;;  %v4756_v2 = vpop.permute.xlu1 %4755  ;;  %1713 = vmatpush1.msra.mxu1 %v1654_v0  ;;  %v1652_v31 = vld [vmem:[%s5558_s14 + $0x40] sm:$0xff]  ;;  %v2018_v0 = vld [vmem:[%s5626_s28 + $0xa8] sm:$0xff] }
 0x9ad   :  { %v4758_v4 = vunpack.i.h.bf16 %v4756_v2  ;;  %v4757_v7 = vunpack.i.l.bf16 %v4756_v2  ;;  %4533 = vmatmul.mubr.f32.vlgmr.msra.gmra.mxu0 %v1455_v1  ;;  %1714 = vmatprep.subr.mxu1 %v1653_v37  ;;  %v1651_v1 = vld [vmem:[%s5558_s14 + $0x38] sm:$0xff]  ;;  %v1650_v2 = vld [vmem:[%s5558_s14 + $0x30] sm:$0xff]  ;;  %v2017_v37 = vld [vmem:[%s5626_s28 + $0xa0] sm:$0xff] }
 0x9ae   :  { %1715 = vmatpush1.msra.mxu1 %v1652_v31  ;;  %v2016_v31 = vld [vmem:[%s5626_s28 + $0x98] sm:$0xff] }
 0x9af   :  { %v1456_v10 = vsel %vm912_vm7, %v5466_v40, %v4757_v7  ;;  %v1457_v11 = vsel %vm912_vm7, %v5464_v39, %v4758_v4  ;;  %1716 = vmatprep.subr.mxu1 %v1651_v1  ;;  %v1649_v4 = vld [vmem:[%s5558_s14 + $0x28] sm:$0xff]  ;;  %v1648_v7 = vld [vmem:[%s5558_s14 + $0x20] sm:$0xff]  ;;  %v2015_v1 = vld [vmem:[%s5626_s28 + $0x90] sm:$0xff] }
 0x9b0   :  { %4535 = vmatprep.mubr.f32.mxu0 %v1456_v10  ;;  %1717 = vmatpush1.msra.mxu1 %v1650_v2  ;;  %v1647_v10 = vld [vmem:[%s5558_s14 + $0x18] sm:$0xff]  ;;  %v2014_v2 = vld [vmem:[%s5626_s28 + $0x88] sm:$0xff] }
 0x9b1   :  { %4536 = vmatmul.mubr.f32.gmra.mxu0 %v1457_v11  ;;  %1718 = vmatprep.subr.mxu1 %v1649_v4  ;;  %v1646_v11 = vld [vmem:[%s5558_s14 + $0x10] sm:$0xff]  ;;  %v2013_v4 = vld [vmem:[%s5626_s28 + $0x80] sm:$0xff] }
 0x9b2   :  { %2334 = vmatprep.mubr.f32.mxu0 %v4961_v33  ;;  %1719 = vmatpush1.msra.mxu1 %v1648_v7  ;;  %v1668_v7 = vld [vmem:[%s5678_s4] sm:$0x3] }
 0x9b3   :  { %1720 = vmatprep.subr.mxu1 %v1647_v10  ;;  %v1673_v10 = vrot.slane %v1668_v7, %v5241_v46 }
 0x9b4   :  { %1721 = vmatpush1.msra.mxu1 %v1646_v11  ;;  %v1677_v11 = vrot.slane %v1668_v7, %v5345_v63 }
 0xa6d   :  { %v4534_v38 = vpop.f32.mrf.mxu0 }
 0xa6e   :  { %v1553_v12 = vadd.f32 %v4534_v38, %v3975_v35  ;;  %v1644_v38 = vld [vmem:[%s5558_s14] sm:$0xff] }
 0xa6f   :  { %v1547_v5 = vpop.f32.mrf.mxu0 }
 0xa70   :  { %v1548_v8 = vadd.f32 %v3975_v35, %v1547_v5  ;;  %v1567_v40 = vadd.f32 %v1553_v12, %v5317_v58 }
 0xa71   :  { %v4537_v13 = vpop.f32.mrf.mxu0 }
 0xa72   :  { %v1575_v39 = vsel %vm127_vm0, %v1567_v40, 0.0  ;;  %v1566_v36 = vadd.f32 %v1548_v8, %v5272_v9  ;;  %v1563_v18 = vadd.f32 %v4537_v13, %v3975_v35 }
 0xa73   :  { %1576 = vadd.xlane.f32.xlu1 %v1575_v39  ;;  %v1557_v16 = vpop.f32.mrf.mxu0 }
 0xa74   :  { %v1558_v20 = vadd.f32 %v3975_v35, %v1557_v16  ;;  %v1572_v17 = vsel %vm127_vm0, %v1566_v36, 0.0  ;;  %v1569_v19 = vadd.f32 %v1563_v18, %v5332_v44  ;;  %v1645_v35 = vld [vmem:[%s5558_s14 + $0x8] sm:$0xff] }
 0xa75   :  { %1573 = vadd.xlane.f32.xlu0 %v1572_v17  ;;  %1722 = vmatprep.subr.mxu1 %v1645_v35 }
 0xa76   :  { %v1568_v14 = vadd.f32 %v1558_v20, %v5325_v60  ;;  %v1581_v58 = vsel %vm127_vm0, %v1569_v19, 0.0  ;;  %1723 = vmatpush1.msra.mxu1 %v1644_v38 }
 0xa77   :  { %2040 = vmatprep.subr.mxu1 %v4961_v33 }
 0xa78   :  { %v1578_v22 = vsel %vm127_vm0, %v1568_v14, 0.0 }
 0xa79   :  { %1579 = vadd.xlane.f32.xlu0 %v1578_v22 }
 0xa7d   :  { %1582 = vadd.xlane.f32.xlu0 %v1581_v58 }
 0xafc   :  { %v1577_v21 = vpop.xlane.xlu1 %1576 }
 0xafd   :  { %v1585_v23 = vmul.f32 0.010416667, %v1577_v21 }
 0xafe   :  { %v1574_v9 = vpop.xlane.xlu0 %1573 }
 0xaff   :  { %v5538_v24 = vsub.f32 %v1567_v40, %v1585_v23  ;;  %v1584_v25 = vmul.f32 0.010416667, %v1574_v9  ;;  %v3976_v23 = vld [vmem:[%s5591_s19] ss:$0 sm:$0xff] }
 0xb01   :  { %v5540_v26 = vsub.f32 %v1566_v36, %v1584_v25  ;;  %v1593_v15 = vmul.f32 %v5538_v24, %v5538_v24 }
 0xb02   :  { %v1580_v60 = vpop.xlane.xlu0 %1579 }
 0xb03   :  { %v1586_v29 = vmul.f32 0.010416667, %v1580_v60  ;;  %v1599_v30 = vsel %vm127_vm0, %v1593_v15, 0.0  ;;  %v1592_v44 = vmul.f32 %v5540_v26, %v5540_v26  ;;  %v3977_v15 = vld [vmem:[%s5596_s23] ss:$0 sm:$0xff] }
 0xb04   :  { %1600 = vadd.xlane.f32.xlu1 %v1599_v30 }
 0xb05   :  { %v5547_v32 = vsub.f32 %v1568_v14, %v1586_v29  ;;  %v1596_v34 = vsel %vm127_vm0, %v1592_v44, 0.0 }
 0xb06   :  { %1597 = vadd.xlane.f32.xlu0 %v1596_v34  ;;  %v1583_v41 = vpop.xlane.xlu0 %1582 }
 0xb07   :  { %v1587_v43 = vmul.f32 0.010416667, %v1583_v41  ;;  %v1594_v47 = vmul.f32 %v5547_v32, %v5547_v32 }
 0xb09   :  { %v5552_v48 = vsub.f32 %v1569_v19, %v1587_v43  ;;  %v1602_v49 = vsel %vm127_vm0, %v1594_v47, 0.0  ;;  %v2012_v47 = vld [vmem:[%s5626_s28 + $0x78] sm:$0xff] }
 0xb0a   :  { %1603 = vadd.xlane.f32.xlu0 %v1602_v49  ;;  %v2010_v49 = vld [vmem:[%s5626_s28 + $0x68] sm:$0xff] }
 0xb0b   :  { %v1595_v50 = vmul.f32 %v5552_v48, %v5552_v48 }
 0xb0d   :  { %v1605_v51 = vsel %vm127_vm0, %v1595_v50, 0.0  ;;  %v2009_v50 = vld [vmem:[%s5626_s28 + $0x60] sm:$0xff] }
 0xb0e   :  { %1606 = vadd.xlane.f32.xlu1 %v1605_v51  ;;  %v2008_v51 = vld [vmem:[%s5626_s28 + $0x58] sm:$0xff] }
 0xb8d   :  { %v1601_v12 = vpop.xlane.xlu1 %1600 }
 0xb8e   :  { %v1609_v5 = vmul.f32 0.010416667, %v1601_v12 }
 0xb8f   :  { %v1598_v8 = vpop.xlane.xlu0 %1597 }
 0xb90   :  { %v1613_v40 = vadd.f32 1e-05, %v1609_v5  ;;  %v1608_v13 = vmul.f32 0.010416667, %v1598_v8 }
 0xb92   :  { %4821 = vrsqrt.f32 %v1613_v40  ;;  %v1612_v39 = vadd.f32 1e-05, %v1608_v13 }
 0xb93   :  { %v1604_v36 = vpop.xlane.xlu0 %1603 }
 0xb94   :  { %4823 = vrsqrt.f32 %v1612_v39  ;;  %v1610_v16 = vmul.f32 0.010416667, %v1604_v36 }
 0xb96   :  { %v1614_v18 = vadd.f32 1e-05, %v1610_v16 }
 0xb97   :  { %v1607_v20 = vpop.xlane.xlu1 %1606 }
 0xb98   :  { %4825 = vrsqrt.f32 %v1614_v18  ;;  %v1611_v17 = vmul.f32 0.010416667, %v1607_v20 }
 0xb9a   :  { %v1615_v14 = vadd.f32 1e-05, %v1611_v17 }
 0xb9c   :  { %4827 = vrsqrt.f32 %v1615_v14 }
 0xb9f   :  { %v4822_v22 = vpop.eup %4821 }
 0xba0   :  { %v1621_v21 = vmul.f32 %v4822_v22, %v5538_v24 }
 0xba1   :  { %v4824_v19 = vpop.eup %4823 }
 0xba2   :  { %v1620_v58 = vmul.f32 %v4824_v19, %v5540_v26  ;;  %v1631_v29 = vmul.f32 %v3976_v23, %v1621_v21 }
 0xba4   :  { %v1630_v9 = vmul.f32 %v3976_v23, %v1620_v58  ;;  %v5608_v34 = vadd.f32 %v3977_v15, %v1631_v29 }
 0xba5   :  { %v4826_v25 = vpop.eup %4825 }
 0xba6   :  { %v5602_v60 = vadd.f32 %v3977_v15, %v1630_v9  ;;  %v1622_v30 = vmul.f32 %v4826_v25, %v5547_v32 }
 0xba8   :  { %3978 = vmatmul.mubr.msk.f32.vlgmr.msra.gmra.mxu1 %vm127_vm0, %v5602_v60  ;;  %v1632_v26 = vmul.f32 %v3976_v23, %v1622_v30 }
 0xba9   :  { %v4828_v44 = vpop.eup %4827  ;;  %1762 = vmatprep.mubr.f32.mxu1 %v4961_v33  ;;  %2041 = vmatpush1.msra.mxu1 %v2012_v47 }
 0xbaa   :  { %v1623_v24 = vmul.f32 %v4828_v44, %v5552_v48  ;;  %v5614_v41 = vadd.f32 %v3977_v15, %v1632_v26  ;;  %2042 = vmatprep.subr.mxu1 %v4961_v33  ;;  %v2011_v48 = vld [vmem:[%s5626_s28 + $0x70] sm:$0xff] }
 0xbab   :  { %2043 = vmatpush1.msra.mxu1 %v2011_v48 }
 0xbac   :  { %3979 = vmatmul.mubr.msk.f32.gmra.mxu1 %vm127_vm0, %v5608_v34  ;;  %v1633_v43 = vmul.f32 %v3976_v23, %v1623_v24  ;;  %2044 = vmatprep.subr.mxu1 %v4961_v33 }
 0xbad   :  { %1768 = vmatprep.mubr.f32.mxu1 %v4961_v33  ;;  %2045 = vmatpush1.msra.mxu1 %v2010_v49 }
 0xbae   :  { %v5619_v32 = vadd.f32 %v3977_v15, %v1633_v43  ;;  %2046 = vmatprep.subr.mxu1 %v4961_v33 }
 0xbaf   :  { %2047 = vmatpush1.msra.mxu1 %v2009_v50 }
 0xbb0   :  { %3980 = vmatmul.mubr.msk.f32.gmra.mxu1 %vm127_vm0, %v5614_v41  ;;  %2048 = vmatprep.subr.mxu1 %v4961_v33 }
 0xbb1   :  { %1774 = vmatprep.mubr.f32.mxu1 %v4961_v33  ;;  %2049 = vmatpush1.msra.mxu1 %v2008_v51 }
 0xbb2   :  { %2050 = vmatprep.subr.mxu1 %v4961_v33 }
 0xbb3   :  { %2051 = vmatpush1.msra.mxu1 %v2007_v52 }
 0xbb4   :  { %3981 = vmatmul.mubr.msk.f32.gmra.mxu1 %vm127_vm0, %v5619_v32  ;;  %2052 = vmatprep.subr.mxu1 %v4961_v33 }
 0xbb5   :  { %2053 = vmatpush1.msra.mxu1 %v2006_v54 }
 0xbb6   :  { %2054 = vmatprep.subr.mxu1 %v4961_v33 }
 0xbb7   :  { %2055 = vmatpush1.msra.mxu1 %v2005_v55 }
 0xbb8   :  { %2056 = vmatprep.subr.mxu1 %v4961_v33 }
 0xbb9   :  { %2057 = vmatpush1.msra.mxu1 %v2004_v56 }
 0xbba   :  { %2058 = vmatprep.subr.mxu1 %v4961_v33 }
 0xbbb   :  { %2059 = vmatpush1.msra.mxu1 %v2003_v27 }
 0xbbc   :  { %2060 = vmatprep.subr.mxu1 %v4961_v33 }
 0xbbd   :  { %2061 = vmatpush1.msra.mxu1 %v2002_v59 }
 0xbbe   :  { %2062 = vmatprep.subr.mxu1 %v4961_v33 }
 0xbbf   :  { %2063 = vmatpush1.msra.mxu1 %v2001_v28 }
 0xbc0   :  { %2064 = vmatprep.subr.mxu1 %v4961_v33 }
 0xbc1   :  { %2065 = vmatpush1.msra.mxu1 %v2000_v42 }
 0xbc2   :  { %2066 = vmatprep.subr.mxu1 %v4961_v33 }
 0xbc3   :  { %2067 = vmatpush1.msra.mxu1 %v1999_v61 }
 0xbc4   :  { %2068 = vmatprep.subr.mxu1 %v4961_v33 }
 0xbc5   :  { %2069 = vmatpush1.msra.mxu1 %v1998_v53 }
 0xbc6   :  { %2070 = vmatprep.subr.mxu1 %v4961_v33 }
 0xbc7   :  { %2071 = vmatpush1.msra.mxu1 %v1997_v3 }
 0xbc8   :  { %2088 = vmatprep.subr.mxu1 %v4961_v33 }
 0xbc9   :  { %2089 = vmatpush2.msra.mxu1 %v2020_v57 }
 0xbca   :  { %2090 = vmatprep.subr.mxu1 %v4961_v33 }
 0xbcb   :  { %2091 = vmatpush2.msra.mxu1 %v2019_v62 }
 0xbcc   :  { %2092 = vmatprep.subr.mxu1 %v4961_v33 }
 0xbcd   :  { %2093 = vmatpush2.msra.mxu1 %v2018_v0 }
 0xbce   :  { %2094 = vmatprep.subr.mxu1 %v4961_v33 }
 0xbcf   :  { %2095 = vmatpush2.msra.mxu1 %v2017_v37 }
 0xbd0   :  { %2096 = vmatprep.subr.mxu1 %v4961_v33 }
 0xbd1   :  { %2097 = vmatpush2.msra.mxu1 %v2016_v31 }
 0xbd2   :  { %2098 = vmatprep.subr.mxu1 %v4961_v33 }
 0xbd3   :  { %2099 = vmatpush2.msra.mxu1 %v2015_v1 }
 0xbd4   :  { %2100 = vmatprep.subr.mxu1 %v4961_v33 }
 0xbd5   :  { %2101 = vmatpush2.msra.mxu1 %v2014_v2 }
 0xbd6   :  { %2102 = vmatprep.subr.mxu1 %v4961_v33 }
 0xbd7   :  { %2103 = vmatpush2.msra.mxu1 %v2013_v4 }
 0xc68   :  { %v1758_v35 = vpop.f32.mrf.mxu1 }
 0xc69   :  { %v1759_v38 = vadd.f32 %v1758_v35, %v1673_v10 }
 0xc6a   :  { %v1760_v12 = vpop.f32.mrf.mxu1 }
 0xc6b   :  { %v5683_v5 = vmul.f32 0.70710677, %v1759_v38  ;;  %v1761_v8 = vadd.f32 %v1760_v12, %v1677_v11  ;;  %v5720_v62 = vmul.f32 0.5, %v1759_v38 }
 0xc6c   :  { %v1764_v40 = vpop.f32.mrf.mxu1 }
 0xc6d   :  { %v1813_v13 = vand.u32 2147483647, %v5683_v5  ;;  %v5686_v39 = vmul.f32 0.70710677, %v1761_v8  ;;  %v5688_v36 = vadd.f32 %v1764_v40, %v1673_v10  ;;  %vm1797_vm9 = vcmp.ge.f32.partialorder %v5683_v5, 0.0 }
 0xc6e   :  { %v1766_v16 = vpop.f32.mrf.mxu1  ;;  %v5730_v35 = vmul.f32 0.5, %v1761_v8 }
 0xc6f   :  { %v1821_v18 = vmul.f32 0.3275911, %v1813_v13  ;;  %v1814_v20 = vand.u32 2147483647, %v5686_v39  ;;  %v5692_v17 = vmul.f32 0.70710677, %v5688_v36  ;;  %v5694_v14 = vadd.f32 %v1766_v16, %v1677_v11 }
 0xc70   :  { %v1770_v22 = vpop.f32.mrf.mxu1  ;;  %v1925_v47 = vsub.f32 0.0, %v1813_v13  ;;  %vm1798_vm10 = vcmp.ge.f32.partialorder %v5686_v39, 0.0 }
 0xc71   :  { %v1829_v19 = vadd.f32 1.0, %v1821_v18  ;;  %v1822_v58 = vmul.f32 0.3275911, %v1814_v20  ;;  %v1815_v21 = vand.u32 2147483647, %v5692_v17  ;;  %v5701_v44 = vadd.f32 %v1770_v22, %v1673_v10 }
 0xc72   :  { %v5698_v23 = vmul.f32 0.70710677, %v5694_v14  ;;  %v1772_v9 = vpop.f32.mrf.mxu1  ;;  %v1926_v51 = vsub.f32 0.0, %v1814_v20  ;;  %v1933_v56 = vmul.f32 %v1925_v47, %v1813_v13  ;;  %vm1799_vm11 = vcmp.ge.f32.partialorder %v5692_v17, 0.0 }
 0xc73   :  { %4829 = vrcp.f32 %v1829_v19  ;;  %v1830_v25 = vadd.f32 1.0, %v1822_v58  ;;  %v1823_v15 = vmul.f32 0.3275911, %v1815_v21  ;;  %v5703_v43 = vadd.f32 %v1772_v9, %v1677_v11 }
 0xc74   :  { %v1816_v29 = vand.u32 2147483647, %v5698_v23  ;;  %v1776_v26 = vpop.f32.mrf.mxu1  ;;  %v5706_v48 = vmul.f32 0.70710677, %v5701_v44  ;;  %v1927_v27 = vsub.f32 0.0, %v1815_v21  ;;  %v1934_v53 = vmul.f32 %v1926_v51, %v1814_v20 }
 0xc75   :  { %4831 = vrcp.f32 %v1830_v25  ;;  %v1831_v30 = vadd.f32 1.0, %v1823_v15  ;;  %v5709_v50 = vmul.f32 0.70710677, %v5703_v43  ;;  %v5712_v54 = vadd.f32 %v1776_v26, %v1673_v10 }
 0xc76   :  { %v1824_v24 = vmul.f32 0.3275911, %v1816_v29  ;;  %v1817_v52 = vand.u32 2147483647, %v5706_v48  ;;  %v1778_v55 = vpop.f32.mrf.mxu1  ;;  %v1941_v1 = vmul.f32 1.442695, %v1933_v56  ;;  %v1935_v2 = vmul.f32 %v1927_v27, %v1815_v21 }
 0xc77   :  { %4833 = vrcp.f32 %v1831_v30  ;;  %v1818_v28 = vand.u32 2147483647, %v5709_v50  ;;  %v5716_v42 = vmul.f32 0.70710677, %v5712_v54  ;;  %v5718_v61 = vadd.f32 %v1778_v55, %v1677_v11 }
 0xc78   :  { %v1832_v49 = vadd.f32 1.0, %v1824_v24  ;;  %v1825_v59 = vmul.f32 0.3275911, %v1817_v52  ;;  %v1928_v10 = vsub.f32 0.0, %v1816_v29  ;;  %v1943_v38 = vmul.f32 1.442695, %v1934_v53 }
 0xc79   :  { %v1826_v57 = vmul.f32 0.3275911, %v1818_v28  ;;  %v1819_v0 = vand.u32 2147483647, %v5716_v42  ;;  %v5724_v37 = vmul.f32 0.70710677, %v5718_v61 }
 0xc7a   :  { %4835 = vrcp.f32 %v1832_v49  ;;  %v1833_v3 = vadd.f32 1.0, %v1825_v59  ;;  %v1929_v16 = vsub.f32 0.0, %v1817_v52  ;;  %v1945_v22 = vmul.f32 1.442695, %v1935_v2 }
 0xc7b   :  { %v1834_v4 = vadd.f32 1.0, %v1826_v57  ;;  %v1827_v11 = vmul.f32 0.3275911, %v1819_v0  ;;  %v1820_v12 = vand.u32 2147483647, %v5724_v37  ;;  %v1936_v21 = vmul.f32 %v1928_v10, %v1816_v29 }
 0xc7c   :  { %4837 = vrcp.f32 %v1833_v3  ;;  %v1930_v9 = vsub.f32 0.0, %v1818_v28  ;;  %v1931_v15 = vsub.f32 0.0, %v1819_v0  ;;  %v4974_v24 = vmov -1.0  }
 0xc7d   :  { %4839 = vrcp.f32 %v1834_v4  ;;  %v1835_v18 = vadd.f32 1.0, %v1827_v11  ;;  %v1828_v19 = vmul.f32 0.3275911, %v1820_v12  ;;  %v5744_v47 = vsel %vm1797_vm9, 1.0, %v4974_v24 }
 0xc7e   :  { %4841 = vpow2.f32 %v1941_v1  ;;  %v1937_v51 = vmul.f32 %v1929_v16, %v1817_v52  ;;  %v5751_v29 = vsel %vm1798_vm10, 1.0, %v4974_v24  ;;  %v1947_v53 = vmul.f32 1.442695, %v1936_v21 }
 0xc7f   :  { %4843 = vrcp.f32 %v1835_v18  ;;  %v1836_v30 = vadd.f32 1.0, %v1828_v19  ;;  %v1938_v3 = vmul.f32 %v1930_v9, %v1818_v28  ;;  %v1939_v52 = vmul.f32 %v1931_v15, %v1819_v0 }
 0xc80   :  { %v5726_v31 = vpop.eup %4829  ;;  %4845 = vpow2.f32 %v1943_v38  ;;  %v1949_v39 = vmul.f32 1.442695, %v1937_v51  ;;  %v1932_v10 = vsub.f32 0.0, %v1820_v12  ;;  %vm1800_vm12 = vcmp.ge.f32.partialorder %v5698_v23, 0.0 }
 0xc81   :  { %v1853_v7 = vmul.f32 1.0614054, %v5726_v31  ;;  %4847 = vrcp.f32 %v1836_v30  ;;  %v1951_v16 = vmul.f32 1.442695, %v1938_v3  ;;  %v1953_v18 = vmul.f32 1.442695, %v1939_v52 }
 0xc82   :  { %v5734_v40 = vpop.eup %4831  ;;  %4849 = vpow2.f32 %v1945_v22  ;;  %vm1801_vm13 = vcmp.ge.f32.partialorder %v5706_v48, 0.0  ;;  %vm1802_vm14 = vcmp.ge.f32.partialorder %v5709_v50, 0.0  ;;  %vm1803_vm15 = vcmp.ge.f32.partialorder %v5716_v42, 0.0 }
 0xc83   :  { %v1861_v13 = vadd.f32 -1.4531521, %v1853_v7  ;;  %v1854_v20 = vmul.f32 1.0614054, %v5734_v40  ;;  %4851 = vpow2.f32 %v1947_v53  ;;  %vm1804_vm1 = vcmp.ge.f32.partialorder %v5724_v37, 0.0 }
 0xc84   :  { %v5737_v58 = vpop.eup %4833  ;;  %4853 = vpow2.f32 %v1949_v39 }
 0xc85   :  { %v1869_v8 = vmul.f32 %v5726_v31, %v1861_v13  ;;  %v1862_v25 = vadd.f32 -1.4531521, %v1854_v20  ;;  %v1855_v26 = vmul.f32 1.0614054, %v5737_v58  ;;  %4855 = vpow2.f32 %v1951_v16 }
 0xc86   :  { %4857 = vpow2.f32 %v1953_v18 }
 0xc87   :  { %v1877_v49 = vadd.f32 1.4214138, %v1869_v8  ;;  %v5746_v55 = vpop.eup %4835  ;;  %v1870_v56 = vmul.f32 %v5734_v40, %v1862_v25  ;;  %v1863_v27 = vadd.f32 -1.4531521, %v1855_v26  ;;  %v1807_v8 = vsel %vm1799_vm11, 1.0, %v4974_v24 }
 0xc88   :  { %v1856_v5 = vmul.f32 1.0614054, %v5746_v55  ;;  %v1940_v25 = vmul.f32 %v1932_v10, %v1820_v12  ;;  %vm3716_vm11 = vcmask 1040384  }
 0xc89   :  { %v1885_v59 = vmul.f32 %v5726_v31, %v1877_v49  ;;  %v1878_v57 = vadd.f32 1.4214138, %v1870_v56  ;;  %v1871_v1 = vmul.f32 %v5737_v58, %v1863_v27  ;;  %v5759_v38 = vpop.eup %4837 }
 0xc8a   :  { %v1864_v4 = vadd.f32 -1.4531521, %v1856_v5  ;;  %v1857_v22 = vmul.f32 1.0614054, %v5759_v38  ;;  %v5766_v21 = vpop.eup %4839 }
 0xc8b   :  { %v1893_v2 = vadd.f32 -0.28449672, %v1885_v59  ;;  %v1886_v7 = vmul.f32 %v5734_v40, %v1878_v57  ;;  %v1879_v11 = vadd.f32 1.4214138, %v1871_v1  ;;  %v4842_v26 = vpop.eup %4841  ;;  %v1858_v56 = vmul.f32 1.0614054, %v5766_v21 }
 0xc8c   :  { %v1872_v28 = vmul.f32 %v5746_v55, %v1864_v4  ;;  %v1865_v30 = vadd.f32 -1.4531521, %v1857_v22  ;;  %v5772_v27 = vpop.eup %4843 }
 0xc8d   :  { %v1901_v13 = vmul.f32 %v5726_v31, %v1893_v2  ;;  %v1894_v0 = vadd.f32 -0.28449672, %v1886_v7  ;;  %v1887_v20 = vmul.f32 %v5737_v58, %v1879_v11  ;;  %v1866_v57 = vadd.f32 -1.4531521, %v1858_v56  ;;  %v4846_v52 = vpop.eup %4845 }
 0xc8e   :  { %v1880_v17 = vadd.f32 1.4214138, %v1872_v28  ;;  %v1873_v12 = vmul.f32 %v5759_v38, %v1865_v30  ;;  %v1955_v2 = vmul.f32 1.442695, %v1940_v25  ;;  %v5779_v7 = vpop.eup %4847 }
 0xc8f   :  { %v1909_v19 = vadd.f32 0.2548296, %v1901_v13  ;;  %v1902_v9 = vmul.f32 %v5734_v40, %v1894_v0  ;;  %v1895_v15 = vadd.f32 -0.28449672, %v1887_v20  ;;  %v1874_v13 = vmul.f32 %v5766_v21, %v1866_v57  ;;  %v4850_v22 = vpop.eup %4849 }
 0xc90   :  { %v1888_v51 = vmul.f32 %v5746_v55, %v1880_v17  ;;  %v1881_v39 = vadd.f32 1.4214138, %v1873_v12  ;;  %v1860_v0 = vmul.f32 1.0614054, %v5779_v7  ;;  %4859 = vpow2.f32 %v1955_v2 }
 0xc91   :  { %v1917_v49 = vmul.f32 %v5726_v31, %v1909_v19  ;;  %v1910_v59 = vadd.f32 0.2548296, %v1902_v9  ;;  %v1903_v5 = vmul.f32 %v5737_v58, %v1895_v15  ;;  %v1859_v31 = vmul.f32 1.0614054, %v5772_v27 }
 0xc92   :  { %v1896_v3 = vadd.f32 -0.28449672, %v1888_v51  ;;  %v1889_v20 = vmul.f32 %v5759_v38, %v1881_v39  ;;  %v1882_v17 = vadd.f32 1.4214138, %v1874_v13  ;;  %v1868_v15 = vadd.f32 -1.4531521, %v1860_v0 }
 0xc93   :  { %v1957_v53 = vmul.f32 %v4842_v26, %v1917_v49  ;;  %v1918_v1 = vmul.f32 %v5734_v40, %v1910_v59  ;;  %v1911_v4 = vadd.f32 0.2548296, %v1903_v5  ;;  %v1867_v28 = vadd.f32 -1.4531521, %v1859_v31 }
 0xc94   :  { %v1904_v11 = vmul.f32 %v5746_v55, %v1896_v3  ;;  %v1897_v26 = vadd.f32 -0.28449672, %v1889_v20  ;;  %v1890_v51 = vmul.f32 %v5766_v21, %v1882_v17  ;;  %v1876_v5 = vmul.f32 %v5779_v7, %v1868_v15 }
 0xc95   :  { %v1965_v10 = vsub.f32 1.0, %v1957_v53  ;;  %v1958_v16 = vmul.f32 %v4846_v52, %v1918_v1  ;;  %v1919_v18 = vmul.f32 %v5737_v58, %v1911_v4  ;;  %v1875_v9 = vmul.f32 %v5772_v27, %v1867_v28  ;;  %v4852_v58 = vpop.eup %4851 }
 0xc96   :  { %v1912_v19 = vadd.f32 0.2548296, %v1904_v11  ;;  %v1905_v12 = vmul.f32 %v5759_v38, %v1897_v26  ;;  %v1898_v57 = vadd.f32 -0.28449672, %v1890_v51  ;;  %v4854_v52 = vpop.eup %4853  ;;  %v1808_v2 = vsel %vm1800_vm12, 1.0, %v4974_v24 }
 0xc97   :  { %v1973_v40 = vmul.f32 %v1965_v10, %v5744_v47  ;;  %v1966_v25 = vsub.f32 1.0, %v1958_v16  ;;  %v1959_v30 = vmul.f32 %v4850_v22, %v1919_v18  ;;  %v1883_v56 = vadd.f32 1.4214138, %v1875_v9  ;;  %v4856_v13 = vpop.eup %4855 }
 0xc98   :  { %v1920_v49 = vmul.f32 %v5746_v55, %v1912_v19  ;;  %v1884_v55 = vadd.f32 1.4214138, %v1876_v5  ;;  %v1913_v39 = vadd.f32 0.2548296, %v1905_v12  ;;  %v1906_v10 = vmul.f32 %v5766_v21, %v1898_v57  ;;  %v4858_v18 = vpop.eup %4857 }
 0xc99   :  { %v1974_v59 = vmul.f32 %v1966_v25, %v5751_v29  ;;  %v1967_v47 = vsub.f32 1.0, %v1959_v30  ;;  %v1981_v53 = vadd.f32 1.0, %v1973_v40  ;;  %v1891_v31 = vmul.f32 %v5772_v27, %v1883_v56 }
 0xc9a   :  { %v1960_v3 = vmul.f32 %v4852_v58, %v1920_v49  ;;  %v1892_v16 = vmul.f32 %v5779_v7, %v1884_v55  ;;  %v1921_v0 = vmul.f32 %v5759_v38, %v1913_v39  ;;  %v1914_v22 = vadd.f32 0.2548296, %v1906_v10 }
 0xc9b   :  { %v1982_v1 = vadd.f32 1.0, %v1974_v59  ;;  %v1975_v4 = vmul.f32 %v1967_v47, %v1807_v8  ;;  %v1899_v11 = vadd.f32 -0.28449672, %v1891_v31  ;;  %v1989_v8 = vmul.f32 %v1981_v53, %v5720_v62 }
 0xc9c   :  { %v1968_v29 = vsub.f32 1.0, %v1960_v3  ;;  %v1900_v40 = vadd.f32 -0.28449672, %v1892_v16  ;;  %v1961_v17 = vmul.f32 %v4854_v52, %v1921_v0  ;;  %v1922_v25 = vmul.f32 %v5766_v21, %v1914_v22 }
 0xc9d   :  { %v1990_v28 = vmul.f32 %v1982_v1, %v5730_v35  ;;  %v1907_v23 = vmul.f32 %v5772_v27, %v1899_v11  ;;  %v1983_v19 = vadd.f32 1.0, %v1975_v4  ;;  %v1784_v35 = vmul.f32 0.5, %v5694_v14  ;;  %v4860_v48 = vpop.eup %4859 }
 0xc9e   :  { %v1976_v20 = vmul.f32 %v1968_v29, %v1808_v2  ;;  %v1783_v38 = vmul.f32 0.5, %v5688_v36  ;;  %v1809_v62 = vsel %vm1801_vm13, 1.0, %v4974_v24  ;;  %v1908_v30 = vmul.f32 %v5779_v7, %v1900_v40 }
 0xc9f   :  { %3983 = vmatprep.mubr.msk.f32.mxu1 %vm912_vm7, %v1990_v28  ;;  %v1915_v15 = vadd.f32 0.2548296, %v1907_v23  ;;  %v1969_v26 = vsub.f32 1.0, %v1961_v17  ;;  %v1962_v51 = vmul.f32 %v4856_v13, %v1922_v25  ;;  %v1810_v5 = vsel %vm1802_vm14, 1.0, %v4974_v24 }
 0xca0   :  { %v1984_v9 = vadd.f32 1.0, %v1976_v20  ;;  %2105 = vmatmul.mubr.f32.vlgmr.msra.gmra.mxu1 %v1989_v8  ;;  %v1916_v56 = vadd.f32 0.2548296, %v1908_v30  ;;  %v1991_v58 = vmul.f32 %v1983_v19, %v1783_v38  ;;  %v1811_v53 = vsel %vm1803_vm15, 1.0, %v4974_v24 }
 0xca1   :  { %v1923_v14 = vmul.f32 %v5772_v27, %v1915_v15  ;;  %v1977_v21 = vmul.f32 %v1969_v26, %v1809_v62  ;;  %v1970_v59 = vsub.f32 1.0, %v1962_v51  ;;  %v1786_v57 = vmul.f32 0.5, %v5703_v43 }
 0xca2   :  { %v1992_v49 = vmul.f32 %v1984_v9, %v1784_v35  ;;  %v1924_v47 = vmul.f32 %v5779_v7, %v1916_v56  ;;  %v1785_v52 = vmul.f32 0.5, %v5701_v44  ;;  %v1812_v4 = vsel %vm1804_vm1, 1.0, %v4974_v24  ;;  %v3982_v44 = vld [vmem:[%s5830_s9] ss:$0 sm:$0xff] }
 0xca3   :  { %v1963_v36 = vmul.f32 %v4858_v18, %v1923_v14  ;;  %v1978_v12 = vmul.f32 %v1970_v59, %v1810_v5  ;;  %v1985_v3 = vadd.f32 1.0, %v1977_v21  ;;  %v1788_v29 = vmul.f32 0.5, %v5718_v61 }
 0xca4   :  { %3984 = vmatprep.mubr.msk.f32.mxu1 %vm912_vm7, %v1992_v49  ;;  %v1964_v27 = vmul.f32 %v4860_v48, %v1924_v47  ;;  %v1787_v10 = vmul.f32 0.5, %v5712_v54  ;;  %vm3903_vm12 = vcmask 17408  }
 0xca5   :  { %2110 = vmatmul.mubr.f32.gmra.mxu1 %v1991_v58  ;;  %v1971_v50 = vsub.f32 1.0, %v1963_v36  ;;  %v1986_v42 = vadd.f32 1.0, %v1978_v12  ;;  %v1993_v39 = vmul.f32 %v1985_v3, %v1785_v52  ;;  %v4016_v52 = vld [vmem:[%s5211_s15 + $0x1f8] sm:$0xff] }
 0xca6   :  { %v1972_v1 = vsub.f32 1.0, %v1964_v27  ;;  %v4022_v27 = vld [vmem:[%s5211_s15 + $0x228] sm:$0xff] }
 0xca7   :  { %v1979_v31 = vmul.f32 %v1971_v50, %v1811_v53  ;;  %v1994_v55 = vmul.f32 %v1986_v42, %v1786_v57  ;;  %v4020_v57 = vld [vmem:[%s5211_s15 + $0x218] sm:$0xff]  ;;  %v4019_v42 = vld [vmem:[%s5211_s15 + $0x210] sm:$0xff] }
 0xca8   :  { %v1980_v7 = vmul.f32 %v1972_v1, %v1812_v4  ;;  %v4014_v1 = vld [vmem:[%s5211_s15 + $0x1e8] sm:$0xff]  ;;  %v4011_v4 = vld [vmem:[%s5211_s15 + $0x1d0] sm:$0xff] }
 0xca9   :  { %3985 = vmatprep.mubr.msk.f32.mxu1 %vm912_vm7, %v1994_v55  ;;  %v1987_v2 = vadd.f32 1.0, %v1979_v31  ;;  %v4017_v31 = vld [vmem:[%s5211_s15 + $0x200] sm:$0xff] }
 0xcaa   :  { %v1988_v37 = vadd.f32 1.0, %v1980_v7  ;;  %2115 = vmatmul.mubr.f32.gmra.mxu1 %v1993_v39  ;;  %v4013_v55 = vld [vmem:[%s5211_s15 + $0x1e0] sm:$0xff]  ;;  %v4010_v7 = vld [vmem:[%s5211_s15 + $0x1c8] sm:$0xff]  ;;  %v4008_v39 = vld [vmem:[%s5211_s15 + $0x1b8] sm:$0xff] }
 0xcab   :  { %v1995_v11 = vmul.f32 %v1987_v2, %v1787_v10  ;;  %v4007_v2 = vld [vmem:[%s5211_s15 + $0x1b0] sm:$0xff]  ;;  %v4002_v10 = vld [vmem:[%s5211_s15 + $0x188] sm:$0xff] }
 0xcac   :  { %v1996_v43 = vmul.f32 %v1988_v37, %v1788_v29  ;;  %v4005_v29 = vld [vmem:[%s5211_s15 + $0x1a0] sm:$0xff]  ;;  %v4004_v37 = vld [vmem:[%s5211_s15 + $0x198] sm:$0xff] }
 0xcae   :  { %3986 = vmatprep.mubr.msk.f32.mxu1 %vm912_vm7, %v1996_v43  ;;  %v4001_v43 = vld [vmem:[%s5211_s15 + $0x180] sm:$0xff] }
 0xcaf   :  { %2120 = vmatmul.mubr.f32.gmra.mxu1 %v1995_v11  ;;  %v3999_v11 = vld [vmem:[%s5211_s15 + $0x170] sm:$0xff] }
 0xd60   :  { %v2106_v13 = vpop.f32.mrf.mxu1 }
 0xd61   :  { %v2107_v28 = vadd.f32 %v3982_v44, %v2106_v13  ;;  %v3996_v13 = vld [vmem:[%s5211_s15 + $0x158] sm:$0xff] }
 0xd62   :  { %v2108_v61 = vpop.f32.mrf.mxu1 }
 0xd63   :  { %v2125_v16 = vadd.f32 %v2107_v28, %v5602_v60  ;;  %v3995_v28 = vld [vmem:[%s5211_s15 + $0x150] sm:$0xff]  ;;  %v3993_v61 = vld [vmem:[%s5211_s15 + $0x140] sm:$0xff] }
 0xd65   :  { %v2111_v0 = vpop.f32.mrf.mxu1  ;;  %v2131_v54 = vsel %vm127_vm0, %v2125_v16, 0.0 }
 0xd66   :  { %v2112_v18 = vadd.f32 %v3982_v44, %v2111_v0  ;;  %2132 = vadd.xlane.f32.xlu0 %v2131_v54  ;;  %v3990_v0 = vld [vmem:[%s5211_s15 + $0x128] sm:$0xff]  ;;  %v3989_v54 = vld [vmem:[%s5211_s15 + $0x120] sm:$0xff] }
 0xd67   :  { %v2113_v8 = vpop.f32.mrf.mxu1 }
 0xd68   :  { %v2126_v20 = vadd.f32 %v2112_v18, %v5608_v34  ;;  %v4023_v34 = vld [vmem:[%s5211_s15 + $0x230] sm:$0xff]  ;;  %v4024_v18 = vld [vmem:[%s5211_s15 + $0x238] sm:$0xff] }
 0xd69   :  { %2278 = vmatprep.subr.mxu0 %v4023_v34 }
 0xd6a   :  { %v2134_v22 = vsel %vm127_vm0, %v2126_v20, 0.0  ;;  %v2116_v23 = vpop.f32.mrf.mxu1  ;;  %2279 = vmatpush1.msra.mxu0 %v4022_v27 }
 0xd6b   :  { %2135 = vadd.xlane.f32.xlu1 %v2134_v22  ;;  %v2117_v40 = vadd.f32 %v3982_v44, %v2116_v23  ;;  %2280 = vmatprep.subr.mxu0 %v4020_v57 }
 0xd6c   :  { %v2118_v19 = vpop.f32.mrf.mxu1  ;;  %2281 = vmatpush1.msra.mxu0 %v4019_v42  ;;  %v4003_v42 = vld [vmem:[%s5211_s15 + $0x190] sm:$0xff] }
 0xd6d   :  { %v2127_v17 = vadd.f32 %v2117_v40, %v5614_v41  ;;  %2282 = vmatprep.subr.mxu0 %v4017_v31  ;;  %v4000_v31 = vld [vmem:[%s5211_s15 + $0x178] sm:$0xff] }
 0xd6e   :  { %2283 = vmatpush1.msra.mxu0 %v4016_v52 }
 0xd6f   :  { %v2121_v35 = vpop.f32.mrf.mxu1  ;;  %v2137_v60 = vsel %vm127_vm0, %v2127_v17, 0.0  ;;  %2284 = vmatprep.subr.mxu0 %v4014_v1  ;;  %v3997_v1 = vld [vmem:[%s5211_s15 + $0x160] sm:$0xff] }
 0xd70   :  { %v2122_v9 = vadd.f32 %v3982_v44, %v2121_v35  ;;  %2138 = vadd.xlane.f32.xlu0 %v2137_v60  ;;  %2285 = vmatpush1.msra.mxu0 %v4013_v55  ;;  %v3998_v44 = vld [vmem:[%s5211_s15 + $0x168] sm:$0xff]  ;;  %v3991_v55 = vld [vmem:[%s5211_s15 + $0x130] sm:$0xff] }
 0xd71   :  { %v2123_v25 = vpop.f32.mrf.mxu1  ;;  %2286 = vmatprep.subr.mxu0 %v4011_v4  ;;  %v4025_v4 = vld [vmem:[%s5302_s27 + $0x3] sm:$0x7] }
 0xd72   :  { %v2128_v15 = vadd.f32 %v2122_v9, %v5619_v32  ;;  %2287 = vmatpush1.msra.mxu0 %v4010_v7  ;;  %v3987_v25 = vld [vmem:[%s5889_s16] ss:$0 sm:$0xff]  ;;  %v2246_v7 = vrot.slane %v4025_v4, %v5241_v46 }
 0xd73   :  { %2288 = vmatprep.subr.mxu0 %v4008_v39 }
 0xd74   :  { %v2140_v38 = vsel %vm127_vm0, %v2128_v15, 0.0  ;;  %2289 = vmatpush1.msra.mxu0 %v4007_v2 }
 0xd75   :  { %2141 = vadd.xlane.f32.xlu1 %v2140_v38  ;;  %2290 = vmatprep.subr.mxu0 %v4005_v29 }
 0xd76   :  { %2291 = vmatpush1.msra.mxu0 %v4004_v37 }
 0xd77   :  { %2292 = vmatprep.subr.mxu0 %v4002_v10 }
 0xd78   :  { %2293 = vmatpush1.msra.mxu0 %v4001_v43 }
 0xd79   :  { %2294 = vmatprep.subr.mxu0 %v3999_v11 }
 0xd7a   :  { %2295 = vmatpush1.msra.mxu0 %v3998_v44 }
 0xd7b   :  { %2296 = vmatprep.subr.mxu0 %v3996_v13 }
 0xd7c   :  { %2297 = vmatpush1.msra.mxu0 %v3995_v28  ;;  %v2250_v28 = vrot.slane %v4025_v4, %v5345_v63 }
 0xd7d   :  { %2298 = vmatprep.subr.mxu0 %v3993_v61 }
 0xdef   :  { %v2133_v62 = vpop.xlane.xlu0 %2132 }
 0xdf0   :  { %v2143_v30 = vmul.f32 0.010416667, %v2133_v62  ;;  %v3988_v62 = vld [vmem:[%s5894_s21] ss:$0 sm:$0xff] }
 0xdf2   :  { %v5842_v26 = vsub.f32 %v2125_v16, %v2143_v30  ;;  %v3992_v16 = vld [vmem:[%s5211_s15 + $0x138] sm:$0xff] }
 0xdf3   :  { %2299 = vmatpush1.msra.mxu0 %v3992_v16 }
 0xdf4   :  { %v2136_v49 = vpop.xlane.xlu1 %2135  ;;  %v2151_v41 = vmul.f32 %v5842_v26, %v5842_v26  ;;  %2300 = vmatprep.subr.mxu0 %v3990_v0 }
 0xdf5   :  { %v2144_v51 = vmul.f32 0.010416667, %v2136_v49  ;;  %2301 = vmatpush1.msra.mxu0 %v3989_v54 }
 0xdf6   :  { %v2155_v14 = vsel %vm127_vm0, %v2151_v41, 0.0  ;;  %4538 = vmatprep.subr.mxu0 %v4024_v18 }
 0xdf7   :  { %v5847_v56 = vsub.f32 %v2126_v20, %v2144_v51  ;;  %2156 = vadd.xlane.f32.xlu0 %v2155_v14  ;;  %v4021_v14 = vld [vmem:[%s5211_s15 + $0x220] sm:$0xff] }
 0xdf9   :  { %v2152_v32 = vmul.f32 %v5847_v56, %v5847_v56  ;;  %v2139_v21 = vpop.xlane.xlu0 %2138 }
 0xdfa   :  { %v2145_v59 = vmul.f32 0.010416667, %v2139_v21 }
 0xdfb   :  { %v2158_v58 = vsel %vm127_vm0, %v2152_v32, 0.0 }
 0xdfc   :  { %2159 = vadd.xlane.f32.xlu1 %v2158_v58  ;;  %v5852_v36 = vsub.f32 %v2127_v17, %v2145_v59  ;;  %v4015_v59 = vld [vmem:[%s5211_s15 + $0x1f0] sm:$0xff] }
 0xdfe   :  { %v2142_v48 = vpop.xlane.xlu1 %2141  ;;  %v2153_v5 = vmul.f32 %v5852_v36, %v5852_v36 }
 0xdff   :  { %v2146_v47 = vmul.f32 0.010416667, %v2142_v48  ;;  %v4012_v48 = vld [vmem:[%s5211_s15 + $0x1d8] sm:$0xff] }
 0xe00   :  { %v2161_v12 = vsel %vm127_vm0, %v2153_v5, 0.0 }
 0xe01   :  { %v5857_v50 = vsub.f32 %v2128_v15, %v2146_v47  ;;  %2162 = vadd.xlane.f32.xlu0 %v2161_v12  ;;  %v4009_v47 = vld [vmem:[%s5211_s15 + $0x1c0] sm:$0xff] }
 0xe03   :  { %v2154_v53 = vmul.f32 %v5857_v50, %v5857_v50 }
 0xe05   :  { %v2164_v3 = vsel %vm127_vm0, %v2154_v53, 0.0  ;;  %v4006_v53 = vld [vmem:[%s5211_s15 + $0x1a8] sm:$0xff] }
 0xe06   :  { %2165 = vadd.xlane.f32.xlu1 %v2164_v3 }
 0xe80   :  { %v2157_v8 = vpop.xlane.xlu0 %2156 }
 0xe81   :  { %v2167_v20 = vmul.f32 0.010416667, %v2157_v8 }
 0xe83   :  { %v2171_v22 = vadd.f32 1e-05, %v2167_v20  ;;  %v2254_v20 = vrot.slane %v4025_v4, %v717_v6 }
 0xe85   :  { %4861 = vrsqrt.f32 %v2171_v22  ;;  %v2160_v23 = vpop.xlane.xlu1 %2159 }
 0xe86   :  { %v2168_v40 = vmul.f32 0.010416667, %v2160_v23 }
 0xe88   :  { %v2172_v19 = vadd.f32 1e-05, %v2168_v40 }
 0xe8a   :  { %4863 = vrsqrt.f32 %v2172_v19  ;;  %v2163_v17 = vpop.xlane.xlu0 %2162 }
 0xe8b   :  { %v2169_v35 = vmul.f32 0.010416667, %v2163_v17 }
 0xe8d   :  { %v2173_v60 = vadd.f32 1e-05, %v2169_v35 }
 0xe8f   :  { %4865 = vrsqrt.f32 %v2173_v60  ;;  %v2166_v15 = vpop.xlane.xlu1 %2165 }
 0xe90   :  { %v2170_v34 = vmul.f32 0.010416667, %v2166_v15 }
 0xe92   :  { %v4862_v9 = vpop.eup %4861  ;;  %v2174_v49 = vadd.f32 1e-05, %v2170_v34 }
 0xe93   :  { %v2179_v38 = vmul.f32 %v4862_v9, %v5842_v26  ;;  %v4018_v26 = vld [vmem:[%s5211_s15 + $0x208] sm:$0xff] }
 0xe94   :  { %4867 = vrsqrt.f32 %v2174_v49 }
 0xe95   :  { %v2189_v30 = vmul.f32 %v3987_v25, %v2179_v38 }
 0xe97   :  { %v4864_v41 = vpop.eup %4863  ;;  %v5899_v51 = vadd.f32 %v3988_v62, %v2189_v30 }
 0xe98   :  { %v2180_v32 = vmul.f32 %v4864_v41, %v5847_v56  ;;  %v6000_v41 = vld [vmem:[%s5403_s1] sm:$0xff] }
 0xe99   :  { %4026 = vmatmul.mubr.msk.f32.vlgmr.msra.gmra.mxu0 %vm127_vm0, %v5899_v51 }
 0xe9a   :  { %4539 = vmatpush3.msra.mxu0 %v4024_v18  ;;  %2340 = vmatprep.mubr.f32.mxu0 %v4961_v33  ;;  %v2190_v58 = vmul.f32 %v3987_v25, %v2180_v32 }
 0xe9b   :  { %4540 = vmatprep.subr.mxu0 %v4021_v14 }
 0xe9c   :  { %4541 = vmatpush3.msra.mxu0 %v4021_v14  ;;  %v5907_v21 = vadd.f32 %v3988_v62, %v2190_v58  ;;  %v4866_v56 = vpop.eup %4865  ;;  %v6005_v58 = vld [vmem:[%s5403_s1 + $0x18] sm:$0xff] }
 0xe9d   :  { %4542 = vmatprep.subr.mxu0 %v4018_v26  ;;  %v2181_v5 = vmul.f32 %v4866_v56, %v5852_v36 }
 0xe9e   :  { %4027 = vmatmul.mubr.msk.f32.gmra.mxu0 %vm127_vm0, %v5907_v21 }
 0xe9f   :  { %4543 = vmatpush3.msra.mxu0 %v4018_v26  ;;  %2346 = vmatprep.mubr.f32.mxu0 %v4961_v33  ;;  %v2191_v12 = vmul.f32 %v3987_v25, %v2181_v5  ;;  %v6010_v5 = vld [vmem:[%s5403_s1 + $0x10] sm:$0xff] }
 0xea0   :  { %4544 = vmatprep.subr.mxu0 %v4015_v59 }
 0xea1   :  { %4545 = vmatpush3.msra.mxu0 %v4015_v59  ;;  %v4868_v27 = vpop.eup %4867  ;;  %v5917_v3 = vadd.f32 %v3988_v62, %v2191_v12 }
 0xea2   :  { %4546 = vmatprep.subr.mxu0 %v4012_v48  ;;  %v2182_v57 = vmul.f32 %v4868_v27, %v5857_v50  ;;  %v3994_v50 = vld [vmem:[%s5211_s15 + $0x148] sm:$0xff]  ;;  %s4978_s15 = smov 25  }
 0xea3   :  { %4547 = vmatpush3.msra.mxu0 %v4012_v48 }
 0xea4   :  { %4548 = vmatprep.subr.mxu0 %v4009_v47  ;;  %4028 = vmatmul.mubr.msk.f32.gmra.mxu0 %vm127_vm0, %v5917_v3  ;;  %v2192_v36 = vmul.f32 %v3987_v25, %v2182_v57 }
 0xea5   :  { %4549 = vmatpush3.msra.mxu0 %v4009_v47  ;;  %2352 = vmatprep.mubr.f32.mxu0 %v4961_v33 }
 0xea6   :  { %4550 = vmatprep.subr.mxu0 %v4006_v53  ;;  %v5925_v52 = vadd.f32 %v3988_v62, %v2192_v36  ;;  %v5996_v62 = vld [vmem:[%s5403_s1 + $0x8] sm:$0xff] }
 0xea7   :  { %4551 = vmatpush3.msra.mxu0 %v4006_v53 }
 0xea8   :  { %4552 = vmatprep.subr.mxu0 %v4003_v42  ;;  %4029 = vmatmul.mubr.msk.f32.gmra.mxu0 %vm127_vm0, %v5925_v52 }
 0xea9   :  { %4553 = vmatpush3.msra.mxu0 %v4003_v42  ;;  %4562 = vmatprep.mubr.msk.f32.mxu0 %vm127_vm0, %v5899_v51 }
 0xeaa   :  { %4554 = vmatprep.subr.mxu0 %v4000_v31 }
 0xeab   :  { %4555 = vmatpush3.msra.mxu0 %v4000_v31 }
 0xeac   :  { %4556 = vmatprep.subr.mxu0 %v3997_v1 }
 0xead   :  { %4557 = vmatpush3.msra.mxu0 %v3997_v1 }
 0xeae   :  { %4558 = vmatprep.subr.mxu0 %v3994_v50 }
 0xeaf   :  { %4559 = vmatpush3.msra.mxu0 %v3994_v50 }
 0xeb0   :  { %4560 = vmatprep.subr.mxu0 %v3991_v55 }
 0xeb1   :  { %4561 = vmatpush3.msra.mxu0 %v3991_v55 }
 0xeb2   :  { %4563 = vmatmul.mubr.msk.f32.vlgmr.msra.gmra.mxu0 %vm127_vm0, %v5907_v21 }
 0xeb3   :  { %4565 = vmatprep.mubr.msk.f32.mxu0 %vm127_vm0, %v5917_v3 }
 0xeb6   :  { %4566 = vmatmul.mubr.msk.f32.gmra.mxu0 %vm127_vm0, %v5925_v52 }
 0xf59   :  { %v2336_v39 = vpop.f32.mrf.mxu0 }
 0xf5a   :  { %v2337_v2 = vadd.f32 %v2336_v39, %v2246_v7 }
 0xf5b   :  { %v2338_v29 = vpop.f32.mrf.mxu0 }
 0xf5c   :  { %v5942_v37 = vmul.f32 0.14433756, %v2337_v2  ;;  %v5965_v23 = vadd.f32 %v2338_v29, %v2250_v28 }
 0xf5e   :  { %v2342_v10 = vpop.f32.mrf.mxu0  ;;  %4576 = vmatprep.mubr.msk.f32.mxu1 %vm912_vm7, %v5942_v37 }
 0xf5f   :  { %v2343_v17 = vadd.f32 %v2342_v10, %v2246_v7 }
 0xf60   :  { %v2344_v43 = vpop.f32.mrf.mxu0 }
 0xf61   :  { %v5957_v18 = vadd.f32 %v2344_v43, %v2250_v28  ;;  %v5983_v60 = vmul.f32 0.14433756, %v2343_v17 }
 0xf64   :  { %v2348_v11 = vpop.f32.mrf.mxu0 }
 0xf65   :  { %v2349_v45 = vadd.f32 %v2348_v11, %v2246_v7 }
 0xf66   :  { %v2350_v44 = vpop.f32.mrf.mxu0 }
 0xf67   :  { %v5949_v0 = vadd.f32 %v2350_v44, %v2250_v28  ;;  %v2446_v15 = vmul.f32 0.14433756, %v2349_v45 }
 0xf68   :  { %v2354_v13 = vpop.f32.mrf.mxu0 }
 0xf69   :  { %v2355_v9 = vadd.f32 %v2354_v13, %v2246_v7 }
 0xf6a   :  { %v2356_v61 = vpop.f32.mrf.mxu0 }
 0xf6b   :  { %v5947_v16 = vadd.f32 %v2356_v61, %v2250_v28  ;;  %v2447_v38 = vmul.f32 0.14433756, %v2355_v9 }
 0xf6d   :  { %4568 = vmatprep.subr.msk.mxu1 %vm912_vm7, %v5947_v16 }
 0xf6e   :  { %4569 = vmatpush3.xpose.msk.msra.mxu1 %vm912_vm7, %v5947_v16 }
 0xf6f   :  { %4570 = vmatprep.subr.msk.mxu1 %vm912_vm7, %v5949_v0 }
 0xf72   :  { %v4564_v54 = vpop.f32.mrf.mxu0  ;;  %4571 = vmatpush3.xpose.msk.msra.mxu1 %vm912_vm7, %v5949_v0 }
 0xf73   :  { %4572 = vmatprep.subr.msk.mxu1 %vm912_vm7, %v5957_v18  ;;  %v5977_v6 = vadd.f32 %v4564_v54, %v2254_v20 }
 0xf74   :  { %v2425_v8 = vpop.f32.mrf.mxu0 }
 0xf75   :  { %v5985_v25 = vadd.f32 %v2425_v8, %v2254_v20 }
 0xf76   :  { %v4567_v22 = vpop.f32.mrf.mxu0  ;;  %4573 = vmatpush3.xpose.msk.msra.mxu1 %vm912_vm7, %v5957_v18 }
 0xf77   :  { %v5967_v40 = vadd.f32 %v4567_v22, %v2254_v20  ;;  %4574 = vmatprep.subr.msk.mxu1 %vm912_vm7, %v5965_v23 }
 0xf78   :  { %v2435_v19 = vpop.f32.mrf.mxu0 }
 0xf79   :  { %v5973_v35 = vadd.f32 %v2435_v19, %v2254_v20  ;;  %4582 = vmatprep.subr.mxu0 %v5967_v40 }
 0xf7a   :  { %4583 = vmatpush3.msra.mxu0 %v5967_v40  ;;  %4575 = vmatpush3.xpose.msk.msra.mxu1 %vm912_vm7, %v5965_v23 }
 0xf7b   :  { %4584 = vmatprep.subr.mxu0 %v5973_v35 }
 0xf7c   :  { %4585 = vmatpush3.msra.mxu0 %v5973_v35 }
 0xf7d   :  { %4586 = vmatprep.subr.mxu0 %v5977_v6  ;;  %4577 = vmatmul.mubr.msk.f32.vlgmr.msra.gmra.mxu1 %vm912_vm7, %v5983_v60 }
 0xf7e   :  { %4587 = vmatpush3.msra.mxu0 %v5977_v6  ;;  %4579 = vmatprep.mubr.msk.f32.mxu1 %vm912_vm7, %v2446_v15 }
 0xf7f   :  { %4588 = vmatprep.subr.mxu0 %v5985_v25 }
 0xf80   :  { %4589 = vmatpush3.msra.mxu0 %v5985_v25 }
 0xf81   :  { %4580 = vmatmul.mubr.msk.f32.gmra.mxu1 %vm912_vm7, %v2447_v38 }
0x103d   :  { %v4578_v34 = vpop.f32.mrf.mxu1 }
0x103e   :  { %v2544_v30 = vadd.f32 %v5996_v62, %v4578_v34 }
0x103f   :  { %v2538_v49 = vpop.f32.mrf.mxu1 }
0x1040   :  { %v2539_v14 = vadd.f32 %v6000_v41, %v2538_v49  ;;  %v2560_v32 = vsel %vm1022_vm8, %v2544_v30, -inf }
0x1041   :  { %2561 = vmax.xlane.f32.xlu1 %v2560_v32  ;;  %v4581_v26 = vpop.f32.mrf.mxu1 }
0x1042   :  { %v2554_v59 = vadd.f32 %v6005_v58, %v4581_v26  ;;  %v2557_v56 = vsel %vm1022_vm8, %v2539_v14, -inf }
0x1043   :  { %2558 = vmax.xlane.f32.xlu0 %v2557_v56  ;;  %v2548_v48 = vpop.f32.mrf.mxu1 }
0x1044   :  { %v2549_v47 = vadd.f32 %v6010_v5, %v2548_v48  ;;  %v2566_v12 = vsel %vm1022_vm8, %v2554_v59, -inf }
0x1045   :  { %2567 = vmax.xlane.f32.xlu1 %v2566_v12 }
0x1046   :  { %v2563_v53 = vsel %vm1022_vm8, %v2549_v47, -inf }
0x1047   :  { %2564 = vmax.xlane.f32.xlu0 %v2563_v53 }
0x10ca   :  { %v2562_v27 = vpop.xlane.xlu1 %2561 }
0x10cb   :  { %v2570_v57 = vsub.f32 %v2544_v30, %v2562_v27 }
0x10cc   :  { %v2559_v42 = vpop.xlane.xlu0 %2558 }
0x10cd   :  { %v2575_v36 = vmul.f32 1.442695, %v2570_v57  ;;  %v2569_v31 = vsub.f32 %v2539_v14, %v2559_v42 }
0x10ce   :  { %v2568_v1 = vpop.xlane.xlu1 %2567 }
0x10cf   :  { %4869 = vpow2.f32 %v2575_v36  ;;  %v2573_v50 = vmul.f32 1.442695, %v2569_v31  ;;  %v2572_v55 = vsub.f32 %v2554_v59, %v2568_v1 }
0x10d0   :  { %v2565_v4 = vpop.xlane.xlu0 %2564 }
0x10d1   :  { %4871 = vpow2.f32 %v2573_v50  ;;  %v2579_v7 = vmul.f32 1.442695, %v2572_v55  ;;  %v2571_v39 = vsub.f32 %v2549_v47, %v2565_v4 }
0x10d3   :  { %4873 = vpow2.f32 %v2579_v7  ;;  %v2577_v2 = vmul.f32 1.442695, %v2571_v39 }
0x10d5   :  { %4875 = vpow2.f32 %v2577_v2 }
0x10dc   :  { %v4870_v29 = vpop.eup %4869 }
0x10dd   :  { %v2584_v10 = vsel %vm1022_vm8, %v4870_v29, 0.0 }
0x10de   :  { %v4872_v43 = vpop.eup %4871  ;;  %2585 = vadd.xlane.f32.xlu1 %v2584_v10 }
0x10df   :  { %v2581_v11 = vsel %vm1022_vm8, %v4872_v43, 0.0 }
0x10e0   :  { %v4874_v44 = vpop.eup %4873  ;;  %2582 = vadd.xlane.f32.xlu0 %v2581_v11 }
0x10e1   :  { %v2590_v13 = vsel %vm1022_vm8, %v4874_v44, 0.0 }
0x10e2   :  { %v4876_v28 = vpop.eup %4875  ;;  %2591 = vadd.xlane.f32.xlu1 %v2590_v13 }
0x10e3   :  { %v2587_v61 = vsel %vm1022_vm8, %v4876_v28, 0.0 }
0x10e4   :  { %2588 = vadd.xlane.f32.xlu0 %v2587_v61 }
0x10f3   :  { %2710 = vrot.lane.b32.xlu1 %v5949_v0, %s4966_s2 }
0x10f7   :  { %2708 = vrot.lane.b32.xlu1 %v5957_v18, %s4966_s2 }
0x10fa   :  { %2712 = vrot.lane.b32.xlu0 %v5947_v16, %s4966_s2 }
0x10fb   :  { %2706 = vrot.lane.b32.xlu1 %v5965_v23, %s4966_s2 }
0x10fe   :  { %2698 = vrot.lane.b32.xlu0 %v5942_v37, %s4966_s2 }
0x10ff   :  { %2700 = vrot.lane.b32.xlu1 %v5983_v60, %s4966_s2 }
0x1102   :  { %2702 = vrot.lane.b32.xlu0 %v2446_v15, %s4966_s2 }
0x1103   :  { %2704 = vrot.lane.b32.xlu1 %v2447_v38, %s4966_s2 }
0x1167   :  { %v2586_v0 = vpop.xlane.xlu1 %2585 }
0x1168   :  { %4877 = vrcp.f32 %v2586_v0 }
0x1169   :  { %v2583_v54 = vpop.xlane.xlu0 %2582 }
0x116a   :  { %4879 = vrcp.f32 %v2583_v54 }
0x116b   :  { %v2592_v18 = vpop.xlane.xlu1 %2591 }
0x116c   :  { %4881 = vrcp.f32 %v2592_v18 }
0x116d   :  { %v2589_v16 = vpop.xlane.xlu0 %2588 }
0x116e   :  { %4883 = vrcp.f32 %v2589_v16 }
0x116f   :  { %v2711_v37 = vpop.permute.xlu1 %2710 }
0x1171   :  { %v2713_v8 = vpop.permute.xlu0 %2712 }
0x1172   :  { %4596 = vmatprep.subr.msk.mxu0 %vm912_vm7, %v2713_v8 }
0x1173   :  { %v2709_v60 = vpop.permute.xlu1 %2708 }
0x1175   :  { %v4878_v20 = vpop.eup %4877  ;;  %v2699_v38 = vpop.permute.xlu0 %2698 }
0x1176   :  { %v2598_v19 = vmul.f32 %v4878_v20, %v4870_v29 }
0x1177   :  { %v4880_v22 = vpop.eup %4879  ;;  %v2707_v34 = vpop.permute.xlu1 %2706 }
0x1178   :  { %v2597_v23 = vmul.f32 %v4880_v22, %v4872_v43 }
0x1179   :  { %v4882_v17 = vpop.eup %4881  ;;  %v2703_v49 = vpop.permute.xlu0 %2702 }
0x117a   :  { %4590 = vmatprep.mubr.msk.f32.mxu0 %vm1022_vm8, %v2597_v23  ;;  %v2600_v15 = vmul.f32 %v4882_v17, %v4874_v44 }
0x117b   :  { %v4884_v45 = vpop.eup %4883  ;;  %4591 = vmatmul.mubr.msk.f32.vlgmr.msra.gmra.mxu0 %vm1022_vm8, %v2598_v19  ;;  %v2701_v30 = vpop.permute.xlu1 %2700 }
0x117c   :  { %4597 = vmatpush3.xpose.msk.msra.mxu0 %vm912_vm7, %v2713_v8  ;;  %v2599_v9 = vmul.f32 %v4884_v45, %v4876_v28 }
0x117d   :  { %4598 = vmatprep.subr.msk.mxu0 %vm912_vm7, %v2711_v37 }
0x117e   :  { %4593 = vmatprep.mubr.msk.f32.mxu0 %vm1022_vm8, %v2599_v9 }
0x117f   :  { %4594 = vmatmul.mubr.msk.f32.gmra.mxu0 %vm1022_vm8, %v2600_v15  ;;  %v2705_v14 = vpop.permute.xlu1 %2704 }
0x1180   :  { %4599 = vmatpush3.xpose.msk.msra.mxu0 %vm912_vm7, %v2711_v37  ;;  %4604 = vmatprep.mubr.msk.f32.mxu0 %vm912_vm7, %v2699_v38 }
0x1181   :  { %4600 = vmatprep.subr.msk.mxu0 %vm912_vm7, %v2709_v60 }
0x1184   :  { %4601 = vmatpush3.xpose.msk.msra.mxu0 %vm912_vm7, %v2709_v60 }
0x1185   :  { %4602 = vmatprep.subr.msk.mxu0 %vm912_vm7, %v2707_v34 }
0x1188   :  { %4603 = vmatpush3.xpose.msk.msra.mxu0 %vm912_vm7, %v2707_v34  ;;  %v4073_v34 = vld [vmem:[%s5495_s6 + $0xf8] sm:$0xff] }
0x118b   :  { %4605 = vmatmul.mubr.msk.f32.vlgmr.msra.gmra.mxu0 %vm912_vm7, %v2701_v30  ;;  %v4072_v30 = vld [vmem:[%s5495_s6 + $0xf0] sm:$0xff] }
0x118c   :  { %4607 = vmatprep.mubr.msk.f32.mxu0 %vm912_vm7, %v2703_v49  ;;  %v4071_v49 = vld [vmem:[%s5495_s6 + $0xe8] sm:$0xff] }
0x118f   :  { %4608 = vmatmul.mubr.msk.f32.gmra.mxu0 %vm912_vm7, %v2705_v14  ;;  %v4070_v14 = vld [vmem:[%s5495_s6 + $0xe0] sm:$0xff] }
0x1190   :  { %3296 = vmatprep.mubr.f32.mxu0 %v4961_v33 }
0x123b   :  { %v6050_v32 = vpop.f32.mrf.mxu0 }
0x123d   :  { %v6052_v26 = vpop.f32.mrf.mxu0 }
0x123f   :  { %v6054_v59 = vpop.f32.mrf.mxu0 }
0x1241   :  { %v6056_v56 = vpop.f32.mrf.mxu0 }
0x124b   :  { %v4606_v48 = vpop.f32.mrf.mxu0 }
0x124c   :  { %v2802_v47 = vadd.f32 %v5996_v62, %v4606_v48  ;;  %v4069_v48 = vld [vmem:[%s5495_s6 + $0xd8] sm:$0xff] }
0x124d   :  { %v2796_v12 = vpop.f32.mrf.mxu0 }
0x124e   :  { %v2797_v53 = vadd.f32 %v6000_v41, %v2796_v12  ;;  %v2818_v27 = vsel %vm1022_vm8, %v2802_v47, -inf  ;;  %v4067_v12 = vld [vmem:[%s5495_s6 + $0xc8] sm:$0xff] }
0x124f   :  { %2819 = vmax.xlane.f32.xlu1 %v2818_v27  ;;  %v4609_v57 = vpop.f32.mrf.mxu0  ;;  %v4065_v27 = vld [vmem:[%s5495_s6 + $0xb8] sm:$0xff] }
0x1250   :  { %v2815_v42 = vsel %vm1022_vm8, %v2797_v53, -inf  ;;  %v2812_v1 = vadd.f32 %v6005_v58, %v4609_v57  ;;  %v4064_v57 = vld [vmem:[%s5495_s6 + $0xb0] sm:$0xff] }
0x1251   :  { %2816 = vmax.xlane.f32.xlu0 %v2815_v42  ;;  %v2806_v36 = vpop.f32.mrf.mxu0  ;;  %v4063_v42 = vld [vmem:[%s5495_s6 + $0xa8] sm:$0xff] }
0x1252   :  { %v2807_v31 = vadd.f32 %v6010_v5, %v2806_v36  ;;  %v2824_v62 = vsel %vm1022_vm8, %v2812_v1, -inf  ;;  %v4062_v36 = vld [vmem:[%s5495_s6 + $0xa0] sm:$0xff] }
0x1254   :  { %v2821_v50 = vsel %vm1022_vm8, %v2807_v31, -inf }
0x1255   :  { %2822 = vmax.xlane.f32.xlu0 %v2821_v50  ;;  %v4059_v50 = vld [vmem:[%s5495_s6 + $0x88] sm:$0xff] }
0x1259   :  { %2825 = vmax.xlane.f32.xlu0 %v2824_v62  ;;  %v4058_v62 = vld [vmem:[%s5495_s6 + $0x80] sm:$0xff] }
0x12d8   :  { %v2820_v55 = vpop.xlane.xlu1 %2819 }
0x12d9   :  { %v2828_v41 = vsub.f32 %v2802_v47, %v2820_v55  ;;  %v4068_v47 = vld [vmem:[%s5495_s6 + $0xd0] sm:$0xff] }
0x12da   :  { %v2817_v4 = vpop.xlane.xlu0 %2816 }
0x12db   :  { %v2833_v7 = vmul.f32 1.442695, %v2828_v41  ;;  %v2827_v39 = vsub.f32 %v2797_v53, %v2817_v4  ;;  %v4066_v53 = vld [vmem:[%s5495_s6 + $0xc0] sm:$0xff] }
0x12dd   :  { %4885 = vpow2.f32 %v2833_v7  ;;  %v2831_v2 = vmul.f32 1.442695, %v2827_v39 }
0x12de   :  { %v2823_v29 = vpop.xlane.xlu0 %2822 }
0x12df   :  { %4887 = vpow2.f32 %v2831_v2  ;;  %v2829_v10 = vsub.f32 %v2807_v31, %v2823_v29  ;;  %v4061_v31 = vld [vmem:[%s5495_s6 + $0x98] sm:$0xff] }
0x12e1   :  { %v2835_v43 = vmul.f32 1.442695, %v2829_v10 }
0x12e2   :  { %v2826_v5 = vpop.xlane.xlu0 %2825 }
0x12e3   :  { %4889 = vpow2.f32 %v2835_v43  ;;  %v2830_v58 = vsub.f32 %v2812_v1, %v2826_v5  ;;  %v4060_v1 = vld [vmem:[%s5495_s6 + $0x90] sm:$0xff]  ;;  %s4980_s6 = smov 27  }
0x12e5   :  { %v2837_v11 = vmul.f32 1.442695, %v2830_v58 }
0x12e7   :  { %4891 = vpow2.f32 %v2837_v11 }
0x12ea   :  { %v4886_v44 = vpop.eup %4885 }
0x12eb   :  { %v2842_v13 = vsel %vm1022_vm8, %v4886_v44, 0.0 }
0x12ec   :  { %v4888_v28 = vpop.eup %4887  ;;  %2843 = vadd.xlane.f32.xlu1 %v2842_v13 }
0x12ed   :  { %v2839_v61 = vsel %vm1022_vm8, %v4888_v28, 0.0 }
0x12ee   :  { %2840 = vadd.xlane.f32.xlu0 %v2839_v61 }
0x12f0   :  { %v4890_v0 = vpop.eup %4889 }
0x12f1   :  { %v2845_v54 = vsel %vm1022_vm8, %v4890_v0, 0.0 }
0x12f2   :  { %2846 = vadd.xlane.f32.xlu0 %v2845_v54 }
0x12f4   :  { %v4892_v18 = vpop.eup %4891 }
0x12f5   :  { %v2848_v16 = vsel %vm1022_vm8, %v4892_v18, 0.0 }
0x12f6   :  { %2849 = vadd.xlane.f32.xlu1 %v2848_v16 }
0x1307   :  { %2867 = vrot.lane.b32.xlu1 %v5973_v35, %s4966_s2 }
0x1308   :  { %2869 = vrot.lane.b32.xlu0 %v5967_v40, %s4966_s2 }
0x130b   :  { %2865 = vrot.lane.b32.xlu1 %v5977_v6, %s4966_s2 }
0x130f   :  { %2863 = vrot.lane.b32.xlu1 %v5985_v25, %s4966_s2 }
0x1375   :  { %v2844_v20 = vpop.xlane.xlu1 %2843 }
0x1377   :  { %v2841_v8 = vpop.xlane.xlu0 %2840 }
0x1378   :  { %4893 = vrcp.f32 %v2841_v8 }
0x1379   :  { %4895 = vrcp.f32 %v2844_v20 }
0x137b   :  { %v2847_v37 = vpop.xlane.xlu0 %2846 }
0x137c   :  { %4897 = vrcp.f32 %v2847_v37 }
0x137f   :  { %v2850_v22 = vpop.xlane.xlu1 %2849  ;;  %v2870_v23 = vpop.permute.xlu0 %2869 }
0x1380   :  { %4899 = vrcp.f32 %v2850_v22  ;;  %4610 = vmatprep.subr.mxu1 %v2870_v23 }
0x1381   :  { %4611 = vmatpush3.msra.mxu1 %v2870_v23 }
0x1383   :  { %v2868_v35 = vpop.permute.xlu1 %2867 }
0x1384   :  { %4612 = vmatprep.subr.mxu1 %v2868_v35 }
0x1385   :  { %v4894_v40 = vpop.eup %4893  ;;  %4613 = vmatpush3.msra.mxu1 %v2868_v35 }
0x1386   :  { %v2855_v19 = vmul.f32 %v4894_v40, %v4888_v28  ;;  %v4896_v25 = vpop.eup %4895 }
0x1387   :  { %v2866_v6 = vpop.permute.xlu1 %2865  ;;  %v2856_v60 = vmul.f32 %v4896_v25, %v4886_v44 }
0x1388   :  { %4614 = vmatprep.subr.mxu1 %v2866_v6  ;;  %4618 = vmatprep.mubr.msk.f32.mxu1 %vm1022_vm8, %v2855_v19 }
0x1389   :  { %4615 = vmatpush3.msra.mxu1 %v2866_v6  ;;  %v4898_v17 = vpop.eup %4897 }
0x138a   :  { %v2857_v15 = vmul.f32 %v4898_v17, %v4890_v0  ;;  %v4075_v0 = vld [vmem:[%s5527_s10 + $0x1] ss:$0 sm:$0xff] }
0x138b   :  { %v2864_v45 = vpop.permute.xlu1 %2863 }
0x138c   :  { %4616 = vmatprep.subr.mxu1 %v2864_v45 }
0x138d   :  { %v4900_v9 = vpop.eup %4899  ;;  %4617 = vmatpush3.msra.mxu1 %v2864_v45 }
0x138e   :  { %4619 = vmatmul.mubr.msk.f32.vlgmr.msra.gmra.mxu1 %vm1022_vm8, %v2856_v60  ;;  %v2858_v38 = vmul.f32 %v4900_v9, %v4892_v18  ;;  %4624 = vmatprep.subr.mxu1 %v4073_v34 }
0x138f   :  { %4621 = vmatprep.mubr.msk.f32.mxu1 %vm1022_vm8, %v2857_v15  ;;  %4625 = vmatpush3.msra.mxu1 %v4073_v34 }
0x1390   :  { %4626 = vmatprep.subr.mxu1 %v4072_v30 }
0x1391   :  { %4627 = vmatpush3.msra.mxu1 %v4072_v30 }
0x1392   :  { %4622 = vmatmul.mubr.msk.f32.gmra.mxu1 %vm1022_vm8, %v2858_v38  ;;  %4628 = vmatprep.subr.mxu1 %v4071_v49 }
0x1393   :  { %4629 = vmatpush3.msra.mxu1 %v4071_v49 }
0x1394   :  { %4630 = vmatprep.subr.mxu1 %v4070_v14 }
0x1395   :  { %4631 = vmatpush3.msra.mxu1 %v4070_v14 }
0x1396   :  { %4632 = vmatprep.subr.mxu1 %v4069_v48 }
0x1397   :  { %4633 = vmatpush3.msra.mxu1 %v4069_v48 }
0x1398   :  { %4634 = vmatprep.subr.mxu1 %v4068_v47 }
0x1399   :  { %4635 = vmatpush3.msra.mxu1 %v4068_v47  ;;  %v4103_v47 = vld [vmem:[%s5558_s14 + $0x178] sm:$0xff] }
0x139a   :  { %4636 = vmatprep.subr.mxu1 %v4067_v12  ;;  %3240 = vmatprep.subr.mxu0 %v4103_v47  ;;  %v4116_v47 = vld [vmem:[%s5626_s28 + $0xf8] sm:$0xff] }
0x139b   :  { %4637 = vmatpush3.msra.mxu1 %v4067_v12  ;;  %v4102_v12 = vld [vmem:[%s5558_s14 + $0x170] sm:$0xff] }
0x139c   :  { %4638 = vmatprep.subr.mxu1 %v4066_v53  ;;  %3241 = vmatpush1.msra.mxu0 %v4102_v12  ;;  %v4115_v12 = vld [vmem:[%s5626_s28 + $0xf0] sm:$0xff] }
0x139d   :  { %4639 = vmatpush3.msra.mxu1 %v4066_v53  ;;  %v4100_v53 = vld [vmem:[%s5558_s14 + $0x160] sm:$0xff] }
0x139e   :  { %4640 = vmatprep.subr.mxu1 %v4065_v27 }
0x139f   :  { %4641 = vmatpush3.msra.mxu1 %v4065_v27  ;;  %v4099_v27 = vld [vmem:[%s5558_s14 + $0x158] sm:$0xff] }
0x13a0   :  { %4642 = vmatprep.subr.mxu1 %v4064_v57 }
0x13a1   :  { %4643 = vmatpush3.msra.mxu1 %v4064_v57  ;;  %v4098_v57 = vld [vmem:[%s5558_s14 + $0x150] sm:$0xff] }
0x13a2   :  { %4644 = vmatprep.subr.mxu1 %v4063_v42 }
0x13a3   :  { %4645 = vmatpush3.msra.mxu1 %v4063_v42  ;;  %v4097_v42 = vld [vmem:[%s5558_s14 + $0x148] sm:$0xff] }
0x13a4   :  { %4646 = vmatprep.subr.mxu1 %v4062_v36 }
0x13a5   :  { %4647 = vmatpush3.msra.mxu1 %v4062_v36  ;;  %v4096_v36 = vld [vmem:[%s5558_s14 + $0x140] sm:$0xff] }
0x13a6   :  { %4648 = vmatprep.subr.mxu1 %v4061_v31 }
0x13a7   :  { %4649 = vmatpush3.msra.mxu1 %v4061_v31  ;;  %v4095_v31 = vld [vmem:[%s5558_s14 + $0x138] sm:$0xff] }
0x13a8   :  { %4650 = vmatprep.subr.mxu1 %v4060_v1 }
0x13a9   :  { %4651 = vmatpush3.msra.mxu1 %v4060_v1  ;;  %v4094_v1 = vld [vmem:[%s5558_s14 + $0x130] sm:$0xff] }
0x13aa   :  { %4652 = vmatprep.subr.mxu1 %v4059_v50 }
0x13ab   :  { %4653 = vmatpush3.msra.mxu1 %v4059_v50  ;;  %v4093_v50 = vld [vmem:[%s5558_s14 + $0x128] sm:$0xff] }
0x13ac   :  { %4654 = vmatprep.subr.mxu1 %v4058_v62 }
0x13ad   :  { %4655 = vmatpush3.msra.mxu1 %v4058_v62  ;;  %v4092_v62 = vld [vmem:[%s5558_s14 + $0x120] sm:$0xff] }
0x13ae   :  { %4662 = vmatprep.subr.mxu1 %v4961_v33 }
0x144e   :  { %v4620_v55 = vpop.f32.mrf.mxu1 }
0x1450   :  { %v2953_v41 = vpop.f32.mrf.mxu1 }
0x1451   :  { %v4759_v4 = vpack.i.bf16 %v4620_v55, %v2953_v41  ;;  %v4091_v55 = vld [vmem:[%s5558_s14 + $0x118] sm:$0xff]  ;;  %v4090_v41 = vld [vmem:[%s5558_s14 + $0x110] sm:$0xff] }
0x1452   :  { %v4623_v7 = vpop.f32.mrf.mxu1 }
0x1453   :  { %4760 = vrot.lane.b32.xlu0 %v4759_v4, %s4966_s2  ;;  %v4089_v4 = vld [vmem:[%s5558_s14 + $0x108] sm:$0xff] }
0x1454   :  { %v2963_v39 = vpop.f32.mrf.mxu1 }
0x1455   :  { %v4764_v2 = vpack.i.bf16 %v4623_v7, %v2963_v39  ;;  %v4088_v7 = vld [vmem:[%s5558_s14 + $0x100] sm:$0xff]  ;;  %v4087_v39 = vld [vmem:[%s5558_s14 + $0xf8] sm:$0xff] }
0x1457   :  { %4765 = vrot.lane.b32.xlu1 %v4764_v2, %s4966_s2  ;;  %v4086_v2 = vld [vmem:[%s5558_s14 + $0xf0] sm:$0xff]  ;;  %s6360_s2 = sld [smem:[%s6431_s0 + %s4978_s15]]  }
0x14c5   :  { %v4761_v29 = vpop.permute.xlu0 %4760 }
0x14c6   :  { %v4763_v10 = vunpack.i.h.bf16 %v4761_v29  ;;  %v4762_v43 = vunpack.i.l.bf16 %v4761_v29  ;;  %v4085_v29 = vld [vmem:[%s5558_s14 + $0xe8] sm:$0xff] }
0x14c8   :  { %v2988_v5 = vsel %vm912_vm7, %v6052_v26, %v4762_v43  ;;  %v2989_v58 = vsel %vm912_vm7, %v6050_v32, %v4763_v10  ;;  %v4084_v10 = vld [vmem:[%s5558_s14 + $0xe0] sm:$0xff]  ;;  %v4083_v43 = vld [vmem:[%s5558_s14 + $0xd8] sm:$0xff] }
0x14c9   :  { %4656 = vmatprep.mubr.f32.mxu1 %v2988_v5  ;;  %v4766_v11 = vpop.permute.xlu1 %4765  ;;  %v4082_v5 = vld [vmem:[%s5558_s14 + $0xd0] sm:$0xff] }
0x14ca   :  { %v4768_v44 = vunpack.i.h.bf16 %v4766_v11  ;;  %v4767_v13 = vunpack.i.l.bf16 %v4766_v11  ;;  %4657 = vmatmul.mubr.f32.vlgmr.msra.gmra.mxu1 %v2989_v58  ;;  %v4081_v58 = vld [vmem:[%s5558_s14 + $0xc8] sm:$0xff]  ;;  %v4080_v11 = vld [vmem:[%s5558_s14 + $0xc0] sm:$0xff] }
0x14cc   :  { %v2990_v28 = vsel %vm912_vm7, %v6056_v56, %v4767_v13  ;;  %v2991_v61 = vsel %vm912_vm7, %v6054_v59, %v4768_v44 }
0x14cd   :  { %4659 = vmatprep.mubr.f32.mxu1 %v2990_v28 }
0x14ce   :  { %4660 = vmatmul.mubr.f32.gmra.mxu1 %v2991_v61 }
0x158a   :  { %v4658_v54 = vpop.f32.mrf.mxu1 }
0x158b   :  { %v3089_v18 = vadd.f32 %v4658_v54, %v4075_v0 }
0x158c   :  { %v3083_v26 = vpop.f32.mrf.mxu1 }
0x158d   :  { %v3103_v16 = vadd.f32 %v3089_v18, %v5907_v21  ;;  %v3084_v32 = vadd.f32 %v4075_v0, %v3083_v26 }
0x158e   :  { %v4661_v8 = vpop.f32.mrf.mxu1 }
0x158f   :  { %v3099_v20 = vadd.f32 %v4661_v8, %v4075_v0  ;;  %v3113_v37 = vsel %vm127_vm0, %v3103_v16, 0.0  ;;  %v3102_v22 = vadd.f32 %v3084_v32, %v5899_v51 }
0x1590   :  { %3114 = vadd.xlane.f32.xlu1 %v3113_v37  ;;  %v3093_v56 = vpop.f32.mrf.mxu1 }
0x1591   :  { %v3094_v23 = vadd.f32 %v4075_v0, %v3093_v56  ;;  %v3110_v59 = vsel %vm127_vm0, %v3102_v22, 0.0  ;;  %v6130_v30 = vadd.f32 %v3099_v20, %v5925_v52  ;;  %v4101_v52 = vld [vmem:[%s5558_s14 + $0x168] sm:$0xff] }
0x1592   :  { %3111 = vadd.xlane.f32.xlu0 %v3110_v59  ;;  %3242 = vmatprep.subr.mxu0 %v4101_v52  ;;  %v4114_v52 = vld [vmem:[%s5626_s28 + $0xe8] sm:$0xff] }
0x1593   :  { %v3104_v35 = vadd.f32 %v3094_v23, %v5917_v3  ;;  %v3119_v48 = vsel %vm127_vm0, %v6130_v30, 0.0  ;;  %3243 = vmatpush1.msra.mxu0 %v4100_v53  ;;  %v6168_v23 = vld [vmem:[%s5591_s19 + $0x1] ss:$0 sm:$0xff]  ;;  %s6392_s19 = sld [smem:[%s6431_s0 + %s4980_s6]]  }
0x1594   :  { %3244 = vmatprep.subr.mxu0 %v4099_v27  ;;  %v4113_v53 = vld [vmem:[%s5626_s28 + $0xe0] sm:$0xff]  ;;  %v4112_v27 = vld [vmem:[%s5626_s28 + $0xd8] sm:$0xff] }
0x1595   :  { %v3116_v40 = vsel %vm127_vm0, %v3104_v35, 0.0  ;;  %3245 = vmatpush1.msra.mxu0 %v4098_v57  ;;  %v4111_v57 = vld [vmem:[%s5626_s28 + $0xd0] sm:$0xff] }
0x1596   :  { %3117 = vadd.xlane.f32.xlu0 %v3116_v40  ;;  %3246 = vmatprep.subr.mxu0 %v4097_v42  ;;  %v4110_v42 = vld [vmem:[%s5626_s28 + $0xc8] sm:$0xff] }
0x1597   :  { %3247 = vmatpush1.msra.mxu0 %v4096_v36  ;;  %v4109_v36 = vld [vmem:[%s5626_s28 + $0xc0] sm:$0xff] }
0x1598   :  { %3248 = vmatprep.subr.mxu0 %v4095_v31  ;;  %v4132_v31 = vld [vmem:[%s5626_s28 + $0x178] sm:$0xff] }
0x1599   :  { %3249 = vmatpush1.msra.mxu0 %v4094_v1  ;;  %v4131_v1 = vld [vmem:[%s5626_s28 + $0x170] sm:$0xff] }
0x159a   :  { %3250 = vmatprep.subr.mxu0 %v4093_v50  ;;  %v4130_v50 = vld [vmem:[%s5626_s28 + $0x168] sm:$0xff] }
0x159b   :  { %3251 = vmatpush1.msra.mxu0 %v4092_v62  ;;  %v4129_v62 = vld [vmem:[%s5626_s28 + $0x160] sm:$0xff] }
0x159c   :  { %3252 = vmatprep.subr.mxu0 %v4091_v55  ;;  %v4128_v55 = vld [vmem:[%s5626_s28 + $0x158] sm:$0xff] }
0x159d   :  { %3253 = vmatpush1.msra.mxu0 %v4090_v41  ;;  %v4127_v41 = vld [vmem:[%s5626_s28 + $0x150] sm:$0xff] }
0x159e   :  { %3254 = vmatprep.subr.mxu0 %v4089_v4  ;;  %v4126_v4 = vld [vmem:[%s5626_s28 + $0x148] sm:$0xff] }
0x159f   :  { %3255 = vmatpush1.msra.mxu0 %v4088_v7  ;;  %v4125_v7 = vld [vmem:[%s5626_s28 + $0x140] sm:$0xff] }
0x15a0   :  { %3256 = vmatprep.subr.mxu0 %v4087_v39 }
0x15a1   :  { %3257 = vmatpush1.msra.mxu0 %v4086_v2 }
0x15a2   :  { %3258 = vmatprep.subr.mxu0 %v4085_v29 }
0x15a3   :  { %3259 = vmatpush1.msra.mxu0 %v4084_v10 }
0x15a4   :  { %3260 = vmatprep.subr.mxu0 %v4083_v43 }
0x15a5   :  { %3261 = vmatpush1.msra.mxu0 %v4082_v5 }
0x15a6   :  { %3262 = vmatprep.subr.mxu0 %v4081_v58 }
0x15a7   :  { %3263 = vmatpush1.msra.mxu0 %v4080_v11  ;;  %v4104_v11 = vld [vmem:[%s5678_s4 + $0x2] sm:$0x3] }
0x15a8   :  { %3582 = vmatprep.subr.mxu0 %v4961_v33 }
0x1619   :  { %v3115_v19 = vpop.xlane.xlu1 %3114 }
0x161a   :  { %v3123_v21 = vmul.f32 0.010416667, %v3115_v19 }
0x161b   :  { %v3112_v6 = vpop.xlane.xlu0 %3111 }
0x161c   :  { %v3122_v25 = vmul.f32 0.010416667, %v3112_v6  ;;  %v6116_v17 = vsub.f32 %v3103_v16, %v3123_v21 }
0x161e   :  { %v6118_v45 = vsub.f32 %v3102_v22, %v3122_v25  ;;  %v3131_v38 = vmul.f32 %v6116_v17, %v6116_v17 }
0x161f   :  { %v3118_v51 = vpop.xlane.xlu0 %3117 }
0x1620   :  { %v3124_v60 = vmul.f32 0.010416667, %v3118_v51  ;;  %v3130_v9 = vmul.f32 %v6118_v45, %v6118_v45  ;;  %v3137_v49 = vsel %vm127_vm0, %v3131_v38, 0.0  ;;  %v4122_v38 = vld [vmem:[%s5626_s28 + $0x128] sm:$0xff] }
0x1622   :  { %v6122_v15 = vsub.f32 %v3104_v35, %v3124_v60  ;;  %v3134_v3 = vsel %vm127_vm0, %v3130_v9, 0.0  ;;  %v6172_v35 = vld [vmem:[%s5596_s23 + $0x1] ss:$0 sm:$0xff] }
0x1623   :  { %3135 = vadd.xlane.f32.xlu0 %v3134_v3  ;;  %v4123_v3 = vld [vmem:[%s5626_s28 + $0x130] sm:$0xff] }
0x1624   :  { %v3132_v34 = vmul.f32 %v6122_v15, %v6122_v15 }
0x1626   :  { %v3140_v14 = vsel %vm127_vm0, %v3132_v34, 0.0  ;;  %v4121_v34 = vld [vmem:[%s5626_s28 + $0x120] sm:$0xff] }
0x1627   :  { %3138 = vadd.xlane.f32.xlu0 %v3137_v49  ;;  %3141 = vadd.xlane.f32.xlu1 %v3140_v14  ;;  %v4119_v49 = vld [vmem:[%s5626_s28 + $0x110] sm:$0xff]  ;;  %v4118_v14 = vld [vmem:[%s5626_s28 + $0x108] sm:$0xff] }
0x162b   :  { %3120 = vadd.xlane.f32.xlu0 %v3119_v48  ;;  %v4117_v48 = vld [vmem:[%s5626_s28 + $0x100] sm:$0xff] }
0x16ac   :  { %v3136_v44 = vpop.xlane.xlu0 %3135 }
0x16ad   :  { %v3146_v13 = vmul.f32 0.010416667, %v3136_v44  ;;  %v6247_v44 = vrot.slane %v4104_v11, %v5241_v46 }
0x16af   :  { %v3150_v28 = vadd.f32 1e-05, %v3146_v13  ;;  %v6250_v13 = vrot.slane %v4104_v11, %v5345_v63 }
0x16b0   :  { %v3142_v61 = vpop.xlane.xlu1 %3141  ;;  %v3139_v0 = vpop.xlane.xlu0 %3138 }
0x16b1   :  { %4901 = vrsqrt.f32 %v3150_v28  ;;  %v3148_v54 = vmul.f32 0.010416667, %v3142_v61  ;;  %v3147_v18 = vmul.f32 0.010416667, %v3139_v0 }
0x16b3   :  { %v3152_v26 = vadd.f32 1e-05, %v3148_v54  ;;  %v3151_v16 = vadd.f32 1e-05, %v3147_v18 }
0x16b4   :  { %v3121_v32 = vpop.xlane.xlu0 %3120 }
0x16b5   :  { %4903 = vrsqrt.f32 %v3152_v26  ;;  %v3125_v8 = vmul.f32 0.010416667, %v3121_v32 }
0x16b6   :  { %4905 = vrsqrt.f32 %v3151_v16 }
0x16b7   :  { %v6162_v20 = vsub.f32 %v6130_v30, %v3125_v8  ;;  %v4120_v30 = vld [vmem:[%s5626_s28 + $0x118] sm:$0xff] }
0x16b9   :  { %v3133_v37 = vmul.f32 %v6162_v20, %v6162_v20 }
0x16bb   :  { %v3143_v22 = vsel %vm127_vm0, %v3133_v37, 0.0 }
0x16bc   :  { %3144 = vadd.xlane.f32.xlu1 %v3143_v22 }
0x16be   :  { %v4902_v56 = vpop.eup %4901 }
0x16bf   :  { %v3158_v59 = vmul.f32 %v4902_v56, %v6118_v45 }
0x16c1   :  { %v3168_v40 = vmul.f32 %v6168_v23, %v3158_v59 }
0x16c2   :  { %v4904_v19 = vpop.eup %4903 }
0x16c3   :  { %v4906_v21 = vpop.eup %4905  ;;  %v6176_v6 = vadd.f32 %v6172_v35, %v3168_v40  ;;  %v3160_v51 = vmul.f32 %v4904_v19, %v6122_v15  ;;  %v4124_v15 = vld [vmem:[%s5626_s28 + $0x138] sm:$0xff] }
0x16c4   :  { %v3159_v25 = vmul.f32 %v4906_v21, %v6116_v17 }
0x16c5   :  { %4105 = vmatmul.mubr.msk.f32.vlgmr.msra.gmra.mxu0 %vm127_vm0, %v6176_v6  ;;  %v3170_v9 = vmul.f32 %v6168_v23, %v3160_v51 }
0x16c6   :  { %3302 = vmatprep.mubr.f32.mxu0 %v4961_v33  ;;  %v3169_v45 = vmul.f32 %v6168_v23, %v3159_v25  ;;  %3583 = vmatpush1.msra.mxu0 %v4124_v15 }
0x16c7   :  { %v6189_v17 = vadd.f32 %v6172_v35, %v3170_v9  ;;  %3584 = vmatprep.subr.mxu0 %v4961_v33 }
0x16c8   :  { %v3179_v60 = vadd.f32 %v6172_v35, %v3169_v45  ;;  %3585 = vmatpush1.msra.mxu0 %v4123_v3 }
0x16c9   :  { %3586 = vmatprep.subr.mxu0 %v4961_v33 }
0x16ca   :  { %4106 = vmatmul.mubr.msk.f32.gmra.mxu0 %vm127_vm0, %v3179_v60 }
0x16cb   :  { %3308 = vmatprep.mubr.f32.mxu0 %v4961_v33  ;;  %3587 = vmatpush1.msra.mxu0 %v4122_v38 }
0x16cc   :  { %3588 = vmatprep.subr.mxu0 %v4961_v33 }
0x16cd   :  { %3589 = vmatpush1.msra.mxu0 %v4121_v34 }
0x16ce   :  { %4107 = vmatmul.mubr.msk.f32.gmra.mxu0 %vm127_vm0, %v6189_v17  ;;  %3590 = vmatprep.subr.mxu0 %v4961_v33 }
0x16cf   :  { %3314 = vmatprep.mubr.f32.mxu0 %v4961_v33  ;;  %3591 = vmatpush1.msra.mxu0 %v4120_v30 }
0x16d0   :  { %3592 = vmatprep.subr.mxu0 %v4961_v33 }
0x16d1   :  { %3593 = vmatpush1.msra.mxu0 %v4119_v49 }
0x16d2   :  { %3594 = vmatprep.subr.mxu0 %v4961_v33 }
0x16d3   :  { %3595 = vmatpush1.msra.mxu0 %v4118_v14 }
0x16d4   :  { %3596 = vmatprep.subr.mxu0 %v4961_v33 }
0x16d5   :  { %3597 = vmatpush1.msra.mxu0 %v4117_v48 }
0x16d6   :  { %3598 = vmatprep.subr.mxu0 %v4961_v33 }
0x16d7   :  { %3599 = vmatpush1.msra.mxu0 %v4116_v47 }
0x16d8   :  { %3600 = vmatprep.subr.mxu0 %v4961_v33 }
0x16d9   :  { %3601 = vmatpush1.msra.mxu0 %v4115_v12 }
0x16da   :  { %3602 = vmatprep.subr.mxu0 %v4961_v33 }
0x16db   :  { %3603 = vmatpush1.msra.mxu0 %v4114_v52 }
0x16dc   :  { %3604 = vmatprep.subr.mxu0 %v4961_v33 }
0x16dd   :  { %3605 = vmatpush1.msra.mxu0 %v4113_v53 }
0x16de   :  { %3606 = vmatprep.subr.mxu0 %v4961_v33 }
0x16df   :  { %3607 = vmatpush1.msra.mxu0 %v4112_v27 }
0x16e0   :  { %3608 = vmatprep.subr.mxu0 %v4961_v33 }
0x16e1   :  { %3609 = vmatpush1.msra.mxu0 %v4111_v57 }
0x16e2   :  { %3610 = vmatprep.subr.mxu0 %v4961_v33 }
0x16e3   :  { %3611 = vmatpush1.msra.mxu0 %v4110_v42 }
0x16e4   :  { %3612 = vmatprep.subr.mxu0 %v4961_v33 }
0x16e5   :  { %3613 = vmatpush1.msra.mxu0 %v4109_v36 }
0x16e6   :  { %3630 = vmatprep.subr.mxu0 %v4961_v33 }
0x16e7   :  { %3631 = vmatpush2.msra.mxu0 %v4132_v31 }
0x16e8   :  { %3632 = vmatprep.subr.mxu0 %v4961_v33 }
0x16e9   :  { %3633 = vmatpush2.msra.mxu0 %v4131_v1 }
0x16ea   :  { %3634 = vmatprep.subr.mxu0 %v4961_v33 }
0x16eb   :  { %3635 = vmatpush2.msra.mxu0 %v4130_v50 }
0x16ec   :  { %3636 = vmatprep.subr.mxu0 %v4961_v33 }
0x16ed   :  { %3637 = vmatpush2.msra.mxu0 %v4129_v62 }
0x16ee   :  { %3638 = vmatprep.subr.mxu0 %v4961_v33 }
0x16ef   :  { %3639 = vmatpush2.msra.mxu0 %v4128_v55 }
0x16f0   :  { %3640 = vmatprep.subr.mxu0 %v4961_v33 }
0x16f1   :  { %3641 = vmatpush2.msra.mxu0 %v4127_v41 }
0x16f2   :  { %3642 = vmatprep.subr.mxu0 %v4961_v33 }
0x16f3   :  { %3643 = vmatpush2.msra.mxu0 %v4126_v4 }
0x16f4   :  { %3644 = vmatprep.subr.mxu0 %v4961_v33 }
0x16f5   :  { %3645 = vmatpush2.msra.mxu0 %v4125_v7 }
0x1745   :  { %v3145_v39 = vpop.xlane.xlu1 %3144 }
0x1746   :  { %v3149_v2 = vmul.f32 0.010416667, %v3145_v39 }
0x1748   :  { %v3153_v29 = vadd.f32 1e-05, %v3149_v2 }
0x174a   :  { %4907 = vrsqrt.f32 %v3153_v29 }
0x1757   :  { %v4908_v10 = vpop.eup %4907 }
0x1758   :  { %v3161_v43 = vmul.f32 %v4908_v10, %v6162_v20 }
0x175a   :  { %v3171_v5 = vmul.f32 %v6168_v23, %v3161_v43 }
0x175c   :  { %v3181_v58 = vadd.f32 %v6172_v35, %v3171_v5 }
0x175e   :  { %4108 = vmatmul.mubr.msk.f32.gmra.mxu0 %vm127_vm0, %v3181_v58 }
0x1785   :  { %v3298_v28 = vpop.f32.mrf.mxu0 }
0x1786   :  { %v6253_v61 = vadd.f32 %v3298_v28, %v6247_v44 }
0x1787   :  { %v3300_v0 = vpop.f32.mrf.mxu0 }
0x1788   :  { %v6256_v54 = vmul.f32 0.70710677, %v6253_v61  ;;  %v6259_v18 = vadd.f32 %v3300_v0, %v6250_v13 }
0x178a   :  { %v3353_v26 = vand.u32 2147483647, %v6256_v54  ;;  %v6263_v16 = vmul.f32 0.70710677, %v6259_v18  ;;  %v3304_v46 = vpop.f32.mrf.mxu0  ;;  %vm3337_vm2 = vcmp.ge.f32.partialorder %v6256_v54, 0.0 }
0x178b   :  { %v6266_v63 = vadd.f32 %v3304_v46, %v6247_v44 }
0x178c   :  { %v3361_v32 = vmul.f32 0.3275911, %v3353_v26  ;;  %v3354_v8 = vand.u32 2147483647, %v6263_v16  ;;  %v3306_v20 = vpop.f32.mrf.mxu0  ;;  %v3465_v38 = vsub.f32 0.0, %v3353_v26  ;;  %vm3338_vm3 = vcmp.ge.f32.partialorder %v6263_v16, 0.0 }
0x178d   :  { %v6270_v37 = vmul.f32 0.70710677, %v6266_v63  ;;  %v6273_v22 = vadd.f32 %v3306_v20, %v6250_v13 }
0x178e   :  { %v3369_v56 = vadd.f32 1.0, %v3361_v32  ;;  %v3362_v23 = vmul.f32 0.3275911, %v3354_v8  ;;  %v3310_v59 = vpop.f32.mrf.mxu0  ;;  %v3466_v14 = vsub.f32 0.0, %v3354_v8  ;;  %v3473_v12 = vmul.f32 %v3465_v38, %v3353_v26 }
0x178f   :  { %v3355_v35 = vand.u32 2147483647, %v6270_v37  ;;  %v6277_v40 = vmul.f32 0.70710677, %v6273_v22  ;;  %v6281_v60 = vadd.f32 %v3310_v59, %v6247_v44  ;;  %vm3339_vm4 = vcmp.ge.f32.partialorder %v6270_v37, 0.0 }
0x1790   :  { %4909 = vrcp.f32 %v3369_v56  ;;  %v3370_v19 = vadd.f32 1.0, %v3362_v23  ;;  %v3312_v25 = vpop.f32.mrf.mxu0  ;;  %v3474_v42 = vmul.f32 %v3466_v14, %v3354_v8  ;;  %v3481_v1 = vmul.f32 1.442695, %v3473_v12 }
0x1791   :  { %v3363_v21 = vmul.f32 0.3275911, %v3355_v35  ;;  %v3356_v51 = vand.u32 2147483647, %v6277_v40  ;;  %v6284_v15 = vadd.f32 %v3312_v25, %v6250_v13  ;;  %v6287_v3 = vmul.f32 0.70710677, %v6281_v60 }
0x1792   :  { %4911 = vrcp.f32 %v3370_v19  ;;  %v3467_v52 = vsub.f32 0.0, %v3355_v35  ;;  %v3483_v7 = vmul.f32 1.442695, %v3474_v42  ;;  %vm3340_vm5 = vcmp.ge.f32.partialorder %v6277_v40, 0.0 }
0x1793   :  { %v3371_v45 = vadd.f32 1.0, %v3363_v21  ;;  %v3364_v9 = vmul.f32 0.3275911, %v3356_v51  ;;  %v6290_v30 = vmul.f32 0.70710677, %v6284_v15  ;;  %v3468_v62 = vsub.f32 0.0, %v3356_v51 }
0x1794   :  { %v3357_v49 = vand.u32 2147483647, %v6287_v3  ;;  %v3475_v50 = vmul.f32 %v3467_v52, %v3355_v35  ;;  %vm3341_vm6 = vcmp.ge.f32.partialorder %v6287_v3, 0.0 }
0x1795   :  { %4913 = vrcp.f32 %v3371_v45  ;;  %v3372_v34 = vadd.f32 1.0, %v3364_v9  ;;  %v3358_v47 = vand.u32 2147483647, %v6290_v30  ;;  %v3476_v10 = vmul.f32 %v3468_v62, %v3356_v51 }
0x1796   :  { %v3365_v48 = vmul.f32 0.3275911, %v3357_v49  ;;  %v3485_v29 = vmul.f32 1.442695, %v3475_v50  ;;  %v3469_v5 = vsub.f32 0.0, %v3357_v49  ;;  %vm3342_vm8 = vcmp.ge.f32.partialorder %v6290_v30, 0.0 }
0x1797   :  { %4915 = vrcp.f32 %v3372_v34  ;;  %v3366_v27 = vmul.f32 0.3275911, %v3358_v47  ;;  %v3487_v8 = vmul.f32 1.442695, %v3476_v10  ;;  %v3470_v20 = vsub.f32 0.0, %v3358_v47 }
0x1798   :  { %v3373_v53 = vadd.f32 1.0, %v3365_v48  ;;  %v3477_v23 = vmul.f32 %v3469_v5, %v3357_v49 }
0x1799   :  { %v3374_v36 = vadd.f32 1.0, %v3366_v27  ;;  %v3478_v38 = vmul.f32 %v3470_v20, %v3358_v47 }
0x179a   :  { %4917 = vrcp.f32 %v3373_v53  ;;  %v3489_v14 = vmul.f32 1.442695, %v3477_v23 }
0x179b   :  { %4919 = vrcp.f32 %v3374_v36  ;;  %v3491_v50 = vmul.f32 1.442695, %v3478_v38 }
0x179c   :  { %4921 = vpow2.f32 %v3481_v1 }
0x179d   :  { %v4910_v57 = vpop.eup %4909  ;;  %4923 = vpow2.f32 %v3483_v7 }
0x179e   :  { %v3393_v31 = vmul.f32 1.0614054, %v4910_v57  ;;  %4925 = vpow2.f32 %v3485_v29 }
0x179f   :  { %v4912_v55 = vpop.eup %4911  ;;  %4927 = vpow2.f32 %v3487_v8 }
0x17a0   :  { %v3401_v41 = vadd.f32 -1.4531521, %v3393_v31  ;;  %v3394_v4 = vmul.f32 1.0614054, %v4912_v55  ;;  %4929 = vpow2.f32 %v3489_v14 }
0x17a1   :  { %4931 = vpow2.f32 %v3491_v50 }
0x17a2   :  { %v6294_v39 = vpop.eup %4913  ;;  %v3409_v2 = vmul.f32 %v4910_v57, %v3401_v41  ;;  %v3402_v43 = vadd.f32 -1.4531521, %v3394_v4 }
0x17a3   :  { %v3395_v58 = vmul.f32 1.0614054, %v6294_v39 }
0x17a4   :  { %v3417_v11 = vadd.f32 1.4214138, %v3409_v2  ;;  %v6297_v28 = vpop.eup %4915  ;;  %v3410_v0 = vmul.f32 %v4912_v55, %v3402_v43  ;;  %v3345_v43 = vsel %vm3337_vm2, 1.0, %v4974_v24 }
0x17a5   :  { %v3403_v26 = vadd.f32 -1.4531521, %v3395_v58  ;;  %v3396_v32 = vmul.f32 1.0614054, %v6297_v28 }
0x17a6   :  { %v3425_v46 = vmul.f32 %v4910_v57, %v3417_v11  ;;  %v3418_v56 = vadd.f32 1.4214138, %v3410_v0 }
0x17a7   :  { %v3411_v59 = vmul.f32 %v6294_v39, %v3403_v26  ;;  %v3404_v19 = vadd.f32 -1.4531521, %v3396_v32  ;;  %v6301_v51 = vpop.eup %4917 }
0x17a8   :  { %v3433_v35 = vadd.f32 -0.28449672, %v3425_v46  ;;  %v3426_v21 = vmul.f32 %v4912_v55, %v3418_v56  ;;  %v3397_v12 = vmul.f32 1.0614054, %v6301_v51  ;;  %v6306_v53 = vpop.eup %4919 }
0x17a9   :  { %v3419_v25 = vadd.f32 1.4214138, %v3411_v59  ;;  %v3412_v9 = vmul.f32 %v6297_v28, %v3404_v19  ;;  %v3398_v47 = vmul.f32 1.0614054, %v6306_v53  ;;  %v4922_v62 = vpop.eup %4921 }
0x17aa   :  { %v3441_v45 = vmul.f32 %v4910_v57, %v3433_v35  ;;  %v3434_v34 = vadd.f32 -0.28449672, %v3426_v21  ;;  %v3405_v36 = vadd.f32 -1.4531521, %v3397_v12  ;;  %v4924_v11 = vpop.eup %4923  ;;  %v3346_v21 = vsel %vm3338_vm3, 1.0, %v4974_v24 }
0x17ab   :  { %v3427_v48 = vmul.f32 %v6294_v39, %v3419_v25  ;;  %v3420_v52 = vadd.f32 1.4214138, %v3412_v9  ;;  %v3406_v10 = vadd.f32 -1.4531521, %v3398_v47  ;;  %v4926_v56 = vpop.eup %4925  ;;  %v3322_v12 = vmul.f32 0.5, %v6259_v18 }
0x17ac   :  { %v3449_v49 = vadd.f32 0.2548296, %v3441_v45  ;;  %v3442_v27 = vmul.f32 %v4912_v55, %v3434_v34  ;;  %v3413_v7 = vmul.f32 %v6301_v51, %v3405_v36  ;;  %v4928_v45 = vpop.eup %4927 }
0x17ad   :  { %v3435_v42 = vadd.f32 -0.28449672, %v3427_v48  ;;  %v3428_v1 = vmul.f32 %v6297_v28, %v3420_v52  ;;  %v3414_v46 = vmul.f32 %v6306_v53, %v3406_v10  ;;  %v4930_v50 = vpop.eup %4929  ;;  %v3323_v10 = vmul.f32 0.5, %v6266_v63 }
0x17ae   :  { %v3457_v31 = vmul.f32 %v4910_v57, %v3449_v49  ;;  %v3450_v41 = vadd.f32 0.2548296, %v3442_v27  ;;  %v3421_v58 = vadd.f32 1.4214138, %v3413_v7 }
0x17af   :  { %v3443_v4 = vmul.f32 %v6294_v39, %v3435_v42  ;;  %v3436_v29 = vadd.f32 -0.28449672, %v3428_v1  ;;  %v3422_v23 = vadd.f32 1.4214138, %v3414_v46  ;;  %v3348_v1 = vsel %vm3340_vm5, 1.0, %v4974_v24 }
0x17b0   :  { %v3497_v2 = vmul.f32 %v4922_v62, %v3457_v31  ;;  %v3458_v57 = vmul.f32 %v4912_v55, %v3450_v41  ;;  %v3429_v20 = vmul.f32 %v6301_v51, %v3421_v58  ;;  %v3325_v46 = vmul.f32 0.5, %v6281_v60 }
0x17b1   :  { %v3451_v5 = vadd.f32 0.2548296, %v3443_v4  ;;  %v3444_v26 = vmul.f32 %v6297_v28, %v3436_v29  ;;  %v3430_v16 = vmul.f32 %v6306_v53, %v3422_v23  ;;  %v4932_v29 = vpop.eup %4931 }
0x17b2   :  { %v3505_v0 = vsub.f32 1.0, %v3497_v2  ;;  %v3498_v32 = vmul.f32 %v4924_v11, %v3458_v57  ;;  %v3437_v19 = vadd.f32 -0.28449672, %v3429_v20  ;;  %v3349_v57 = vsel %vm3341_vm6, 1.0, %v4974_v24 }
0x17b3   :  { %v3459_v8 = vmul.f32 %v6294_v39, %v3451_v5  ;;  %v3452_v55 = vadd.f32 0.2548296, %v3444_v26  ;;  %v3347_v39 = vsel %vm3339_vm4, 1.0, %v4974_v24  ;;  %v3438_v48 = vadd.f32 -0.28449672, %v3430_v16 }
0x17b4   :  { %v3513_v54 = vmul.f32 %v3505_v0, %v3345_v43  ;;  %v3506_v59 = vsub.f32 1.0, %v3498_v32  ;;  %v3445_v34 = vmul.f32 %v6301_v51, %v3437_v19  ;;  %v3326_v26 = vmul.f32 0.5, %v6284_v15 }
0x17b5   :  { %v3499_v35 = vmul.f32 %v4926_v56, %v3459_v8  ;;  %v3460_v25 = vmul.f32 %v6297_v28, %v3452_v55  ;;  %v3321_v28 = vmul.f32 0.5, %v6253_v61  ;;  %v3446_v36 = vmul.f32 %v6306_v53, %v3438_v48 }
0x17b6   :  { %v3514_v9 = vmul.f32 %v3506_v59, %v3346_v21  ;;  %v3521_v14 = vadd.f32 1.0, %v3513_v54  ;;  %v3453_v27 = vadd.f32 0.2548296, %v3445_v34  ;;  %v3324_v61 = vmul.f32 0.5, %v6273_v22 }
0x17b7   :  { %v3507_v38 = vsub.f32 1.0, %v3499_v35  ;;  %v3500_v37 = vmul.f32 %v4928_v45, %v3460_v25  ;;  %v3454_v41 = vadd.f32 0.2548296, %v3446_v36  ;;  %v3350_v22 = vsel %vm3342_vm8, 1.0, %v4974_v24 }
0x17b8   :  { %v3522_v49 = vadd.f32 1.0, %v3514_v9  ;;  %v3461_v47 = vmul.f32 %v6301_v51, %v3453_v27  ;;  %v3529_v62 = vmul.f32 %v3521_v14, %v3321_v28 }
0x17b9   :  { %v3515_v52 = vmul.f32 %v3507_v38, %v3347_v39  ;;  %v3508_v42 = vsub.f32 1.0, %v3500_v37  ;;  %v3462_v2 = vmul.f32 %v6306_v53, %v3454_v41 }
0x17ba   :  { %v3530_v31 = vmul.f32 %v3522_v49, %v3322_v12  ;;  %v3501_v4 = vmul.f32 %v4930_v50, %v3461_v47 }
0x17bb   :  { %v3516_v40 = vmul.f32 %v3508_v42, %v3348_v1  ;;  %v3523_v18 = vadd.f32 1.0, %v3515_v52  ;;  %v3502_v3 = vmul.f32 %v4932_v29, %v3462_v2 }
0x17bc   :  { %4135 = vmatprep.mubr.msk.f32.mxu0 %vm912_vm7, %v3530_v31  ;;  %v3509_v51 = vsub.f32 1.0, %v3501_v4 }
0x17bd   :  { %v3524_v7 = vadd.f32 1.0, %v3516_v40  ;;  %3647 = vmatmul.mubr.f32.vlgmr.msra.gmra.mxu0 %v3529_v62  ;;  %v3531_v5 = vmul.f32 %v3523_v18, %v3323_v10  ;;  %v3510_v11 = vsub.f32 1.0, %v3502_v3 }
0x17be   :  { %v3517_v58 = vmul.f32 %v3509_v51, %v3349_v57 }
0x17bf   :  { %v3532_v43 = vmul.f32 %v3524_v7, %v3324_v61  ;;  %v3518_v53 = vmul.f32 %v3510_v11, %v3350_v22 }
0x17c0   :  { %v3525_v0 = vadd.f32 1.0, %v3517_v58 }
0x17c1   :  { %4136 = vmatprep.mubr.msk.f32.mxu0 %vm912_vm7, %v3532_v43  ;;  %v3526_v63 = vadd.f32 1.0, %v3518_v53 }
0x17c2   :  { %3652 = vmatmul.mubr.f32.gmra.mxu0 %v3531_v5  ;;  %v3533_v8 = vmul.f32 %v3525_v0, %v3325_v46  ;;  %v4134_v0 = vld [vmem:[%s5830_s9 + $0x1] ss:$0 sm:$0xff] }
0x17c3   :  { %v3534_v32 = vmul.f32 %v3526_v63, %v3326_v26 }
0x17c5   :  { %4137 = vmatprep.mubr.msk.f32.mxu0 %vm912_vm7, %v3534_v32 }
0x17c6   :  { %3656 = vmatmul.mubr.f32.gmra.mxu0 %v3533_v8 }
0x181e   :  { %v3316_v30 = vpop.f32.mrf.mxu0 }
0x181f   :  { %v3317_v20 = vadd.f32 %v3316_v30, %v6247_v44 }
0x1820   :  { %v3318_v56 = vpop.f32.mrf.mxu0 }
0x1821   :  { %v3335_v54 = vmul.f32 0.70710677, %v3317_v20  ;;  %v3319_v55 = vadd.f32 %v3318_v56, %v6250_v13  ;;  %v3327_v11 = vmul.f32 0.5, %v3317_v20 }
0x1823   :  { %v3359_v23 = vand.u32 2147483647, %v3335_v54  ;;  %v3336_v59 = vmul.f32 0.70710677, %v3319_v55  ;;  %vm3343_vm9 = vcmp.ge.f32.partialorder %v3335_v54, 0.0  ;;  %v3328_v5 = vmul.f32 0.5, %v3319_v55 }
0x1824   :  { %v3351_v2 = vsel %vm3343_vm9, 1.0, %v4974_v24 }
0x1825   :  { %v3367_v35 = vmul.f32 0.3275911, %v3359_v23  ;;  %v3360_v19 = vand.u32 2147483647, %v3336_v59  ;;  %v3471_v25 = vsub.f32 0.0, %v3359_v23  ;;  %vm3344_vm10 = vcmp.ge.f32.partialorder %v3336_v59, 0.0 }
0x1826   :  { %v3352_v43 = vsel %vm3344_vm10, 1.0, %v4974_v24 }
0x1827   :  { %v3375_v15 = vadd.f32 1.0, %v3367_v35  ;;  %v3368_v21 = vmul.f32 0.3275911, %v3360_v19  ;;  %v3472_v16 = vsub.f32 0.0, %v3360_v19  ;;  %v3479_v45 = vmul.f32 %v3471_v25, %v3359_v23 }
0x1829   :  { %4933 = vrcp.f32 %v3375_v15  ;;  %v3376_v60 = vadd.f32 1.0, %v3368_v21  ;;  %v3480_v39 = vmul.f32 %v3472_v16, %v3360_v19  ;;  %v3493_v38 = vmul.f32 1.442695, %v3479_v45 }
0x182b   :  { %4935 = vrcp.f32 %v3376_v60  ;;  %v3495_v13 = vmul.f32 1.442695, %v3480_v39 }
0x182c   :  { %4937 = vpow2.f32 %v3493_v38  ;;  %v3728_v38 = vld [vmem:[%s6360_s2 + $0x50] sm:$0xff] }
0x182d   :  { %4939 = vpow2.f32 %v3495_v13  ;;  %v3723_v13 = vld [vmem:[%s6360_s2 + $0x28] sm:$0xff] }
0x1836   :  { %v4934_v9 = vpop.eup %4933 }
0x1837   :  { %v3399_v44 = vmul.f32 1.0614054, %v4934_v9 }
0x1838   :  { %v4936_v34 = vpop.eup %4935 }
0x1839   :  { %v3407_v14 = vadd.f32 -1.4531521, %v3399_v44  ;;  %v3400_v37 = vmul.f32 1.0614054, %v4936_v34  ;;  %v4938_v40 = vpop.eup %4937  ;;  %v3727_v44 = vld [vmem:[%s6360_s2 + $0x48] sm:$0xff] }
0x183a   :  { %v4940_v61 = vpop.eup %4939 }
0x183b   :  { %v3415_v48 = vmul.f32 %v4934_v9, %v3407_v14  ;;  %v3408_v12 = vadd.f32 -1.4531521, %v3400_v37  ;;  %v3725_v14 = vld [vmem:[%s6360_s2 + $0x38] sm:$0xff]  ;;  %v3724_v37 = vld [vmem:[%s6360_s2 + $0x30] sm:$0xff] }
0x183d   :  { %v3423_v49 = vadd.f32 1.4214138, %v3415_v48  ;;  %v3416_v52 = vmul.f32 %v4936_v34, %v3408_v12  ;;  %v3722_v48 = vld [vmem:[%s6360_s2 + $0x20] sm:$0xff]  ;;  %v3721_v12 = vld [vmem:[%s6360_s2 + $0x18] sm:$0xff] }
0x183f   :  { %v3431_v27 = vmul.f32 %v4934_v9, %v3423_v49  ;;  %v3424_v28 = vadd.f32 1.4214138, %v3416_v52  ;;  %v3720_v49 = vld [vmem:[%s6360_s2 + $0x10] sm:$0xff]  ;;  %v3719_v52 = vld [vmem:[%s6360_s2 + $0x8] sm:$0xff] }
0x1841   :  { %v3439_v42 = vadd.f32 -0.28449672, %v3431_v27  ;;  %v3432_v36 = vmul.f32 %v4936_v34, %v3424_v28  ;;  %v3718_v27 = vld [vmem:[%s6360_s2] sm:$0xff] }
0x1843   :  { %v3447_v31 = vmul.f32 %v4934_v9, %v3439_v42  ;;  %v3440_v1 = vadd.f32 -0.28449672, %v3432_v36 }
0x1845   :  { %v3455_v47 = vadd.f32 0.2548296, %v3447_v31  ;;  %v3448_v50 = vmul.f32 %v4936_v34, %v3440_v1 }
0x1847   :  { %v3463_v62 = vmul.f32 %v4934_v9, %v3455_v47  ;;  %v3456_v41 = vadd.f32 0.2548296, %v3448_v50 }
0x1849   :  { %v3503_v18 = vmul.f32 %v4938_v40, %v3463_v62  ;;  %v3464_v4 = vmul.f32 %v4936_v34, %v3456_v41  ;;  %v3726_v34 = vld [vmem:[%s6360_s2 + $0x40] sm:$0xff] }
0x184a   :  { %v4141_v41 = vld [vmem:[%s5889_s16 + $0x1] ss:$0 sm:$0xff] }
0x184b   :  { %v3511_v7 = vsub.f32 1.0, %v3503_v18  ;;  %v3504_v29 = vmul.f32 %v4940_v61, %v3464_v4 }
0x184d   :  { %v3519_v10 = vmul.f32 %v3511_v7, %v3351_v2  ;;  %v3512_v51 = vsub.f32 1.0, %v3504_v29  ;;  %v4142_v7 = vld [vmem:[%s5894_s21 + $0x1] ss:$0 sm:$0xff] }
0x184f   :  { %v3520_v57 = vmul.f32 %v3512_v51, %v3352_v43  ;;  %v3527_v3 = vadd.f32 1.0, %v3519_v10  ;;  %v3822_v51 = vld [vmem:[%s6392_s19 + $0x58] sm:$0xff] }
0x1851   :  { %v3528_v58 = vadd.f32 1.0, %v3520_v57  ;;  %v3535_v53 = vmul.f32 %v3527_v3, %v3327_v11  ;;  %v3821_v57 = vld [vmem:[%s6392_s19 + $0x50] sm:$0xff]  ;;  %v3820_v3 = vld [vmem:[%s6392_s19 + $0x48] sm:$0xff] }
0x1852   :  { %v3817_v11 = vld [vmem:[%s6392_s19 + $0x30] sm:$0xff] }
0x1853   :  { %v3536_v22 = vmul.f32 %v3528_v58, %v3328_v5  ;;  %v3819_v5 = vld [vmem:[%s6392_s19 + $0x40] sm:$0xff]  ;;  %v3818_v58 = vld [vmem:[%s6392_s19 + $0x38] sm:$0xff] }
0x1855   :  { %4138 = vmatprep.mubr.msk.f32.mxu0 %vm912_vm7, %v3536_v22  ;;  %vm4979_vm7 = vmmov 0   ;;  %v3816_v22 = vld [vmem:[%s6392_s19 + $0x28] sm:$0xff] }
0x1856   :  { %3661 = vmatmul.mubr.f32.gmra.mxu0 %v3535_v53  ;;  %4686 = vmatprep.mubr.msk.f32.mxu1 %vm4979_vm7, %v4961_v33  ;;  %v3815_v53 = vld [vmem:[%s6392_s19 + $0x20] sm:$0xff] }
0x187d   :  { %v3648_v26 = vpop.f32.mrf.mxu0 }
0x187e   :  { %v3649_v63 = vadd.f32 %v4134_v0, %v3648_v26  ;;  %v3813_v26 = vld [vmem:[%s6392_s19 + $0x10] sm:$0xff] }
0x187f   :  { %v3650_v46 = vpop.f32.mrf.mxu0 }
0x1880   :  { %v3665_v32 = vadd.f32 %v3649_v63, %v6176_v6  ;;  %v3812_v63 = vld [vmem:[%s6392_s19 + $0x8] sm:$0xff]  ;;  %v3811_v46 = vld [vmem:[%s6392_s19] sm:$0xff] }
0x1882   :  { %v3653_v8 = vpop.f32.mrf.mxu0  ;;  %v3671_v30 = vsel %vm127_vm0, %v3665_v32, 0.0 }
0x1883   :  { %3672 = vadd.xlane.f32.xlu1 %v3671_v30 }
0x1884   :  { %v3654_v24 = vpop.f32.mrf.mxu0 }
0x1886   :  { %v3657_v56 = vpop.f32.mrf.mxu0 }
0x1887   :  { %v3658_v54 = vadd.f32 %v4134_v0, %v3657_v56  ;;  %v3814_v0 = vld [vmem:[%s6392_s19 + $0x18] sm:$0xff] }
0x1888   :  { %v3659_v55 = vpop.f32.mrf.mxu0 }
0x1889   :  { %v3666_v20 = vadd.f32 %v3658_v54, %v6189_v17  ;;  %v3729_v17 = vld [vmem:[%s6360_s2 + $0x58] sm:$0xff] }
0x188a   :  { %4663 = vmatpush3.msra.mxu1 %v3729_v17 }
0x188b   :  { %v3674_v23 = vsel %vm127_vm0, %v3666_v20, 0.0  ;;  %4664 = vmatprep.subr.mxu1 %v4961_v33 }
0x188c   :  { %3675 = vadd.xlane.f32.xlu0 %v3674_v23  ;;  %4665 = vmatpush3.msra.mxu1 %v3728_v38 }
0x188d   :  { %4666 = vmatprep.subr.mxu1 %v4961_v33 }
0x188e   :  { %4667 = vmatpush3.msra.mxu1 %v3727_v44 }
0x188f   :  { %4668 = vmatprep.subr.mxu1 %v4961_v33 }
0x1890   :  { %4669 = vmatpush3.msra.mxu1 %v3726_v34 }
0x1891   :  { %4670 = vmatprep.subr.mxu1 %v4961_v33 }
0x1892   :  { %4671 = vmatpush3.msra.mxu1 %v3725_v14 }
0x1893   :  { %4672 = vmatprep.subr.mxu1 %v4961_v33 }
0x1894   :  { %4673 = vmatpush3.msra.mxu1 %v3724_v37 }
0x1895   :  { %4674 = vmatprep.subr.mxu1 %v4961_v33 }
0x1896   :  { %4675 = vmatpush3.msra.mxu1 %v3723_v13 }
0x1897   :  { %4676 = vmatprep.subr.mxu1 %v4961_v33 }
0x1898   :  { %4677 = vmatpush3.msra.mxu1 %v3722_v48 }
0x1899   :  { %4678 = vmatprep.subr.mxu1 %v4961_v33 }
0x189a   :  { %4679 = vmatpush3.msra.mxu1 %v3721_v12 }
0x189b   :  { %4680 = vmatprep.subr.mxu1 %v4961_v33 }
0x189c   :  { %4681 = vmatpush3.msra.mxu1 %v3720_v49 }
0x189d   :  { %4682 = vmatprep.subr.mxu1 %v4961_v33 }
0x189e   :  { %4683 = vmatpush3.msra.mxu1 %v3719_v52 }
0x189f   :  { %4684 = vmatprep.subr.mxu1 %v4961_v33 }
0x18a0   :  { %4685 = vmatpush3.msra.mxu1 %v3718_v27 }
0x18a1   :  { %4689 = vmatprep.subr.mxu1 %v4961_v33 }
0x190c   :  { %v3673_v59 = vpop.xlane.xlu1 %3672 }
0x190d   :  { %v3677_v35 = vmul.f32 0.010416667, %v3673_v59 }
0x190f   :  { %v3679_v19 = vsub.f32 %v3665_v32, %v3677_v35  ;;  %v4143_v32 = vld [vmem:[%s3934_s25] ss:$0 sm:$0xff] }
0x1911   :  { %v3681_v15 = vmul.f32 %v3679_v19, %v3679_v19 }
0x1913   :  { %v3683_v21 = vsel %vm127_vm0, %v3681_v15, 0.0 }
0x1914   :  { %3684 = vadd.xlane.f32.xlu1 %v3683_v21 }
0x1915   :  { %v3676_v25 = vpop.xlane.xlu0 %3675 }
0x1916   :  { %v3662_v6 = vpop.f32.mrf.mxu0  ;;  %v3678_v16 = vmul.f32 0.010416667, %v3676_v25 }
0x1918   :  { %v3663_v60 = vpop.f32.mrf.mxu0  ;;  %v3680_v45 = vsub.f32 %v3666_v20, %v3678_v16 }
0x191a   :  { %v3682_v9 = vmul.f32 %v3680_v45, %v3680_v45 }
0x191c   :  { %v3686_v39 = vsel %vm127_vm0, %v3682_v9, 0.0 }
0x191d   :  { %3687 = vadd.xlane.f32.xlu0 %v3686_v39 }
0x199d   :  { %v3685_v28 = vpop.xlane.xlu1 %3684 }
0x199e   :  { %v3689_v42 = vmul.f32 0.010416667, %v3685_v28 }
0x19a0   :  { %v3691_v36 = vadd.f32 1e-05, %v3689_v42 }
0x19a2   :  { %4941 = vrsqrt.f32 %v3691_v36 }
0x19a6   :  { %v3688_v31 = vpop.xlane.xlu0 %3687 }
0x19a7   :  { %v3690_v1 = vmul.f32 0.010416667, %v3688_v31 }
0x19a9   :  { %v3692_v47 = vadd.f32 1e-05, %v3690_v1 }
0x19ab   :  { %4943 = vrsqrt.f32 %v3692_v47 }
0x19af   :  { %v4942_v50 = vpop.eup %4941 }
0x19b0   :  { %v3695_v62 = vmul.f32 %v4942_v50, %v3679_v19 }
0x19b2   :  { %v3703_v4 = vmul.f32 %v4141_v41, %v3695_v62 }
0x19b4   :  { %v3711_v29 = vadd.f32 %v4142_v7, %v3703_v4 }
0x19b8   :  { %v4944_v40 = vpop.eup %4943 }
0x19b9   :  { %v3696_v18 = vmul.f32 %v4944_v40, %v3680_v45 }
0x19bb   :  { %v3704_v61 = vmul.f32 %v4141_v41, %v3696_v18 }
0x19bd   :  { %v3712_v2 = vadd.f32 %v4142_v7, %v3704_v61 }
0x19bf   :  { %v3714_v10 = vrot.slane %v3712_v2, 7 }
0x19c1   :  { %v3717_v43 = vsel %vm3716_vm11, %v3711_v29, %v3714_v10 }
0x19c2   :  { %4687 = vmatmul.mubr.msk.f32.vlgmr.msra.gmra.mxu1 %vm127_vm0, %v3717_v43 }
0x19c3   :  { %4690 = vmatpush3.msra.mxu1 %v3822_v51  ;;  %4713 = vmatprep.mubr.msk.f32.mxu1 %vm4979_vm7, %v4961_v33 }
0x19c4   :  { %4691 = vmatprep.subr.mxu1 %v4961_v33 }
0x19c5   :  { %4692 = vmatpush3.msra.mxu1 %v3821_v57 }
0x19c6   :  { %4693 = vmatprep.subr.mxu1 %v4961_v33 }
0x19c7   :  { %4694 = vmatpush3.msra.mxu1 %v3820_v3 }
0x19c8   :  { %4695 = vmatprep.subr.mxu1 %v4961_v33 }
0x19c9   :  { %4696 = vmatpush3.msra.mxu1 %v3819_v5 }
0x19ca   :  { %4697 = vmatprep.subr.mxu1 %v4961_v33 }
0x19cb   :  { %4698 = vmatpush3.msra.mxu1 %v3818_v58 }
0x19cc   :  { %4699 = vmatprep.subr.mxu1 %v4961_v33 }
0x19cd   :  { %4700 = vmatpush3.msra.mxu1 %v3817_v11 }
0x19ce   :  { %4701 = vmatprep.subr.mxu1 %v4961_v33 }
0x19cf   :  { %4702 = vmatpush3.msra.mxu1 %v3816_v22 }
0x19d0   :  { %4703 = vmatprep.subr.mxu1 %v4961_v33 }
0x19d1   :  { %4704 = vmatpush3.msra.mxu1 %v3815_v53 }
0x19d2   :  { %4705 = vmatprep.subr.mxu1 %v4961_v33 }
0x19d3   :  { %4706 = vmatpush3.msra.mxu1 %v3814_v0 }
0x19d4   :  { %4707 = vmatprep.subr.mxu1 %v4961_v33 }
0x19d5   :  { %4708 = vmatpush3.msra.mxu1 %v3813_v26 }
0x19d6   :  { %4709 = vmatprep.subr.mxu1 %v4961_v33 }
0x19d7   :  { %4710 = vmatpush3.msra.mxu1 %v3812_v63 }
0x19d8   :  { %4711 = vmatprep.subr.mxu1 %v4961_v33  ;;  %v4145_v33 = vld [vmem:[%s3936_s30] ss:$0 sm:$0xff] }
0x19d9   :  { %4712 = vmatpush3.msra.mxu1 %v3811_v46 }
0x1a82   :  { %v3806_v8 = vpop.f32.mrf.mxu1 }
0x1a83   :  { %v3807_v30 = vadd.f32 %v4143_v32, %v3806_v8 }
0x1a84   :  { %v4688_v24 = vpop.f32.mrf.mxu1 }
0x1a85   :  { %4945 = vtanh.f32 %v3807_v30 }
0x1a92   :  { %v4946_v56 = vpop.eup %4945 }
0x1a93   :  { %4714 = vmatmul.mubr.msk.f32.vlgmr.msra.gmra.mxu1 %vm127_vm0, %v4946_v56 }
0x1b53   :  { %v3899_v54 = vpop.f32.mrf.mxu1 }
0x1b54   :  { %v3900_v55 = vadd.f32 %v4145_v33, %v3899_v54 }
0x1b55   :  { %v4715_v20 = vpop.f32.mrf.mxu1 }
0x1b56   :  { %3904 = vst.msk [vmem:[%s3937_s7] sm:$0x3] %vm3903_vm12, %v3900_v55 }

</bundles_post_ra>
